<compile_context>
chip_gen: v6e
topology: v6e:2x2x1
jax: 0.10.0
libtpu: 0.0.40
codegen_flags: <defaults>
</compile_context>

<pallas_src>
import functools
from math import exp

import jax
import jax.numpy as jnp
import numpy as np
from jax.experimental import pallas as pl
from jax.experimental.pallas import tpu as pltpu


# ----------------------------- constant builders -----------------------------
def _gaussian_1d(window_size, sigma=1.5):
    g = np.array(
        [exp(-(x - window_size // 2) ** 2 / float(2 * sigma ** 2)) for x in range(window_size)],
        dtype=np.float32,
    )
    return g / g.sum()


def _band_matrix(size_in, size_out, gauss, pad):
    """M[c, j] = sum_k gauss[k] over k with clamp(j + k - pad, 0, size_in-1) == c.

    Right-multiplying a (rows, size_in) plane by M performs the 1-D Gaussian
    conv *including* the replicate edge padding of `pad` used by the reference
    (replicate padding commutes with the separable conv, so folding it into
    the banded matrix is exact).
    """
    ws = gauss.shape[0]
    m = np.zeros((size_in, size_out), dtype=np.float32)
    for j in range(size_out):
        for k in range(ws):
            c = min(max(j + k - pad, 0), size_in - 1)
            m[c, j] += gauss[k]
    return m


def _pool_matrices(h, w):
    """F.avg_pool2d(x, (2, 2)) == AV @ x @ AH  (per plane; odd tail dropped)."""
    hn, wn = h // 2, w // 2
    ah = np.zeros((w, wn), dtype=np.float32)
    ah[2 * np.arange(wn), np.arange(wn)] = 0.5
    ah[2 * np.arange(wn) + 1, np.arange(wn)] = 0.5
    av = np.zeros((hn, h), dtype=np.float32)
    av[np.arange(hn), 2 * np.arange(hn)] = 0.5
    av[np.arange(hn), 2 * np.arange(hn) + 1] = 0.5
    return av, ah


# ------------------------------- Pallas kernel -------------------------------
def _fast_recip(x):
    # EUP approx reciprocal (own VLIW slot, ~free) + one Newton step for
    # f32-level accuracy instead of the multi-op VALU divide sequence.
    r = pl.reciprocal(x, approx=True)
    return r * (2.0 - x * r)


def _msssim_kernel(*refs, levels, dims):
    """One grid program == one (H0, W0) plane; all pyramid levels unrolled.

    refs layout:
      cc (SMEM (2,): c1, c2),
      x1 (1, H0, W0), x2 (1, H0, W0),
      gh[0..levels-1], gv[0..levels-1], mask[0..levels-1],
      ah[0..levels-2], av[0..levels-2],
      out (1, 8, 128)  -- row 0: per-level ssim means, row 1: per-level cs means
    """
    cc_ref, x1_ref, x2_ref = refs[0], refs[1], refs[2]
    off = 3
    gh_refs = refs[off:off + levels]; off += levels
    gv_refs = refs[off:off + levels]; off += levels
    mask_refs = refs[off:off + levels]; off += levels
    ah_refs = refs[off:off + levels - 1]; off += levels - 1
    av_refs = refs[off:off + levels - 1]; off += levels - 1
    out_ref = refs[off]

    c1 = cc_ref[0]
    c2 = cc_ref[1]

    x1 = x1_ref[0]          # (h, w) current pyramid level of this plane
    x2 = x2_ref[0]

    ssim_means = []
    cs_means = []

    for lvl in range(levels):
        h, w, h_out, w_out, w_pad = dims[lvl]
        gh = gh_refs[lvl][...]        # (w, w_pad)   lane-padded horizontal band
        gv = gv_refs[lvl][...]        # (h_out, h)   vertical band (shared)
        mask = mask_refs[lvl][...]    # (1, w_pad)   1.0 valid / 0.0 pad column

        # --- batched separable conv: 2 MXU matmuls for all 5 maps ------------
        x5 = jnp.concatenate([x1, x2, x1 * x1, x2 * x2, x1 * x2], axis=0)   # (5h, w)
        t5 = jnp.dot(x5, gh, preferred_element_type=jnp.float32)            # (5h, w_pad)
        t = jnp.concatenate(
            [t5[0 * h:1 * h], t5[1 * h:2 * h], t5[2 * h:3 * h],
             t5[3 * h:4 * h], t5[4 * h:5 * h]], axis=1)                      # (h, 5*w_pad)
        cmaps = jnp.dot(gv, t, preferred_element_type=jnp.float32)           # (h_out, 5*w_pad)

        mu1 = cmaps[:, 0 * w_pad:1 * w_pad]
        mu2 = cmaps[:, 1 * w_pad:2 * w_pad]
        e11 = cmaps[:, 2 * w_pad:3 * w_pad]
        e22 = cmaps[:, 3 * w_pad:4 * w_pad]
        e12 = cmaps[:, 4 * w_pad:5 * w_pad]

        mu1_sq = mu1 * mu1
        mu2_sq = mu2 * mu2
        mu1_mu2 = mu1 * mu2
        sigma1_sq = e11 - mu1_sq
        sigma2_sq = e22 - mu2_sq
        sigma12 = e12 - mu1_mu2

        v1 = 2.0 * sigma12 + c2
        v2 = sigma1_sq + sigma2_sq + c2
        # single mask multiply; pad columns contribute 0 to both sums and
        # ssim_map inherits the mask through cs_map for free
        cs_map = v1 * _fast_recip(v2) * mask
        ssim_map = (2.0 * mu1_mu2 + c1) * _fast_recip(mu1_sq + mu2_sq + c1) * cs_map

        inv_count = 1.0 / float(h_out * w_out)
        ssim_means.append(jnp.sum(ssim_map) * inv_count)
        cs_means.append(jnp.sum(cs_map) * inv_count)

        # --- 2x2 avg-pool to the next level (per plane, no kron) ------------
        if lvl < levels - 1:
            ah = ah_refs[lvl][...]    # (w, w//2)
            av = av_refs[lvl][...]    # (h//2, h)
            x1 = jnp.dot(av, jnp.dot(x1, ah, preferred_element_type=jnp.float32),
                         preferred_element_type=jnp.float32)
            x2 = jnp.dot(av, jnp.dot(x2, ah, preferred_element_type=jnp.float32),
                         preferred_element_type=jnp.float32)

    # pack 2*levels scalars into one lane-aligned (8, 128) output tile
    rows = jax.lax.broadcasted_iota(jnp.int32, (8, 128), 0)
    cols = jax.lax.broadcasted_iota(jnp.int32, (8, 128), 1)
    tile = jnp.zeros((8, 128), jnp.float32)
    for lvl in range(levels):
        tile = jnp.where((rows == 0) & (cols == lvl), ssim_means[lvl], tile)
        tile = jnp.where((rows == 1) & (cols == lvl), cs_means[lvl], tile)
    out_ref[0] = tile


# --------------------------------- wrapper -----------------------------------
def msssim_pallas(img1, img2, window_size=11, size_average=True):
    # size_average=True path (module default).
    # TODO(synk): size_average=False (per-sample means) is not exercised by MSSSIM.forward.
    n, c, h0, w0 = img1.shape
    nc = n * c
    levels = 5
    pad = 5  # reference always pads (5,5,5,5) regardless of the real window size

    dims = []
    gh_list, gv_list, mask_list, ah_list, av_list = [], [], [], [], []
    h, w = h0, w0
    for lvl in range(levels):
        ws = min(window_size, h, w)
        h_out = h + 2 * pad - ws + 1
        w_out = w + 2 * pad - ws + 1
        w_pad = ((w_out + 127) // 128) * 128          # lane-dense conv output width
        g = _gaussian_1d(ws)
        gh = np.zeros((w, w_pad), dtype=np.float32)
        gh[:, :w_out] = _band_matrix(w, w_out, g, pad)
        gv = _band_matrix(h, h_out, g, pad).T          # (h_out, h), shared by all planes
        msk = np.zeros((1, w_pad), dtype=np.float32)
        msk[0, :w_out] = 1.0
        dims.append((h, w, h_out, w_out, w_pad))
        gh_list.append(jnp.asarray(gh))
        gv_list.append(jnp.asarray(gv))
        mask_list.append(jnp.asarray(msk))
        if lvl < levels - 1:
            av, ah = _pool_matrices(h, w)
            av_list.append(jnp.asarray(av))
            ah_list.append(jnp.asarray(ah))
            h, w = h // 2, w // 2

    x1 = img1.reshape(nc, h0, w0).astype(jnp.float32)
    x2 = img2.reshape(nc, h0, w0).astype(jnp.float32)

    # Dynamic-range classification hoisted out of the per-level loop.
    # TODO(synk): the reference recomputes max/min on the pooled img1 each
    # level; this differs only if 2x2 avg-pooling crosses the >128 / <-0.5
    # thresholds between levels (review-approved hoist).
    mx = jnp.max(x1)
    mn = jnp.min(x1)
    max_val = jnp.where(mx > 128.0, 255.0, 1.0)
    min_val = jnp.where(mn < -0.5, -1.0, 0.0)
    lum_range = max_val - min_val
    cc = jnp.stack([(0.01 * lum_range) ** 2, (0.03 * lum_range) ** 2]).astype(jnp.float32)

    kernel = functools.partial(_msssim_kernel, levels=levels, dims=tuple(dims))

    smem_full = pl.BlockSpec(memory_space=pltpu.MemorySpace.SMEM)
    vmem_full = pl.BlockSpec(memory_space=pltpu.MemorySpace.VMEM)
    plane_spec = pl.BlockSpec((1, h0, w0), lambda p: (p, 0, 0))
    n_const = 3 * levels + 2 * (levels - 1)

    out = pl.pallas_call(
        kernel,
        grid=(nc,),
        out_shape=jax.ShapeDtypeStruct((nc, 8, 128), jnp.float32),
        in_specs=[smem_full, plane_spec, plane_spec] + [vmem_full] * n_const,
        out_specs=pl.BlockSpec((1, 8, 128), lambda p: (p, 0, 0)),
        compiler_params=pltpu.CompilerParams(dimension_semantics=("parallel",)),
    )(cc, x1, x2, *gh_list, *gv_list, *mask_list, *ah_list, *av_list)

    # per-plane means -> global means (all planes have identical map sizes)
    mssim = jnp.mean(out[:, 0, :levels], axis=0)
    mcs = jnp.mean(out[:, 1, :levels], axis=0)
    weights = jnp.array([0.0448, 0.2856, 0.3001, 0.2363, 0.1333], dtype=jnp.float32)
    pow1 = mcs ** weights
    pow2 = mssim ** weights
    # NOTE: matches the reference implementation verbatim: prod(pow1[:-1] * pow2[-1])
    return jnp.prod(pow1[:-1] * pow2[-1])


class MSSSIM:
    """JAX/Pallas equivalent of the PyTorch MSSSIM module (forward pass)."""

    def __init__(self, window_size=11, size_average=True, channel=3):
        self.window_size = window_size
        self.size_average = size_average
        self.channel = channel

    def __call__(self, img1, img2):
        return msssim_pallas(img1, img2, window_size=self.window_size,
                             size_average=self.size_average)


if __name__ == "__main__":
    key = jax.random.PRNGKey(0)
    k1, k2 = jax.random.split(key)
    # Spatial size 96 keeps the deepest pyramid level (96 / 2^4 = 6) compatible
    # with the fixed replicate pad of 5 used by the reference implementation.
    img1 = jax.random.uniform(k1, (2, 3, 96, 96), dtype=jnp.float32)
    img2 = jax.random.uniform(k2, (2, 3, 96, 96), dtype=jnp.float32)

    model = MSSSIM(window_size=11, size_average=True, channel=3)
    out = jax.jit(model.__call__)(img1, img2)
    out = jax.block_until_ready(out)
    assert out.shape == () and jnp.isfinite(out)
    print("KERNEL_OK")
</pallas_src>

<mosaic_0001>
module attributes {stable_mosaic.version = 11 : i64} {
  func.func @_msssim_kernel(%arg0: i32, %arg1: memref<2xf32, #tpu.memory_space<smem>>, %arg2: memref<1x96x96xf32, #tpu.memory_space<vmem>>, %arg3: memref<1x96x96xf32, #tpu.memory_space<vmem>>, %arg4: memref<96x128xf32, #tpu.memory_space<vmem>>, %arg5: memref<48x128xf32, #tpu.memory_space<vmem>>, %arg6: memref<24x128xf32, #tpu.memory_space<vmem>>, %arg7: memref<12x128xf32, #tpu.memory_space<vmem>>, %arg8: memref<6x128xf32, #tpu.memory_space<vmem>>, %arg9: memref<96x96xf32, #tpu.memory_space<vmem>>, %arg10: memref<48x48xf32, #tpu.memory_space<vmem>>, %arg11: memref<24x24xf32, #tpu.memory_space<vmem>>, %arg12: memref<12x12xf32, #tpu.memory_space<vmem>>, %arg13: memref<11x6xf32, #tpu.memory_space<vmem>>, %arg14: memref<1x128xf32, #tpu.memory_space<vmem>>, %arg15: memref<1x128xf32, #tpu.memory_space<vmem>>, %arg16: memref<1x128xf32, #tpu.memory_space<vmem>>, %arg17: memref<1x128xf32, #tpu.memory_space<vmem>>, %arg18: memref<1x128xf32, #tpu.memory_space<vmem>>, %arg19: memref<96x48xf32, #tpu.memory_space<vmem>>, %arg20: memref<48x24xf32, #tpu.memory_space<vmem>>, %arg21: memref<24x12xf32, #tpu.memory_space<vmem>>, %arg22: memref<12x6xf32, #tpu.memory_space<vmem>>, %arg23: memref<48x96xf32, #tpu.memory_space<vmem>>, %arg24: memref<24x48xf32, #tpu.memory_space<vmem>>, %arg25: memref<12x24xf32, #tpu.memory_space<vmem>>, %arg26: memref<6x12xf32, #tpu.memory_space<vmem>>, %arg27: memref<1x8x128xf32, #tpu.memory_space<vmem>>) attributes {dimension_semantics = [#tpu.dimension_semantics<parallel>], iteration_bounds = array<i64: 6>, scalar_prefetch = 0 : i64, scratch_operands = 0 : i64, tpu.core_type = #tpu.core_type<tc>, window_params = [{transform_indices = @transform_0, window_bounds = array<i64: 2>}, {transform_indices = @transform_1, window_bounds = array<i64: 1, 96, 96>}, {transform_indices = @transform_2, window_bounds = array<i64: 1, 96, 96>}, {pipeline_mode = #tpu.pipeline_mode<synchronous>, transform_indices = @transform_3, window_bounds = array<i64: 96, 128>}, {pipeline_mode = #tpu.pipeline_mode<synchronous>, transform_indices = @transform_4, window_bounds = array<i64: 48, 128>}, {pipeline_mode = #tpu.pipeline_mode<synchronous>, transform_indices = @transform_5, window_bounds = array<i64: 24, 128>}, {pipeline_mode = #tpu.pipeline_mode<synchronous>, transform_indices = @transform_6, window_bounds = array<i64: 12, 128>}, {pipeline_mode = #tpu.pipeline_mode<synchronous>, transform_indices = @transform_7, window_bounds = array<i64: 6, 128>}, {pipeline_mode = #tpu.pipeline_mode<synchronous>, transform_indices = @transform_8, window_bounds = array<i64: 96, 96>}, {pipeline_mode = #tpu.pipeline_mode<synchronous>, transform_indices = @transform_9, window_bounds = array<i64: 48, 48>}, {pipeline_mode = #tpu.pipeline_mode<synchronous>, transform_indices = @transform_10, window_bounds = array<i64: 24, 24>}, {pipeline_mode = #tpu.pipeline_mode<synchronous>, transform_indices = @transform_11, window_bounds = array<i64: 12, 12>}, {pipeline_mode = #tpu.pipeline_mode<synchronous>, transform_indices = @transform_12, window_bounds = array<i64: 11, 6>}, {pipeline_mode = #tpu.pipeline_mode<synchronous>, transform_indices = @transform_13, window_bounds = array<i64: 1, 128>}, {pipeline_mode = #tpu.pipeline_mode<synchronous>, transform_indices = @transform_14, window_bounds = array<i64: 1, 128>}, {pipeline_mode = #tpu.pipeline_mode<synchronous>, transform_indices = @transform_15, window_bounds = array<i64: 1, 128>}, {pipeline_mode = #tpu.pipeline_mode<synchronous>, transform_indices = @transform_16, window_bounds = array<i64: 1, 128>}, {pipeline_mode = #tpu.pipeline_mode<synchronous>, transform_indices = @transform_17, window_bounds = array<i64: 1, 128>}, {pipeline_mode = #tpu.pipeline_mode<synchronous>, transform_indices = @transform_18, window_bounds = array<i64: 96, 48>}, {pipeline_mode = #tpu.pipeline_mode<synchronous>, transform_indices = @transform_19, window_bounds = array<i64: 48, 24>}, {pipeline_mode = #tpu.pipeline_mode<synchronous>, transform_indices = @transform_20, window_bounds = array<i64: 24, 12>}, {pipeline_mode = #tpu.pipeline_mode<synchronous>, transform_indices = @transform_21, window_bounds = array<i64: 12, 6>}, {pipeline_mode = #tpu.pipeline_mode<synchronous>, transform_indices = @transform_22, window_bounds = array<i64: 48, 96>}, {pipeline_mode = #tpu.pipeline_mode<synchronous>, transform_indices = @transform_23, window_bounds = array<i64: 24, 48>}, {pipeline_mode = #tpu.pipeline_mode<synchronous>, transform_indices = @transform_24, window_bounds = array<i64: 12, 24>}, {pipeline_mode = #tpu.pipeline_mode<synchronous>, transform_indices = @transform_25, window_bounds = array<i64: 6, 12>}, {transform_indices = @transform_26, window_bounds = array<i64: 1, 8, 128>}]} {
    %c0 = arith.constant 0 : index
    %0 = memref.load %arg1[%c0] : memref<2xf32, #tpu.memory_space<smem>>
    %c1 = arith.constant 1 : index
    %1 = memref.load %arg1[%c1] : memref<2xf32, #tpu.memory_space<smem>>
    %c0_0 = arith.constant 0 : index
    %c0_1 = arith.constant 0 : index
    %c0_2 = arith.constant 0 : index
    %2 = vector.load %arg2[%c0_0, %c0_1, %c0_2] : memref<1x96x96xf32, #tpu.memory_space<vmem>>, vector<1x96x96xf32>
    %3 = vector.shape_cast %2 : vector<1x96x96xf32> to vector<96x96xf32>
    %c0_3 = arith.constant 0 : index
    %c0_4 = arith.constant 0 : index
    %c0_5 = arith.constant 0 : index
    %4 = vector.load %arg3[%c0_3, %c0_4, %c0_5] : memref<1x96x96xf32, #tpu.memory_space<vmem>>, vector<1x96x96xf32>
    %5 = vector.shape_cast %4 : vector<1x96x96xf32> to vector<96x96xf32>
    %c0_6 = arith.constant 0 : index
    %c0_7 = arith.constant 0 : index
    %6 = vector.load %arg4[%c0_6, %c0_7] : memref<96x128xf32, #tpu.memory_space<vmem>>, vector<96x128xf32>
    %c0_8 = arith.constant 0 : index
    %c0_9 = arith.constant 0 : index
    %7 = vector.load %arg9[%c0_8, %c0_9] : memref<96x96xf32, #tpu.memory_space<vmem>>, vector<96x96xf32>
    %c0_10 = arith.constant 0 : index
    %c0_11 = arith.constant 0 : index
    %8 = vector.load %arg14[%c0_10, %c0_11] : memref<1x128xf32, #tpu.memory_space<vmem>>, vector<1x128xf32>
    %9 = arith.mulf %3, %3 : vector<96x96xf32>
    %10 = arith.mulf %5, %5 : vector<96x96xf32>
    %11 = arith.mulf %3, %5 : vector<96x96xf32>
    %12 = tpu.concatenate %3, %5, %9, %10, %11 in 0 : vector<96x96xf32>, vector<96x96xf32>, vector<96x96xf32>, vector<96x96xf32>, vector<96x96xf32> -> vector<480x96xf32>
    %cst = arith.constant dense<0.000000e+00> : vector<480x128xf32>
    %13 = tpu.matmul %12, %6, %cst {dimension_numbers = #tpu.dot_dimension_numbers<[1], [0], [0], [1], [0, 0, 1, 1], [], []>} : vector<480x96xf32>, vector<96x128xf32>, vector<480x128xf32> -> vector<480x128xf32>
    %14 = vector.extract_strided_slice %13 {offsets = [0, 0], sizes = [96, 128], strides = [1, 1]} : vector<480x128xf32> to vector<96x128xf32>
    %15 = vector.extract_strided_slice %13 {offsets = [96, 0], sizes = [96, 128], strides = [1, 1]} : vector<480x128xf32> to vector<96x128xf32>
    %16 = vector.extract_strided_slice %13 {offsets = [192, 0], sizes = [96, 128], strides = [1, 1]} : vector<480x128xf32> to vector<96x128xf32>
    %17 = vector.extract_strided_slice %13 {offsets = [288, 0], sizes = [96, 128], strides = [1, 1]} : vector<480x128xf32> to vector<96x128xf32>
    %18 = vector.extract_strided_slice %13 {offsets = [384, 0], sizes = [96, 128], strides = [1, 1]} : vector<480x128xf32> to vector<96x128xf32>
    %19 = tpu.concatenate %14, %15, %16, %17, %18 in 1 : vector<96x128xf32>, vector<96x128xf32>, vector<96x128xf32>, vector<96x128xf32>, vector<96x128xf32> -> vector<96x640xf32>
    %cst_12 = arith.constant dense<0.000000e+00> : vector<96x640xf32>
    %20 = tpu.matmul %7, %19, %cst_12 {dimension_numbers = #tpu.dot_dimension_numbers<[1], [0], [0], [1], [0, 0, 1, 1], [], []>} : vector<96x96xf32>, vector<96x640xf32>, vector<96x640xf32> -> vector<96x640xf32>
    %21 = vector.extract_strided_slice %20 {offsets = [0, 0], sizes = [96, 128], strides = [1, 1]} : vector<96x640xf32> to vector<96x128xf32>
    %22 = vector.extract_strided_slice %20 {offsets = [0, 128], sizes = [96, 128], strides = [1, 1]} : vector<96x640xf32> to vector<96x128xf32>
    %23 = vector.extract_strided_slice %20 {offsets = [0, 256], sizes = [96, 128], strides = [1, 1]} : vector<96x640xf32> to vector<96x128xf32>
    %24 = vector.extract_strided_slice %20 {offsets = [0, 384], sizes = [96, 128], strides = [1, 1]} : vector<96x640xf32> to vector<96x128xf32>
    %25 = vector.extract_strided_slice %20 {offsets = [0, 512], sizes = [96, 128], strides = [1, 1]} : vector<96x640xf32> to vector<96x128xf32>
    %26 = arith.mulf %21, %21 : vector<96x128xf32>
    %27 = arith.mulf %22, %22 : vector<96x128xf32>
    %28 = arith.mulf %21, %22 : vector<96x128xf32>
    %29 = arith.subf %23, %26 : vector<96x128xf32>
    %30 = arith.subf %24, %27 : vector<96x128xf32>
    %31 = arith.subf %25, %28 : vector<96x128xf32>
    %cst_13 = arith.constant 2.000000e+00 : f32
    %32 = vector.broadcast %cst_13 : f32 to vector<96x128xf32>
    %33 = arith.mulf %32, %31 : vector<96x128xf32>
    %34 = vector.broadcast %1 : f32 to vector<96x128xf32>
    %35 = arith.addf %33, %34 : vector<96x128xf32>
    %36 = arith.addf %29, %30 : vector<96x128xf32>
    %37 = vector.broadcast %1 : f32 to vector<96x128xf32>
    %38 = arith.addf %36, %37 : vector<96x128xf32>
    %39 = tpu.reciprocal %38 {approx = true} : vector<96x128xf32> -> vector<96x128xf32>
    %40 = arith.mulf %38, %39 : vector<96x128xf32>
    %cst_14 = arith.constant 2.000000e+00 : f32
    %41 = vector.broadcast %cst_14 : f32 to vector<96x128xf32>
    %42 = arith.subf %41, %40 : vector<96x128xf32>
    %43 = arith.mulf %39, %42 : vector<96x128xf32>
    %44 = arith.mulf %35, %43 : vector<96x128xf32>
    %45 = vector.broadcast %8 : vector<1x128xf32> to vector<96x128xf32>
    %46 = arith.mulf %44, %45 : vector<96x128xf32>
    %cst_15 = arith.constant 2.000000e+00 : f32
    %47 = vector.broadcast %cst_15 : f32 to vector<96x128xf32>
    %48 = arith.mulf %47, %28 : vector<96x128xf32>
    %49 = vector.broadcast %0 : f32 to vector<96x128xf32>
    %50 = arith.addf %48, %49 : vector<96x128xf32>
    %51 = arith.addf %26, %27 : vector<96x128xf32>
    %52 = vector.broadcast %0 : f32 to vector<96x128xf32>
    %53 = arith.addf %51, %52 : vector<96x128xf32>
    %54 = tpu.reciprocal %53 {approx = true} : vector<96x128xf32> -> vector<96x128xf32>
    %55 = arith.mulf %53, %54 : vector<96x128xf32>
    %cst_16 = arith.constant 2.000000e+00 : f32
    %56 = vector.broadcast %cst_16 : f32 to vector<96x128xf32>
    %57 = arith.subf %56, %55 : vector<96x128xf32>
    %58 = arith.mulf %54, %57 : vector<96x128xf32>
    %59 = arith.mulf %50, %58 : vector<96x128xf32>
    %60 = arith.mulf %59, %46 : vector<96x128xf32>
    %61 = vector.shape_cast %60 : vector<96x128xf32> to vector<1x96x128xf32>
    %cst_17 = arith.constant dense<0.000000e+00> : vector<1xf32>
    %62 = vector.multi_reduction <add>, %61, %cst_17 [1, 2] : vector<1x96x128xf32> to vector<1xf32>
    %63 = vector.shape_cast %62 : vector<1xf32> to vector<1x1x1xf32>
    %64 = vector.extract %63[0, 0, 0] : f32 from vector<1x1x1xf32>
    %cst_18 = arith.constant 1.08506945E-4 : f32
    %65 = arith.mulf %64, %cst_18 : f32
    %66 = vector.shape_cast %46 : vector<96x128xf32> to vector<1x96x128xf32>
    %cst_19 = arith.constant dense<0.000000e+00> : vector<1xf32>
    %67 = vector.multi_reduction <add>, %66, %cst_19 [1, 2] : vector<1x96x128xf32> to vector<1xf32>
    %68 = vector.shape_cast %67 : vector<1xf32> to vector<1x1x1xf32>
    %69 = vector.extract %68[0, 0, 0] : f32 from vector<1x1x1xf32>
    %cst_20 = arith.constant 1.08506945E-4 : f32
    %70 = arith.mulf %69, %cst_20 : f32
    %c0_21 = arith.constant 0 : index
    %c0_22 = arith.constant 0 : index
    %71 = vector.load %arg19[%c0_21, %c0_22] : memref<96x48xf32, #tpu.memory_space<vmem>>, vector<96x48xf32>
    %c0_23 = arith.constant 0 : index
    %c0_24 = arith.constant 0 : index
    %72 = vector.load %arg23[%c0_23, %c0_24] : memref<48x96xf32, #tpu.memory_space<vmem>>, vector<48x96xf32>
    %cst_25 = arith.constant dense<0.000000e+00> : vector<96x48xf32>
    %73 = tpu.matmul %3, %71, %cst_25 {dimension_numbers = #tpu.dot_dimension_numbers<[1], [0], [0], [1], [0, 0, 1, 1], [], []>} : vector<96x96xf32>, vector<96x48xf32>, vector<96x48xf32> -> vector<96x48xf32>
    %cst_26 = arith.constant dense<0.000000e+00> : vector<48x48xf32>
    %74 = tpu.matmul %72, %73, %cst_26 {dimension_numbers = #tpu.dot_dimension_numbers<[1], [0], [0], [1], [0, 0, 1, 1], [], []>} : vector<48x96xf32>, vector<96x48xf32>, vector<48x48xf32> -> vector<48x48xf32>
    %cst_27 = arith.constant dense<0.000000e+00> : vector<96x48xf32>
    %75 = tpu.matmul %5, %71, %cst_27 {dimension_numbers = #tpu.dot_dimension_numbers<[1], [0], [0], [1], [0, 0, 1, 1], [], []>} : vector<96x96xf32>, vector<96x48xf32>, vector<96x48xf32> -> vector<96x48xf32>
    %cst_28 = arith.constant dense<0.000000e+00> : vector<48x48xf32>
    %76 = tpu.matmul %72, %75, %cst_28 {dimension_numbers = #tpu.dot_dimension_numbers<[1], [0], [0], [1], [0, 0, 1, 1], [], []>} : vector<48x96xf32>, vector<96x48xf32>, vector<48x48xf32> -> vector<48x48xf32>
    %c0_29 = arith.constant 0 : index
    %c0_30 = arith.constant 0 : index
    %77 = vector.load %arg5[%c0_29, %c0_30] : memref<48x128xf32, #tpu.memory_space<vmem>>, vector<48x128xf32>
    %c0_31 = arith.constant 0 : index
    %c0_32 = arith.constant 0 : index
    %78 = vector.load %arg10[%c0_31, %c0_32] : memref<48x48xf32, #tpu.memory_space<vmem>>, vector<48x48xf32>
    %c0_33 = arith.constant 0 : index
    %c0_34 = arith.constant 0 : index
    %79 = vector.load %arg15[%c0_33, %c0_34] : memref<1x128xf32, #tpu.memory_space<vmem>>, vector<1x128xf32>
    %80 = arith.mulf %74, %74 : vector<48x48xf32>
    %81 = arith.mulf %76, %76 : vector<48x48xf32>
    %82 = arith.mulf %74, %76 : vector<48x48xf32>
    %83 = tpu.concatenate %74, %76, %80, %81, %82 in 0 : vector<48x48xf32>, vector<48x48xf32>, vector<48x48xf32>, vector<48x48xf32>, vector<48x48xf32> -> vector<240x48xf32>
    %cst_35 = arith.constant dense<0.000000e+00> : vector<240x128xf32>
    %84 = tpu.matmul %83, %77, %cst_35 {dimension_numbers = #tpu.dot_dimension_numbers<[1], [0], [0], [1], [0, 0, 1, 1], [], []>} : vector<240x48xf32>, vector<48x128xf32>, vector<240x128xf32> -> vector<240x128xf32>
    %85 = vector.extract_strided_slice %84 {offsets = [0, 0], sizes = [48, 128], strides = [1, 1]} : vector<240x128xf32> to vector<48x128xf32>
    %86 = vector.extract_strided_slice %84 {offsets = [48, 0], sizes = [48, 128], strides = [1, 1]} : vector<240x128xf32> to vector<48x128xf32>
    %87 = vector.extract_strided_slice %84 {offsets = [96, 0], sizes = [48, 128], strides = [1, 1]} : vector<240x128xf32> to vector<48x128xf32>
    %88 = vector.extract_strided_slice %84 {offsets = [144, 0], sizes = [48, 128], strides = [1, 1]} : vector<240x128xf32> to vector<48x128xf32>
    %89 = vector.extract_strided_slice %84 {offsets = [192, 0], sizes = [48, 128], strides = [1, 1]} : vector<240x128xf32> to vector<48x128xf32>
    %90 = tpu.concatenate %85, %86, %87, %88, %89 in 1 : vector<48x128xf32>, vector<48x128xf32>, vector<48x128xf32>, vector<48x128xf32>, vector<48x128xf32> -> vector<48x640xf32>
    %cst_36 = arith.constant dense<0.000000e+00> : vector<48x640xf32>
    %91 = tpu.matmul %78, %90, %cst_36 {dimension_numbers = #tpu.dot_dimension_numbers<[1], [0], [0], [1], [0, 0, 1, 1], [], []>} : vector<48x48xf32>, vector<48x640xf32>, vector<48x640xf32> -> vector<48x640xf32>
    %92 = vector.extract_strided_slice %91 {offsets = [0, 0], sizes = [48, 128], strides = [1, 1]} : vector<48x640xf32> to vector<48x128xf32>
    %93 = vector.extract_strided_slice %91 {offsets = [0, 128], sizes = [48, 128], strides = [1, 1]} : vector<48x640xf32> to vector<48x128xf32>
    %94 = vector.extract_strided_slice %91 {offsets = [0, 256], sizes = [48, 128], strides = [1, 1]} : vector<48x640xf32> to vector<48x128xf32>
    %95 = vector.extract_strided_slice %91 {offsets = [0, 384], sizes = [48, 128], strides = [1, 1]} : vector<48x640xf32> to vector<48x128xf32>
    %96 = vector.extract_strided_slice %91 {offsets = [0, 512], sizes = [48, 128], strides = [1, 1]} : vector<48x640xf32> to vector<48x128xf32>
    %97 = arith.mulf %92, %92 : vector<48x128xf32>
    %98 = arith.mulf %93, %93 : vector<48x128xf32>
    %99 = arith.mulf %92, %93 : vector<48x128xf32>
    %100 = arith.subf %94, %97 : vector<48x128xf32>
    %101 = arith.subf %95, %98 : vector<48x128xf32>
    %102 = arith.subf %96, %99 : vector<48x128xf32>
    %cst_37 = arith.constant 2.000000e+00 : f32
    %103 = vector.broadcast %cst_37 : f32 to vector<48x128xf32>
    %104 = arith.mulf %103, %102 : vector<48x128xf32>
    %105 = vector.broadcast %1 : f32 to vector<48x128xf32>
    %106 = arith.addf %104, %105 : vector<48x128xf32>
    %107 = arith.addf %100, %101 : vector<48x128xf32>
    %108 = vector.broadcast %1 : f32 to vector<48x128xf32>
    %109 = arith.addf %107, %108 : vector<48x128xf32>
    %110 = tpu.reciprocal %109 {approx = true} : vector<48x128xf32> -> vector<48x128xf32>
    %111 = arith.mulf %109, %110 : vector<48x128xf32>
    %cst_38 = arith.constant 2.000000e+00 : f32
    %112 = vector.broadcast %cst_38 : f32 to vector<48x128xf32>
    %113 = arith.subf %112, %111 : vector<48x128xf32>
    %114 = arith.mulf %110, %113 : vector<48x128xf32>
    %115 = arith.mulf %106, %114 : vector<48x128xf32>
    %116 = vector.broadcast %79 : vector<1x128xf32> to vector<48x128xf32>
    %117 = arith.mulf %115, %116 : vector<48x128xf32>
    %cst_39 = arith.constant 2.000000e+00 : f32
    %118 = vector.broadcast %cst_39 : f32 to vector<48x128xf32>
    %119 = arith.mulf %118, %99 : vector<48x128xf32>
    %120 = vector.broadcast %0 : f32 to vector<48x128xf32>
    %121 = arith.addf %119, %120 : vector<48x128xf32>
    %122 = arith.addf %97, %98 : vector<48x128xf32>
    %123 = vector.broadcast %0 : f32 to vector<48x128xf32>
    %124 = arith.addf %122, %123 : vector<48x128xf32>
    %125 = tpu.reciprocal %124 {approx = true} : vector<48x128xf32> -> vector<48x128xf32>
    %126 = arith.mulf %124, %125 : vector<48x128xf32>
    %cst_40 = arith.constant 2.000000e+00 : f32
    %127 = vector.broadcast %cst_40 : f32 to vector<48x128xf32>
    %128 = arith.subf %127, %126 : vector<48x128xf32>
    %129 = arith.mulf %125, %128 : vector<48x128xf32>
    %130 = arith.mulf %121, %129 : vector<48x128xf32>
    %131 = arith.mulf %130, %117 : vector<48x128xf32>
    %132 = vector.shape_cast %131 : vector<48x128xf32> to vector<1x48x128xf32>
    %cst_41 = arith.constant dense<0.000000e+00> : vector<1xf32>
    %133 = vector.multi_reduction <add>, %132, %cst_41 [1, 2] : vector<1x48x128xf32> to vector<1xf32>
    %134 = vector.shape_cast %133 : vector<1xf32> to vector<1x1x1xf32>
    %135 = vector.extract %134[0, 0, 0] : f32 from vector<1x1x1xf32>
    %cst_42 = arith.constant 4.34027781E-4 : f32
    %136 = arith.mulf %135, %cst_42 : f32
    %137 = vector.shape_cast %117 : vector<48x128xf32> to vector<1x48x128xf32>
    %cst_43 = arith.constant dense<0.000000e+00> : vector<1xf32>
    %138 = vector.multi_reduction <add>, %137, %cst_43 [1, 2] : vector<1x48x128xf32> to vector<1xf32>
    %139 = vector.shape_cast %138 : vector<1xf32> to vector<1x1x1xf32>
    %140 = vector.extract %139[0, 0, 0] : f32 from vector<1x1x1xf32>
    %cst_44 = arith.constant 4.34027781E-4 : f32
    %141 = arith.mulf %140, %cst_44 : f32
    %c0_45 = arith.constant 0 : index
    %c0_46 = arith.constant 0 : index
    %142 = vector.load %arg20[%c0_45, %c0_46] : memref<48x24xf32, #tpu.memory_space<vmem>>, vector<48x24xf32>
    %c0_47 = arith.constant 0 : index
    %c0_48 = arith.constant 0 : index
    %143 = vector.load %arg24[%c0_47, %c0_48] : memref<24x48xf32, #tpu.memory_space<vmem>>, vector<24x48xf32>
    %cst_49 = arith.constant dense<0.000000e+00> : vector<48x24xf32>
    %144 = tpu.matmul %74, %142, %cst_49 {dimension_numbers = #tpu.dot_dimension_numbers<[1], [0], [0], [1], [0, 0, 1, 1], [], []>} : vector<48x48xf32>, vector<48x24xf32>, vector<48x24xf32> -> vector<48x24xf32>
    %cst_50 = arith.constant dense<0.000000e+00> : vector<24x24xf32>
    %145 = tpu.matmul %143, %144, %cst_50 {dimension_numbers = #tpu.dot_dimension_numbers<[1], [0], [0], [1], [0, 0, 1, 1], [], []>} : vector<24x48xf32>, vector<48x24xf32>, vector<24x24xf32> -> vector<24x24xf32>
    %cst_51 = arith.constant dense<0.000000e+00> : vector<48x24xf32>
    %146 = tpu.matmul %76, %142, %cst_51 {dimension_numbers = #tpu.dot_dimension_numbers<[1], [0], [0], [1], [0, 0, 1, 1], [], []>} : vector<48x48xf32>, vector<48x24xf32>, vector<48x24xf32> -> vector<48x24xf32>
    %cst_52 = arith.constant dense<0.000000e+00> : vector<24x24xf32>
    %147 = tpu.matmul %143, %146, %cst_52 {dimension_numbers = #tpu.dot_dimension_numbers<[1], [0], [0], [1], [0, 0, 1, 1], [], []>} : vector<24x48xf32>, vector<48x24xf32>, vector<24x24xf32> -> vector<24x24xf32>
    %c0_53 = arith.constant 0 : index
    %c0_54 = arith.constant 0 : index
    %148 = vector.load %arg6[%c0_53, %c0_54] : memref<24x128xf32, #tpu.memory_space<vmem>>, vector<24x128xf32>
    %c0_55 = arith.constant 0 : index
    %c0_56 = arith.constant 0 : index
    %149 = vector.load %arg11[%c0_55, %c0_56] : memref<24x24xf32, #tpu.memory_space<vmem>>, vector<24x24xf32>
    %c0_57 = arith.constant 0 : index
    %c0_58 = arith.constant 0 : index
    %150 = vector.load %arg16[%c0_57, %c0_58] : memref<1x128xf32, #tpu.memory_space<vmem>>, vector<1x128xf32>
    %151 = arith.mulf %145, %145 : vector<24x24xf32>
    %152 = arith.mulf %147, %147 : vector<24x24xf32>
    %153 = arith.mulf %145, %147 : vector<24x24xf32>
    %154 = tpu.concatenate %145, %147, %151, %152, %153 in 0 : vector<24x24xf32>, vector<24x24xf32>, vector<24x24xf32>, vector<24x24xf32>, vector<24x24xf32> -> vector<120x24xf32>
    %cst_59 = arith.constant dense<0.000000e+00> : vector<120x128xf32>
    %155 = tpu.matmul %154, %148, %cst_59 {dimension_numbers = #tpu.dot_dimension_numbers<[1], [0], [0], [1], [0, 0, 1, 1], [], []>} : vector<120x24xf32>, vector<24x128xf32>, vector<120x128xf32> -> vector<120x128xf32>
    %156 = vector.extract_strided_slice %155 {offsets = [0, 0], sizes = [24, 128], strides = [1, 1]} : vector<120x128xf32> to vector<24x128xf32>
    %157 = vector.extract_strided_slice %155 {offsets = [24, 0], sizes = [24, 128], strides = [1, 1]} : vector<120x128xf32> to vector<24x128xf32>
    %158 = vector.extract_strided_slice %155 {offsets = [48, 0], sizes = [24, 128], strides = [1, 1]} : vector<120x128xf32> to vector<24x128xf32>
    %159 = vector.extract_strided_slice %155 {offsets = [72, 0], sizes = [24, 128], strides = [1, 1]} : vector<120x128xf32> to vector<24x128xf32>
    %160 = vector.extract_strided_slice %155 {offsets = [96, 0], sizes = [24, 128], strides = [1, 1]} : vector<120x128xf32> to vector<24x128xf32>
    %161 = tpu.concatenate %156, %157, %158, %159, %160 in 1 : vector<24x128xf32>, vector<24x128xf32>, vector<24x128xf32>, vector<24x128xf32>, vector<24x128xf32> -> vector<24x640xf32>
    %cst_60 = arith.constant dense<0.000000e+00> : vector<24x640xf32>
    %162 = tpu.matmul %149, %161, %cst_60 {dimension_numbers = #tpu.dot_dimension_numbers<[1], [0], [0], [1], [0, 0, 1, 1], [], []>} : vector<24x24xf32>, vector<24x640xf32>, vector<24x640xf32> -> vector<24x640xf32>
    %163 = vector.extract_strided_slice %162 {offsets = [0, 0], sizes = [24, 128], strides = [1, 1]} : vector<24x640xf32> to vector<24x128xf32>
    %164 = vector.extract_strided_slice %162 {offsets = [0, 128], sizes = [24, 128], strides = [1, 1]} : vector<24x640xf32> to vector<24x128xf32>
    %165 = vector.extract_strided_slice %162 {offsets = [0, 256], sizes = [24, 128], strides = [1, 1]} : vector<24x640xf32> to vector<24x128xf32>
    %166 = vector.extract_strided_slice %162 {offsets = [0, 384], sizes = [24, 128], strides = [1, 1]} : vector<24x640xf32> to vector<24x128xf32>
    %167 = vector.extract_strided_slice %162 {offsets = [0, 512], sizes = [24, 128], strides = [1, 1]} : vector<24x640xf32> to vector<24x128xf32>
    %168 = arith.mulf %163, %163 : vector<24x128xf32>
    %169 = arith.mulf %164, %164 : vector<24x128xf32>
    %170 = arith.mulf %163, %164 : vector<24x128xf32>
    %171 = arith.subf %165, %168 : vector<24x128xf32>
    %172 = arith.subf %166, %169 : vector<24x128xf32>
    %173 = arith.subf %167, %170 : vector<24x128xf32>
    %cst_61 = arith.constant 2.000000e+00 : f32
    %174 = vector.broadcast %cst_61 : f32 to vector<24x128xf32>
    %175 = arith.mulf %174, %173 : vector<24x128xf32>
    %176 = vector.broadcast %1 : f32 to vector<24x128xf32>
    %177 = arith.addf %175, %176 : vector<24x128xf32>
    %178 = arith.addf %171, %172 : vector<24x128xf32>
    %179 = vector.broadcast %1 : f32 to vector<24x128xf32>
    %180 = arith.addf %178, %179 : vector<24x128xf32>
    %181 = tpu.reciprocal %180 {approx = true} : vector<24x128xf32> -> vector<24x128xf32>
    %182 = arith.mulf %180, %181 : vector<24x128xf32>
    %cst_62 = arith.constant 2.000000e+00 : f32
    %183 = vector.broadcast %cst_62 : f32 to vector<24x128xf32>
    %184 = arith.subf %183, %182 : vector<24x128xf32>
    %185 = arith.mulf %181, %184 : vector<24x128xf32>
    %186 = arith.mulf %177, %185 : vector<24x128xf32>
    %187 = vector.broadcast %150 : vector<1x128xf32> to vector<24x128xf32>
    %188 = arith.mulf %186, %187 : vector<24x128xf32>
    %cst_63 = arith.constant 2.000000e+00 : f32
    %189 = vector.broadcast %cst_63 : f32 to vector<24x128xf32>
    %190 = arith.mulf %189, %170 : vector<24x128xf32>
    %191 = vector.broadcast %0 : f32 to vector<24x128xf32>
    %192 = arith.addf %190, %191 : vector<24x128xf32>
    %193 = arith.addf %168, %169 : vector<24x128xf32>
    %194 = vector.broadcast %0 : f32 to vector<24x128xf32>
    %195 = arith.addf %193, %194 : vector<24x128xf32>
    %196 = tpu.reciprocal %195 {approx = true} : vector<24x128xf32> -> vector<24x128xf32>
    %197 = arith.mulf %195, %196 : vector<24x128xf32>
    %cst_64 = arith.constant 2.000000e+00 : f32
    %198 = vector.broadcast %cst_64 : f32 to vector<24x128xf32>
    %199 = arith.subf %198, %197 : vector<24x128xf32>
    %200 = arith.mulf %196, %199 : vector<24x128xf32>
    %201 = arith.mulf %192, %200 : vector<24x128xf32>
    %202 = arith.mulf %201, %188 : vector<24x128xf32>
    %203 = vector.shape_cast %202 : vector<24x128xf32> to vector<1x24x128xf32>
    %cst_65 = arith.constant dense<0.000000e+00> : vector<1xf32>
    %204 = vector.multi_reduction <add>, %203, %cst_65 [1, 2] : vector<1x24x128xf32> to vector<1xf32>
    %205 = vector.shape_cast %204 : vector<1xf32> to vector<1x1x1xf32>
    %206 = vector.extract %205[0, 0, 0] : f32 from vector<1x1x1xf32>
    %cst_66 = arith.constant 0.00173611112 : f32
    %207 = arith.mulf %206, %cst_66 : f32
    %208 = vector.shape_cast %188 : vector<24x128xf32> to vector<1x24x128xf32>
    %cst_67 = arith.constant dense<0.000000e+00> : vector<1xf32>
    %209 = vector.multi_reduction <add>, %208, %cst_67 [1, 2] : vector<1x24x128xf32> to vector<1xf32>
    %210 = vector.shape_cast %209 : vector<1xf32> to vector<1x1x1xf32>
    %211 = vector.extract %210[0, 0, 0] : f32 from vector<1x1x1xf32>
    %cst_68 = arith.constant 0.00173611112 : f32
    %212 = arith.mulf %211, %cst_68 : f32
    %c0_69 = arith.constant 0 : index
    %c0_70 = arith.constant 0 : index
    %213 = vector.load %arg21[%c0_69, %c0_70] : memref<24x12xf32, #tpu.memory_space<vmem>>, vector<24x12xf32>
    %c0_71 = arith.constant 0 : index
    %c0_72 = arith.constant 0 : index
    %214 = vector.load %arg25[%c0_71, %c0_72] : memref<12x24xf32, #tpu.memory_space<vmem>>, vector<12x24xf32>
    %cst_73 = arith.constant dense<0.000000e+00> : vector<24x12xf32>
    %215 = tpu.matmul %145, %213, %cst_73 {dimension_numbers = #tpu.dot_dimension_numbers<[1], [0], [0], [1], [0, 0, 1, 1], [], []>} : vector<24x24xf32>, vector<24x12xf32>, vector<24x12xf32> -> vector<24x12xf32>
    %cst_74 = arith.constant dense<0.000000e+00> : vector<12x12xf32>
    %216 = tpu.matmul %214, %215, %cst_74 {dimension_numbers = #tpu.dot_dimension_numbers<[1], [0], [0], [1], [0, 0, 1, 1], [], []>} : vector<12x24xf32>, vector<24x12xf32>, vector<12x12xf32> -> vector<12x12xf32>
    %cst_75 = arith.constant dense<0.000000e+00> : vector<24x12xf32>
    %217 = tpu.matmul %147, %213, %cst_75 {dimension_numbers = #tpu.dot_dimension_numbers<[1], [0], [0], [1], [0, 0, 1, 1], [], []>} : vector<24x24xf32>, vector<24x12xf32>, vector<24x12xf32> -> vector<24x12xf32>
    %cst_76 = arith.constant dense<0.000000e+00> : vector<12x12xf32>
    %218 = tpu.matmul %214, %217, %cst_76 {dimension_numbers = #tpu.dot_dimension_numbers<[1], [0], [0], [1], [0, 0, 1, 1], [], []>} : vector<12x24xf32>, vector<24x12xf32>, vector<12x12xf32> -> vector<12x12xf32>
    %c0_77 = arith.constant 0 : index
    %c0_78 = arith.constant 0 : index
    %219 = vector.load %arg7[%c0_77, %c0_78] : memref<12x128xf32, #tpu.memory_space<vmem>>, vector<12x128xf32>
    %c0_79 = arith.constant 0 : index
    %c0_80 = arith.constant 0 : index
    %220 = vector.load %arg12[%c0_79, %c0_80] : memref<12x12xf32, #tpu.memory_space<vmem>>, vector<12x12xf32>
    %c0_81 = arith.constant 0 : index
    %c0_82 = arith.constant 0 : index
    %221 = vector.load %arg17[%c0_81, %c0_82] : memref<1x128xf32, #tpu.memory_space<vmem>>, vector<1x128xf32>
    %222 = arith.mulf %216, %216 : vector<12x12xf32>
    %223 = arith.mulf %218, %218 : vector<12x12xf32>
    %224 = arith.mulf %216, %218 : vector<12x12xf32>
    %225 = tpu.concatenate %216, %218, %222, %223, %224 in 0 : vector<12x12xf32>, vector<12x12xf32>, vector<12x12xf32>, vector<12x12xf32>, vector<12x12xf32> -> vector<60x12xf32>
    %cst_83 = arith.constant dense<0.000000e+00> : vector<60x128xf32>
    %226 = tpu.matmul %225, %219, %cst_83 {dimension_numbers = #tpu.dot_dimension_numbers<[1], [0], [0], [1], [0, 0, 1, 1], [], []>} : vector<60x12xf32>, vector<12x128xf32>, vector<60x128xf32> -> vector<60x128xf32>
    %227 = vector.extract_strided_slice %226 {offsets = [0, 0], sizes = [12, 128], strides = [1, 1]} : vector<60x128xf32> to vector<12x128xf32>
    %228 = vector.extract_strided_slice %226 {offsets = [12, 0], sizes = [12, 128], strides = [1, 1]} : vector<60x128xf32> to vector<12x128xf32>
    %229 = vector.extract_strided_slice %226 {offsets = [24, 0], sizes = [12, 128], strides = [1, 1]} : vector<60x128xf32> to vector<12x128xf32>
    %230 = vector.extract_strided_slice %226 {offsets = [36, 0], sizes = [12, 128], strides = [1, 1]} : vector<60x128xf32> to vector<12x128xf32>
    %231 = vector.extract_strided_slice %226 {offsets = [48, 0], sizes = [12, 128], strides = [1, 1]} : vector<60x128xf32> to vector<12x128xf32>
    %232 = tpu.concatenate %227, %228, %229, %230, %231 in 1 : vector<12x128xf32>, vector<12x128xf32>, vector<12x128xf32>, vector<12x128xf32>, vector<12x128xf32> -> vector<12x640xf32>
    %cst_84 = arith.constant dense<0.000000e+00> : vector<12x640xf32>
    %233 = tpu.matmul %220, %232, %cst_84 {dimension_numbers = #tpu.dot_dimension_numbers<[1], [0], [0], [1], [0, 0, 1, 1], [], []>} : vector<12x12xf32>, vector<12x640xf32>, vector<12x640xf32> -> vector<12x640xf32>
    %234 = vector.extract_strided_slice %233 {offsets = [0, 0], sizes = [12, 128], strides = [1, 1]} : vector<12x640xf32> to vector<12x128xf32>
    %235 = vector.extract_strided_slice %233 {offsets = [0, 128], sizes = [12, 128], strides = [1, 1]} : vector<12x640xf32> to vector<12x128xf32>
    %236 = vector.extract_strided_slice %233 {offsets = [0, 256], sizes = [12, 128], strides = [1, 1]} : vector<12x640xf32> to vector<12x128xf32>
    %237 = vector.extract_strided_slice %233 {offsets = [0, 384], sizes = [12, 128], strides = [1, 1]} : vector<12x640xf32> to vector<12x128xf32>
    %238 = vector.extract_strided_slice %233 {offsets = [0, 512], sizes = [12, 128], strides = [1, 1]} : vector<12x640xf32> to vector<12x128xf32>
    %239 = arith.mulf %234, %234 : vector<12x128xf32>
    %240 = arith.mulf %235, %235 : vector<12x128xf32>
    %241 = arith.mulf %234, %235 : vector<12x128xf32>
    %242 = arith.subf %236, %239 : vector<12x128xf32>
    %243 = arith.subf %237, %240 : vector<12x128xf32>
    %244 = arith.subf %238, %241 : vector<12x128xf32>
    %cst_85 = arith.constant 2.000000e+00 : f32
    %245 = vector.broadcast %cst_85 : f32 to vector<12x128xf32>
    %246 = arith.mulf %245, %244 : vector<12x128xf32>
    %247 = vector.broadcast %1 : f32 to vector<12x128xf32>
    %248 = arith.addf %246, %247 : vector<12x128xf32>
    %249 = arith.addf %242, %243 : vector<12x128xf32>
    %250 = vector.broadcast %1 : f32 to vector<12x128xf32>
    %251 = arith.addf %249, %250 : vector<12x128xf32>
    %252 = tpu.reciprocal %251 {approx = true} : vector<12x128xf32> -> vector<12x128xf32>
    %253 = arith.mulf %251, %252 : vector<12x128xf32>
    %cst_86 = arith.constant 2.000000e+00 : f32
    %254 = vector.broadcast %cst_86 : f32 to vector<12x128xf32>
    %255 = arith.subf %254, %253 : vector<12x128xf32>
    %256 = arith.mulf %252, %255 : vector<12x128xf32>
    %257 = arith.mulf %248, %256 : vector<12x128xf32>
    %258 = vector.broadcast %221 : vector<1x128xf32> to vector<12x128xf32>
    %259 = arith.mulf %257, %258 : vector<12x128xf32>
    %cst_87 = arith.constant 2.000000e+00 : f32
    %260 = vector.broadcast %cst_87 : f32 to vector<12x128xf32>
    %261 = arith.mulf %260, %241 : vector<12x128xf32>
    %262 = vector.broadcast %0 : f32 to vector<12x128xf32>
    %263 = arith.addf %261, %262 : vector<12x128xf32>
    %264 = arith.addf %239, %240 : vector<12x128xf32>
    %265 = vector.broadcast %0 : f32 to vector<12x128xf32>
    %266 = arith.addf %264, %265 : vector<12x128xf32>
    %267 = tpu.reciprocal %266 {approx = true} : vector<12x128xf32> -> vector<12x128xf32>
    %268 = arith.mulf %266, %267 : vector<12x128xf32>
    %cst_88 = arith.constant 2.000000e+00 : f32
    %269 = vector.broadcast %cst_88 : f32 to vector<12x128xf32>
    %270 = arith.subf %269, %268 : vector<12x128xf32>
    %271 = arith.mulf %267, %270 : vector<12x128xf32>
    %272 = arith.mulf %263, %271 : vector<12x128xf32>
    %273 = arith.mulf %272, %259 : vector<12x128xf32>
    %274 = vector.shape_cast %273 : vector<12x128xf32> to vector<1x12x128xf32>
    %cst_89 = arith.constant dense<0.000000e+00> : vector<1xf32>
    %275 = vector.multi_reduction <add>, %274, %cst_89 [1, 2] : vector<1x12x128xf32> to vector<1xf32>
    %276 = vector.shape_cast %275 : vector<1xf32> to vector<1x1x1xf32>
    %277 = vector.extract %276[0, 0, 0] : f32 from vector<1x1x1xf32>
    %cst_90 = arith.constant 0.0069444445 : f32
    %278 = arith.mulf %277, %cst_90 : f32
    %279 = vector.shape_cast %259 : vector<12x128xf32> to vector<1x12x128xf32>
    %cst_91 = arith.constant dense<0.000000e+00> : vector<1xf32>
    %280 = vector.multi_reduction <add>, %279, %cst_91 [1, 2] : vector<1x12x128xf32> to vector<1xf32>
    %281 = vector.shape_cast %280 : vector<1xf32> to vector<1x1x1xf32>
    %282 = vector.extract %281[0, 0, 0] : f32 from vector<1x1x1xf32>
    %cst_92 = arith.constant 0.0069444445 : f32
    %283 = arith.mulf %282, %cst_92 : f32
    %c0_93 = arith.constant 0 : index
    %c0_94 = arith.constant 0 : index
    %284 = vector.load %arg22[%c0_93, %c0_94] : memref<12x6xf32, #tpu.memory_space<vmem>>, vector<12x6xf32>
    %c0_95 = arith.constant 0 : index
    %c0_96 = arith.constant 0 : index
    %285 = vector.load %arg26[%c0_95, %c0_96] : memref<6x12xf32, #tpu.memory_space<vmem>>, vector<6x12xf32>
    %cst_97 = arith.constant dense<0.000000e+00> : vector<12x6xf32>
    %286 = tpu.matmul %216, %284, %cst_97 {dimension_numbers = #tpu.dot_dimension_numbers<[1], [0], [0], [1], [0, 0, 1, 1], [], []>} : vector<12x12xf32>, vector<12x6xf32>, vector<12x6xf32> -> vector<12x6xf32>
    %cst_98 = arith.constant dense<0.000000e+00> : vector<6x6xf32>
    %287 = tpu.matmul %285, %286, %cst_98 {dimension_numbers = #tpu.dot_dimension_numbers<[1], [0], [0], [1], [0, 0, 1, 1], [], []>} : vector<6x12xf32>, vector<12x6xf32>, vector<6x6xf32> -> vector<6x6xf32>
    %cst_99 = arith.constant dense<0.000000e+00> : vector<12x6xf32>
    %288 = tpu.matmul %218, %284, %cst_99 {dimension_numbers = #tpu.dot_dimension_numbers<[1], [0], [0], [1], [0, 0, 1, 1], [], []>} : vector<12x12xf32>, vector<12x6xf32>, vector<12x6xf32> -> vector<12x6xf32>
    %cst_100 = arith.constant dense<0.000000e+00> : vector<6x6xf32>
    %289 = tpu.matmul %285, %288, %cst_100 {dimension_numbers = #tpu.dot_dimension_numbers<[1], [0], [0], [1], [0, 0, 1, 1], [], []>} : vector<6x12xf32>, vector<12x6xf32>, vector<6x6xf32> -> vector<6x6xf32>
    %c0_101 = arith.constant 0 : index
    %c0_102 = arith.constant 0 : index
    %290 = vector.load %arg8[%c0_101, %c0_102] : memref<6x128xf32, #tpu.memory_space<vmem>>, vector<6x128xf32>
    %c0_103 = arith.constant 0 : index
    %c0_104 = arith.constant 0 : index
    %291 = vector.load %arg13[%c0_103, %c0_104] : memref<11x6xf32, #tpu.memory_space<vmem>>, vector<11x6xf32>
    %c0_105 = arith.constant 0 : index
    %c0_106 = arith.constant 0 : index
    %292 = vector.load %arg18[%c0_105, %c0_106] : memref<1x128xf32, #tpu.memory_space<vmem>>, vector<1x128xf32>
    %293 = arith.mulf %287, %287 : vector<6x6xf32>
    %294 = arith.mulf %289, %289 : vector<6x6xf32>
    %295 = arith.mulf %287, %289 : vector<6x6xf32>
    %296 = tpu.concatenate %287, %289, %293, %294, %295 in 0 : vector<6x6xf32>, vector<6x6xf32>, vector<6x6xf32>, vector<6x6xf32>, vector<6x6xf32> -> vector<30x6xf32>
    %cst_107 = arith.constant dense<0.000000e+00> : vector<30x128xf32>
    %297 = tpu.matmul %296, %290, %cst_107 {dimension_numbers = #tpu.dot_dimension_numbers<[1], [0], [0], [1], [0, 0, 1, 1], [], []>} : vector<30x6xf32>, vector<6x128xf32>, vector<30x128xf32> -> vector<30x128xf32>
    %298 = vector.extract_strided_slice %297 {offsets = [0, 0], sizes = [6, 128], strides = [1, 1]} : vector<30x128xf32> to vector<6x128xf32>
    %299 = vector.extract_strided_slice %297 {offsets = [6, 0], sizes = [6, 128], strides = [1, 1]} : vector<30x128xf32> to vector<6x128xf32>
    %300 = vector.extract_strided_slice %297 {offsets = [12, 0], sizes = [6, 128], strides = [1, 1]} : vector<30x128xf32> to vector<6x128xf32>
    %301 = vector.extract_strided_slice %297 {offsets = [18, 0], sizes = [6, 128], strides = [1, 1]} : vector<30x128xf32> to vector<6x128xf32>
    %302 = vector.extract_strided_slice %297 {offsets = [24, 0], sizes = [6, 128], strides = [1, 1]} : vector<30x128xf32> to vector<6x128xf32>
    %303 = tpu.concatenate %298, %299, %300, %301, %302 in 1 : vector<6x128xf32>, vector<6x128xf32>, vector<6x128xf32>, vector<6x128xf32>, vector<6x128xf32> -> vector<6x640xf32>
    %cst_108 = arith.constant dense<0.000000e+00> : vector<11x640xf32>
    %304 = tpu.matmul %291, %303, %cst_108 {dimension_numbers = #tpu.dot_dimension_numbers<[1], [0], [0], [1], [0, 0, 1, 1], [], []>} : vector<11x6xf32>, vector<6x640xf32>, vector<11x640xf32> -> vector<11x640xf32>
    %305 = vector.extract_strided_slice %304 {offsets = [0, 0], sizes = [11, 128], strides = [1, 1]} : vector<11x640xf32> to vector<11x128xf32>
    %306 = vector.extract_strided_slice %304 {offsets = [0, 128], sizes = [11, 128], strides = [1, 1]} : vector<11x640xf32> to vector<11x128xf32>
    %307 = vector.extract_strided_slice %304 {offsets = [0, 256], sizes = [11, 128], strides = [1, 1]} : vector<11x640xf32> to vector<11x128xf32>
    %308 = vector.extract_strided_slice %304 {offsets = [0, 384], sizes = [11, 128], strides = [1, 1]} : vector<11x640xf32> to vector<11x128xf32>
    %309 = vector.extract_strided_slice %304 {offsets = [0, 512], sizes = [11, 128], strides = [1, 1]} : vector<11x640xf32> to vector<11x128xf32>
    %310 = arith.mulf %305, %305 : vector<11x128xf32>
    %311 = arith.mulf %306, %306 : vector<11x128xf32>
    %312 = arith.mulf %305, %306 : vector<11x128xf32>
    %313 = arith.subf %307, %310 : vector<11x128xf32>
    %314 = arith.subf %308, %311 : vector<11x128xf32>
    %315 = arith.subf %309, %312 : vector<11x128xf32>
    %cst_109 = arith.constant 2.000000e+00 : f32
    %316 = vector.broadcast %cst_109 : f32 to vector<11x128xf32>
    %317 = arith.mulf %316, %315 : vector<11x128xf32>
    %318 = vector.broadcast %1 : f32 to vector<11x128xf32>
    %319 = arith.addf %317, %318 : vector<11x128xf32>
    %320 = arith.addf %313, %314 : vector<11x128xf32>
    %321 = vector.broadcast %1 : f32 to vector<11x128xf32>
    %322 = arith.addf %320, %321 : vector<11x128xf32>
    %323 = tpu.reciprocal %322 {approx = true} : vector<11x128xf32> -> vector<11x128xf32>
    %324 = arith.mulf %322, %323 : vector<11x128xf32>
    %cst_110 = arith.constant 2.000000e+00 : f32
    %325 = vector.broadcast %cst_110 : f32 to vector<11x128xf32>
    %326 = arith.subf %325, %324 : vector<11x128xf32>
    %327 = arith.mulf %323, %326 : vector<11x128xf32>
    %328 = arith.mulf %319, %327 : vector<11x128xf32>
    %329 = vector.broadcast %292 : vector<1x128xf32> to vector<11x128xf32>
    %330 = arith.mulf %328, %329 : vector<11x128xf32>
    %cst_111 = arith.constant 2.000000e+00 : f32
    %331 = vector.broadcast %cst_111 : f32 to vector<11x128xf32>
    %332 = arith.mulf %331, %312 : vector<11x128xf32>
    %333 = vector.broadcast %0 : f32 to vector<11x128xf32>
    %334 = arith.addf %332, %333 : vector<11x128xf32>
    %335 = arith.addf %310, %311 : vector<11x128xf32>
    %336 = vector.broadcast %0 : f32 to vector<11x128xf32>
    %337 = arith.addf %335, %336 : vector<11x128xf32>
    %338 = tpu.reciprocal %337 {approx = true} : vector<11x128xf32> -> vector<11x128xf32>
    %339 = arith.mulf %337, %338 : vector<11x128xf32>
    %cst_112 = arith.constant 2.000000e+00 : f32
    %340 = vector.broadcast %cst_112 : f32 to vector<11x128xf32>
    %341 = arith.subf %340, %339 : vector<11x128xf32>
    %342 = arith.mulf %338, %341 : vector<11x128xf32>
    %343 = arith.mulf %334, %342 : vector<11x128xf32>
    %344 = arith.mulf %343, %330 : vector<11x128xf32>
    %345 = vector.shape_cast %344 : vector<11x128xf32> to vector<1x11x128xf32>
    %cst_113 = arith.constant dense<0.000000e+00> : vector<1xf32>
    %346 = vector.multi_reduction <add>, %345, %cst_113 [1, 2] : vector<1x11x128xf32> to vector<1xf32>
    %347 = vector.shape_cast %346 : vector<1xf32> to vector<1x1x1xf32>
    %348 = vector.extract %347[0, 0, 0] : f32 from vector<1x1x1xf32>
    %cst_114 = arith.constant 0.00826446246 : f32
    %349 = arith.mulf %348, %cst_114 : f32
    %350 = vector.shape_cast %330 : vector<11x128xf32> to vector<1x11x128xf32>
    %cst_115 = arith.constant dense<0.000000e+00> : vector<1xf32>
    %351 = vector.multi_reduction <add>, %350, %cst_115 [1, 2] : vector<1x11x128xf32> to vector<1xf32>
    %352 = vector.shape_cast %351 : vector<1xf32> to vector<1x1x1xf32>
    %353 = vector.extract %352[0, 0, 0] : f32 from vector<1x1x1xf32>
    %cst_116 = arith.constant 0.00826446246 : f32
    %354 = arith.mulf %353, %cst_116 : f32
    %355 = tpu.iota {dimensions = array<i32: 0>} : vector<8x128xi32>
    %356 = tpu.iota {dimensions = array<i32: 1>} : vector<8x128xi32>
    %cst_117 = arith.constant 0.000000e+00 : f32
    %357 = vector.broadcast %cst_117 : f32 to vector<8x128xf32>
    %c0_i32 = arith.constant 0 : i32
    %358 = vector.broadcast %c0_i32 : i32 to vector<8x128xi32>
    %359 = arith.cmpi eq, %355, %358 : vector<8x128xi32>
    %c0_i32_118 = arith.constant 0 : i32
    %360 = vector.broadcast %c0_i32_118 : i32 to vector<8x128xi32>
    %361 = arith.cmpi eq, %356, %360 : vector<8x128xi32>
    %362 = arith.andi %359, %361 : vector<8x128xi1>
    %363 = vector.broadcast %65 : f32 to vector<8x128xf32>
    %364 = arith.select %362, %363, %357 : vector<8x128xi1>, vector<8x128xf32>
    %c1_i32 = arith.constant 1 : i32
    %365 = vector.broadcast %c1_i32 : i32 to vector<8x128xi32>
    %366 = arith.cmpi eq, %355, %365 : vector<8x128xi32>
    %c0_i32_119 = arith.constant 0 : i32
    %367 = vector.broadcast %c0_i32_119 : i32 to vector<8x128xi32>
    %368 = arith.cmpi eq, %356, %367 : vector<8x128xi32>
    %369 = arith.andi %366, %368 : vector<8x128xi1>
    %370 = vector.broadcast %70 : f32 to vector<8x128xf32>
    %371 = arith.select %369, %370, %364 : vector<8x128xi1>, vector<8x128xf32>
    %c0_i32_120 = arith.constant 0 : i32
    %372 = vector.broadcast %c0_i32_120 : i32 to vector<8x128xi32>
    %373 = arith.cmpi eq, %355, %372 : vector<8x128xi32>
    %c1_i32_121 = arith.constant 1 : i32
    %374 = vector.broadcast %c1_i32_121 : i32 to vector<8x128xi32>
    %375 = arith.cmpi eq, %356, %374 : vector<8x128xi32>
    %376 = arith.andi %373, %375 : vector<8x128xi1>
    %377 = vector.broadcast %136 : f32 to vector<8x128xf32>
    %378 = arith.select %376, %377, %371 : vector<8x128xi1>, vector<8x128xf32>
    %c1_i32_122 = arith.constant 1 : i32
    %379 = vector.broadcast %c1_i32_122 : i32 to vector<8x128xi32>
    %380 = arith.cmpi eq, %355, %379 : vector<8x128xi32>
    %c1_i32_123 = arith.constant 1 : i32
    %381 = vector.broadcast %c1_i32_123 : i32 to vector<8x128xi32>
    %382 = arith.cmpi eq, %356, %381 : vector<8x128xi32>
    %383 = arith.andi %380, %382 : vector<8x128xi1>
    %384 = vector.broadcast %141 : f32 to vector<8x128xf32>
    %385 = arith.select %383, %384, %378 : vector<8x128xi1>, vector<8x128xf32>
    %c0_i32_124 = arith.constant 0 : i32
    %386 = vector.broadcast %c0_i32_124 : i32 to vector<8x128xi32>
    %387 = arith.cmpi eq, %355, %386 : vector<8x128xi32>
    %c2_i32 = arith.constant 2 : i32
    %388 = vector.broadcast %c2_i32 : i32 to vector<8x128xi32>
    %389 = arith.cmpi eq, %356, %388 : vector<8x128xi32>
    %390 = arith.andi %387, %389 : vector<8x128xi1>
    %391 = vector.broadcast %207 : f32 to vector<8x128xf32>
    %392 = arith.select %390, %391, %385 : vector<8x128xi1>, vector<8x128xf32>
    %c1_i32_125 = arith.constant 1 : i32
    %393 = vector.broadcast %c1_i32_125 : i32 to vector<8x128xi32>
    %394 = arith.cmpi eq, %355, %393 : vector<8x128xi32>
    %c2_i32_126 = arith.constant 2 : i32
    %395 = vector.broadcast %c2_i32_126 : i32 to vector<8x128xi32>
    %396 = arith.cmpi eq, %356, %395 : vector<8x128xi32>
    %397 = arith.andi %394, %396 : vector<8x128xi1>
    %398 = vector.broadcast %212 : f32 to vector<8x128xf32>
    %399 = arith.select %397, %398, %392 : vector<8x128xi1>, vector<8x128xf32>
    %c0_i32_127 = arith.constant 0 : i32
    %400 = vector.broadcast %c0_i32_127 : i32 to vector<8x128xi32>
    %401 = arith.cmpi eq, %355, %400 : vector<8x128xi32>
    %c3_i32 = arith.constant 3 : i32
    %402 = vector.broadcast %c3_i32 : i32 to vector<8x128xi32>
    %403 = arith.cmpi eq, %356, %402 : vector<8x128xi32>
    %404 = arith.andi %401, %403 : vector<8x128xi1>
    %405 = vector.broadcast %278 : f32 to vector<8x128xf32>
    %406 = arith.select %404, %405, %399 : vector<8x128xi1>, vector<8x128xf32>
    %c1_i32_128 = arith.constant 1 : i32
    %407 = vector.broadcast %c1_i32_128 : i32 to vector<8x128xi32>
    %408 = arith.cmpi eq, %355, %407 : vector<8x128xi32>
    %c3_i32_129 = arith.constant 3 : i32
    %409 = vector.broadcast %c3_i32_129 : i32 to vector<8x128xi32>
    %410 = arith.cmpi eq, %356, %409 : vector<8x128xi32>
    %411 = arith.andi %408, %410 : vector<8x128xi1>
    %412 = vector.broadcast %283 : f32 to vector<8x128xf32>
    %413 = arith.select %411, %412, %406 : vector<8x128xi1>, vector<8x128xf32>
    %c0_i32_130 = arith.constant 0 : i32
    %414 = vector.broadcast %c0_i32_130 : i32 to vector<8x128xi32>
    %415 = arith.cmpi eq, %355, %414 : vector<8x128xi32>
    %c4_i32 = arith.constant 4 : i32
    %416 = vector.broadcast %c4_i32 : i32 to vector<8x128xi32>
    %417 = arith.cmpi eq, %356, %416 : vector<8x128xi32>
    %418 = arith.andi %415, %417 : vector<8x128xi1>
    %419 = vector.broadcast %349 : f32 to vector<8x128xf32>
    %420 = arith.select %418, %419, %413 : vector<8x128xi1>, vector<8x128xf32>
    %c1_i32_131 = arith.constant 1 : i32
    %421 = vector.broadcast %c1_i32_131 : i32 to vector<8x128xi32>
    %422 = arith.cmpi eq, %355, %421 : vector<8x128xi32>
    %c4_i32_132 = arith.constant 4 : i32
    %423 = vector.broadcast %c4_i32_132 : i32 to vector<8x128xi32>
    %424 = arith.cmpi eq, %356, %423 : vector<8x128xi32>
    %425 = arith.andi %422, %424 : vector<8x128xi1>
    %426 = vector.broadcast %354 : f32 to vector<8x128xf32>
    %427 = arith.select %425, %426, %420 : vector<8x128xi1>, vector<8x128xf32>
    %c0_133 = arith.constant 0 : index
    %c0_134 = arith.constant 0 : index
    %c0_135 = arith.constant 0 : index
    %428 = vector.load %arg27[%c0_133, %c0_134, %c0_135] : memref<1x8x128xf32, #tpu.memory_space<vmem>>, vector<1x8x128xf32>
    %429 = vector.shape_cast %428 : vector<1x8x128xf32> to vector<8x128xf32>
    %430 = vector.shape_cast %427 : vector<8x128xf32> to vector<1x8x128xf32>
    tpu.vector_store %arg27[%c0_133, %c0_134, %c0_135], %430 {strides = array<i32>} : memref<1x8x128xf32, #tpu.memory_space<vmem>>, vector<1x8x128xf32>,
    return
  }
  func.func @transform_0(%arg0: i32) -> i32 {
    %c0_i32 = arith.constant 0 : i32
    %c0_i32_0 = arith.constant 0 : i32
    return %c0_i32 : i32
  }
  func.func @transform_1(%arg0: i32) -> (i32, i32, i32) {
    %c0_i32 = arith.constant 0 : i32
    %c0_i32_0 = arith.constant 0 : i32
    %c0_i32_1 = arith.constant 0 : i32
    return %arg0, %c0_i32, %c0_i32_0 : i32, i32, i32
  }
  func.func @transform_2(%arg0: i32) -> (i32, i32, i32) {
    %c0_i32 = arith.constant 0 : i32
    %c0_i32_0 = arith.constant 0 : i32
    %c0_i32_1 = arith.constant 0 : i32
    return %arg0, %c0_i32, %c0_i32_0 : i32, i32, i32
  }
  func.func @transform_3(%arg0: i32) -> (i32, i32) {
    %c0_i32 = arith.constant 0 : i32
    %c0_i32_0 = arith.constant 0 : i32
    %c0_i32_1 = arith.constant 0 : i32
    return %c0_i32, %c0_i32_0 : i32, i32
  }
  func.func @transform_4(%arg0: i32) -> (i32, i32) {
    %c0_i32 = arith.constant 0 : i32
    %c0_i32_0 = arith.constant 0 : i32
    %c0_i32_1 = arith.constant 0 : i32
    return %c0_i32, %c0_i32_0 : i32, i32
  }
  func.func @transform_5(%arg0: i32) -> (i32, i32) {
    %c0_i32 = arith.constant 0 : i32
    %c0_i32_0 = arith.constant 0 : i32
    %c0_i32_1 = arith.constant 0 : i32
    return %c0_i32, %c0_i32_0 : i32, i32
  }
  func.func @transform_6(%arg0: i32) -> (i32, i32) {
    %c0_i32 = arith.constant 0 : i32
    %c0_i32_0 = arith.constant 0 : i32
    %c0_i32_1 = arith.constant 0 : i32
    return %c0_i32, %c0_i32_0 : i32, i32
  }
  func.func @transform_7(%arg0: i32) -> (i32, i32) {
    %c0_i32 = arith.constant 0 : i32
    %c0_i32_0 = arith.constant 0 : i32
    %c0_i32_1 = arith.constant 0 : i32
    return %c0_i32, %c0_i32_0 : i32, i32
  }
  func.func @transform_8(%arg0: i32) -> (i32, i32) {
    %c0_i32 = arith.constant 0 : i32
    %c0_i32_0 = arith.constant 0 : i32
    %c0_i32_1 = arith.constant 0 : i32
    return %c0_i32, %c0_i32_0 : i32, i32
  }
  func.func @transform_9(%arg0: i32) -> (i32, i32) {
    %c0_i32 = arith.constant 0 : i32
    %c0_i32_0 = arith.constant 0 : i32
    %c0_i32_1 = arith.constant 0 : i32
    return %c0_i32, %c0_i32_0 : i32, i32
  }
  func.func @transform_10(%arg0: i32) -> (i32, i32) {
    %c0_i32 = arith.constant 0 : i32
    %c0_i32_0 = arith.constant 0 : i32
    %c0_i32_1 = arith.constant 0 : i32
    return %c0_i32, %c0_i32_0 : i32, i32
  }
  func.func @transform_11(%arg0: i32) -> (i32, i32) {
    %c0_i32 = arith.constant 0 : i32
    %c0_i32_0 = arith.constant 0 : i32
    %c0_i32_1 = arith.constant 0 : i32
    return %c0_i32, %c0_i32_0 : i32, i32
  }
  func.func @transform_12(%arg0: i32) -> (i32, i32) {
    %c0_i32 = arith.constant 0 : i32
    %c0_i32_0 = arith.constant 0 : i32
    %c0_i32_1 = arith.constant 0 : i32
    return %c0_i32, %c0_i32_0 : i32, i32
  }
  func.func @transform_13(%arg0: i32) -> (i32, i32) {
    %c0_i32 = arith.constant 0 : i32
    %c0_i32_0 = arith.constant 0 : i32
    %c0_i32_1 = arith.constant 0 : i32
    return %c0_i32, %c0_i32_0 : i32, i32
  }
  func.func @transform_14(%arg0: i32) -> (i32, i32) {
    %c0_i32 = arith.constant 0 : i32
    %c0_i32_0 = arith.constant 0 : i32
    %c0_i32_1 = arith.constant 0 : i32
    return %c0_i32, %c0_i32_0 : i32, i32
  }
  func.func @transform_15(%arg0: i32) -> (i32, i32) {
    %c0_i32 = arith.constant 0 : i32
    %c0_i32_0 = arith.constant 0 : i32
    %c0_i32_1 = arith.constant 0 : i32
    return %c0_i32, %c0_i32_0 : i32, i32
  }
  func.func @transform_16(%arg0: i32) -> (i32, i32) {
    %c0_i32 = arith.constant 0 : i32
    %c0_i32_0 = arith.constant 0 : i32
    %c0_i32_1 = arith.constant 0 : i32
    return %c0_i32, %c0_i32_0 : i32, i32
  }
  func.func @transform_17(%arg0: i32) -> (i32, i32) {
    %c0_i32 = arith.constant 0 : i32
    %c0_i32_0 = arith.constant 0 : i32
    %c0_i32_1 = arith.constant 0 : i32
    return %c0_i32, %c0_i32_0 : i32, i32
  }
  func.func @transform_18(%arg0: i32) -> (i32, i32) {
    %c0_i32 = arith.constant 0 : i32
    %c0_i32_0 = arith.constant 0 : i32
    %c0_i32_1 = arith.constant 0 : i32
    return %c0_i32, %c0_i32_0 : i32, i32
  }
  func.func @transform_19(%arg0: i32) -> (i32, i32) {
    %c0_i32 = arith.constant 0 : i32
    %c0_i32_0 = arith.constant 0 : i32
    %c0_i32_1 = arith.constant 0 : i32
    return %c0_i32, %c0_i32_0 : i32, i32
  }
  func.func @transform_20(%arg0: i32) -> (i32, i32) {
    %c0_i32 = arith.constant 0 : i32
    %c0_i32_0 = arith.constant 0 : i32
    %c0_i32_1 = arith.constant 0 : i32
    return %c0_i32, %c0_i32_0 : i32, i32
  }
  func.func @transform_21(%arg0: i32) -> (i32, i32) {
    %c0_i32 = arith.constant 0 : i32
    %c0_i32_0 = arith.constant 0 : i32
    %c0_i32_1 = arith.constant 0 : i32
    return %c0_i32, %c0_i32_0 : i32, i32
  }
  func.func @transform_22(%arg0: i32) -> (i32, i32) {
    %c0_i32 = arith.constant 0 : i32
    %c0_i32_0 = arith.constant 0 : i32
    %c0_i32_1 = arith.constant 0 : i32
    return %c0_i32, %c0_i32_0 : i32, i32
  }
  func.func @transform_23(%arg0: i32) -> (i32, i32) {
    %c0_i32 = arith.constant 0 : i32
    %c0_i32_0 = arith.constant 0 : i32
    %c0_i32_1 = arith.constant 0 : i32
    return %c0_i32, %c0_i32_0 : i32, i32
  }
  func.func @transform_24(%arg0: i32) -> (i32, i32) {
    %c0_i32 = arith.constant 0 : i32
    %c0_i32_0 = arith.constant 0 : i32
    %c0_i32_1 = arith.constant 0 : i32
    return %c0_i32, %c0_i32_0 : i32, i32
  }
  func.func @transform_25(%arg0: i32) -> (i32, i32) {
    %c0_i32 = arith.constant 0 : i32
    %c0_i32_0 = arith.constant 0 : i32
    %c0_i32_1 = arith.constant 0 : i32
    return %c0_i32, %c0_i32_0 : i32, i32
  }
  func.func @transform_26(%arg0: i32) -> (i32, i32, i32) {
    %c0_i32 = arith.constant 0 : i32
    %c0_i32_0 = arith.constant 0 : i32
    %c0_i32_1 = arith.constant 0 : i32
    return %arg0, %c0_i32, %c0_i32_0 : i32, i32, i32
  }
}

</mosaic_0001>

<bundles_post_ra>
// kernel: a_call__.1
= control target key start
LH: loop header
LB: loop body
LE: loop exit
PB: predicated region body
PF: predicated region fallthrough
CT: control target
= control target key end

     0   :  { %s11295_s0 = inlined_call_operand.vmem [shape: f32[2], index: 0, kind: input, shape index: {}]   ;;  %s11296_s1 = inlined_call_operand.vmem [shape: f32[6,96,96], index: 1, kind: input, shape index: {}]   ;;  %s11297_s2 = inlined_call_operand.hbm [shape: f32[6,96,96], index: 2, kind: input, shape index: {}]   ;;  %s11298_s3 = inlined_call_operand.hbm [shape: f32[96,128], index: 3, kind: input, shape index: {}]   ;;  %s11299_s4 = inlined_call_operand.hbm [shape: f32[48,128], index: 4, kind: input, shape index: {}]   ;;  %s11300_s5 = inlined_call_operand.hbm [shape: f32[24,128], index: 5, kind: input, shape index: {}]   ;;  %s11301_s6 = inlined_call_operand.hbm [shape: f32[12,128], index: 6, kind: input, shape index: {}]   ;;  %s11302_s7 = inlined_call_operand.vmem [shape: f32[6,128], index: 7, kind: input, shape index: {}]   ;;  %s11303_s8 = inlined_call_operand.hbm [shape: f32[96,96], index: 8, kind: input, shape index: {}]   ;;  %s11304_s9 = inlined_call_operand.hbm [shape: f32[48,48], index: 9, kind: input, shape index: {}]   ;;  %s11305_s10 = inlined_call_operand.hbm [shape: f32[24,24], index: 10, kind: input, shape index: {}]   ;;  %s11306_s11 = inlined_call_operand.hbm [shape: f32[12,12], index: 11, kind: input, shape index: {}]   ;;  %s11307_s12 = inlined_call_operand.hbm [shape: f32[11,6], index: 12, kind: input, shape index: {}]   ;;  %s11308_s13 = inlined_call_operand.hbm [shape: f32[1,128], index: 13, kind: input, shape index: {}]   ;;  %s11309_s14 = inlined_call_operand.hbm [shape: f32[1,128], index: 14, kind: input, shape index: {}]   ;;  %s11310_s15 = inlined_call_operand.hbm [shape: f32[1,128], index: 15, kind: input, shape index: {}]   ;;  %s11311_s16 = inlined_call_operand.vmem [shape: f32[1,128], index: 16, kind: input, shape index: {}]   ;;  %s11312_s17 = inlined_call_operand.vmem [shape: f32[1,128], index: 17, kind: input, shape index: {}]   ;;  %s11313_s18 = inlined_call_operand.hbm [shape: f32[96,48], index: 18, kind: input, shape index: {}]   ;;  %s11314_s19 = inlined_call_operand.vmem [shape: f32[48,24], index: 19, kind: input, shape index: {}]   ;;  %s11315_s20 = inlined_call_operand.vmem [shape: f32[24,12], index: 20, kind: input, shape index: {}]   ;;  %s11316_s21 = inlined_call_operand.hbm [shape: f32[12,6], index: 21, kind: input, shape index: {}]   ;;  %s11317_s22 = inlined_call_operand.hbm [shape: f32[48,96], index: 22, kind: input, shape index: {}]   ;;  %s11318_s23 = inlined_call_operand.hbm [shape: f32[24,48], index: 23, kind: input, shape index: {}]   ;;  %s11319_s24 = inlined_call_operand.hbm [shape: f32[12,24], index: 24, kind: input, shape index: {}]   ;;  %s11320_s25 = inlined_call_operand.hbm [shape: f32[6,12], index: 25, kind: input, shape index: {}]   ;;  %s11321_s26 = inlined_call_operand.vmem [shape: f32[6,8,128], index: 26, kind: output, shape index: {}]  }
   0x1   :  { %11344 = sst [smem:[#allocation59_spill]] %s11295_s0 }
   0x2   :  { %11345 = sst [smem:[#allocation60_spill]] %s11296_s1 }
   0x3   :  { %11346 = sst [smem:[#allocation61_spill]] %s11297_s2 }
   0x4   :  { %11347 = sst [smem:[#allocation62_spill]] %s11298_s3 }
   0x5   :  { %11348 = sst [smem:[#allocation63_spill]] %s11299_s4 }
   0x6   :  { %11349 = sst [smem:[#allocation64_spill]] %s11300_s5 }
   0x7   :  { %11350 = sst [smem:[#allocation65_spill]] %s11301_s6 }
   0x8   :  { %11351 = sst [smem:[#allocation66_spill]] %s11302_s7 }
   0x9   :  { %11352 = sst [smem:[#allocation67_spill]] %s11303_s8 }
   0xa   :  { %11353 = sst [smem:[#allocation68_spill]] %s11304_s9 }
   0xb   :  { %11354 = sst [smem:[#allocation69_spill]] %s11305_s10 }
   0xc   :  { %11355 = sst [smem:[#allocation70_spill]] %s11306_s11 }
   0xd   :  { %11356 = sst [smem:[#allocation71_spill]] %s11307_s12 }
   0xe   :  { %11357 = sst [smem:[#allocation72_spill]] %s11311_s16 }
   0xf   :  { %11358 = sst [smem:[#allocation73_spill]] %s11312_s17 }
  0x10   :  { %11359 = sst [smem:[#allocation74_spill]] %s11315_s20 }
  0x11   :  { %11360 = sst [smem:[#allocation75_spill]] %s11321_s26 }
  0x12   :  { %31 = vsyncpa [#allocation4], 0 }
  0x13   :  { %32 = vsyncpa [#allocation3], 0 }
  0x14   :  { %34 = vsyncpa [#allocation3 + $0x1], 0 }
  0x15   :  { %35 = vsyncpa [#allocation7], 0 }
  0x16   :  { %36 = vsyncpa [#allocation10], 0 }
  0x17   :  { %37 = vsyncpa [#allocation13], 0 }
  0x18   :  { %38 = vsyncpa [#allocation16], 0 }
  0x19   :  { %39 = vsyncpa [#allocation19], 0 }
  0x1a   :  { %40 = vsyncpa [#allocation22], 0 }
  0x1b   :  { %41 = vsyncpa [#allocation25], 0 }
  0x1c   :  { %42 = vsyncpa [#allocation28], 0 }
  0x1d   :  { %43 = vsyncpa [#allocation31], 0  ;;  %s9106_s27 = smov 0   ;;  %s9108_s3 = smov 0  }
  0x1e   :  { %s9110_s7 = smov 0   ;;  %s9112_s28 = smov 0  }
  0x1f LB: > { %s8947_s8 = smov [#allocation6]   ;;  %s9127_s29 = sadd.s32 4294967295, %s8945_s28   ;;  %s8945_s28 = sphi %s9112_s28, %s11445_s28   ;;  %s8941_s7 = sphi %s9110_s7, %s11444_s7   ;;  %s8937_s3 = sphi %s9108_s3, %s11443_s3   ;;  %s8933_s27 = sphi %s9106_s27, %s11442_s27  }
  0x20   : > { %s659_s4 = sshll.u32 %s8947_s8, 4  ;;  %p6674_p0 = scmp.ge.s32.totalorder %s8945_s28, 1  ;;  %s660_s4 = int_to_ptr.vmem [resolvable:$true] %s659_s4 }
  0x21   : > { %p11324_p1 = scmp.eq.s32.totalorder %s9127_s29, 0  ;;  %p636_p2 = scmp.lt.s32.totalorder %s8945_s28, 7 }
  0x22   : > { %s8948_s9 = smov [#allocation9]   ;;  %s8949_s5 = smov [#allocation12]  }
  0x23   : > { %p9132_p3 = pnand %p6674_p0, %p636_p2  ;;  %s685_s30 = sshll.u32 %s8948_s9, 4  ;;  %s9144_s30 = int_to_ptr.vmem [resolvable:$true] %s685_s30 }
  0x24   : > { %s714_s10 = sshll.u32 %s8949_s5, 4  ;;  %s8371_s1 = scalar_lea.vmem %s660_s4, 1536  ;;  %s9146_s10 = int_to_ptr.vmem [resolvable:$true] %s714_s10 }
  0x25   : > { %s11361_s0 = scalar_select %p9132_p3, 1, 0 }
  0x26   : > { %p8104_p4 = pneg %p9132_p3  ;;  %p8372_p7 = scmp.ne.s32.totalorder %s660_s4, %s8371_s1 }
  0x27   : > { %p8379_p10 = scmp.lt.s32.totalorder %s660_s4, %s660_s4  ;;  %p8380_p11 = scmp.lt.s32.totalorder %s8371_s1, %s8371_s1 }
  0x28   : > { %p9140_p5 = pnand %p8104_p4, %p11324_p1 }
  0x29   : > { %p8381_p12 = por %p8380_p11, %p8379_p10 }
  0x2a   : > { %p9150_p6 = pneg %p9140_p5 }
  0x2c   : > { %p8374_p8 = pnand %p8372_p7, %p9150_p6 }
  0x2e   : > { %p8375_p9 = pneg %p8374_p8 }
  0x30   : > { %p8382_p13 = pnand %p8381_p12, %p8375_p9 }
  0x32   : > { %8385 = shalt.err (!%p8382_p13)
}
  0x33   : > { %s11326_s8 = smov 128   ;;  %s11327_s9 = smov 8  }
  0x34   : > { %s11364_s17 = sld [smem:[#allocation62_spill]]  ;;  %s8397_s16 = scalar_lea.vmem %s9144_s30, 384 }
  0x35   : > { %p8398_p0 = scmp.ne.s32.totalorder %s9144_s30, %s8397_s16  ;;  %p8405_p7 = scmp.lt.s32.totalorder %s9144_s30, %s9144_s30 }
  0x36   : > { %p8406_p8 = scmp.lt.s32.totalorder %s8397_s16, %s8397_s16 }
  0x37   : > { %p8400_p2 = pnand %p8398_p0, %p9150_p6 }
  0x38   : > { %p8407_p9 = por %p8406_p8, %p8405_p7 }
  0x39   : > { %p8401_p4 = pneg %p8400_p2 }
  0x3a   : > { %8110 = dma.hbm_to_vmem [thread:$0]  (!%p9140_p5), %s11364_s17, 1536, %s660_s4, [#allocation7], %s11326_s8, %s11326_s8, %s11327_s9  }
  0x3b   : > { %p8408_p10 = pnand %p8407_p9, %p8401_p4 }
  0x3d   : > { %8411 = shalt.err (!%p8408_p10)
}
  0x3e   : > { %s11365_s17 = sld [smem:[#allocation64_spill]]  ;;  %s8423_s4 = scalar_lea.vmem %s9146_s10, 1536 }
  0x3f   : > { %p8424_p11 = scmp.ne.s32.totalorder %s9146_s10, %s8423_s4  ;;  %p8431_p0 = scmp.lt.s32.totalorder %s9146_s10, %s9146_s10 }
  0x40   : > { %p8432_p2 = scmp.lt.s32.totalorder %s8423_s4, %s8423_s4 }
  0x41   : > { %p8426_p12 = pnand %p8424_p11, %p9150_p6 }
  0x42   : > { %p8433_p4 = por %p8432_p2, %p8431_p0 }
  0x43   : > { %p8427_p13 = pneg %p8426_p12 }
  0x44   : > { %8116 = dma.hbm_to_vmem [thread:$0]  (!%p9140_p5), %s11365_s17, 384, %s9144_s30, [#allocation10], %s11326_s8, %s11326_s8, %s11327_s9  }
  0x45   : > { %p8434_p7 = pnand %p8433_p4, %p8427_p13 }
  0x47   : > { %8437 = shalt.err (!%p8434_p7)
}
  0x48   : > { %s11366_s30 = sld [smem:[#allocation67_spill]]  ;;  %s8952_s1 = smov [#allocation15]  }
  0x49   : > { %s740_s26 = sshll.u32 %s8952_s1, 4  ;;  %s8953_s17 = smov [#allocation18]   ;;  %s741_s26 = int_to_ptr.vmem [resolvable:$true] %s740_s26 }
  0x4a   : > { %s766_s20 = sshll.u32 %s8953_s17, 4  ;;  %s8449_s4 = scalar_lea.vmem %s741_s26, 384  ;;  %s767_s20 = int_to_ptr.vmem [resolvable:$true] %s766_s20 }
  0x4b   : > { %p8450_p8 = scmp.ne.s32.totalorder %s741_s26, %s8449_s4  ;;  %p8457_p11 = scmp.lt.s32.totalorder %s741_s26, %s741_s26 }
  0x4c   : > { %p8458_p12 = scmp.lt.s32.totalorder %s8449_s4, %s8449_s4 }
  0x4d   : > { %p8452_p9 = pnand %p8450_p8, %p9150_p6 }
  0x4e   : > { %8122 = dma.hbm_to_vmem [thread:$0]  (!%p9140_p5), %s11366_s30, 1536, %s9146_s10, [#allocation13], %s11326_s8, %s11326_s8, %s11327_s9  }
  0x4f   : > { %p8453_p10 = pneg %p8452_p9  ;;  %p8459_p13 = por %p8458_p12, %p8457_p11 }
  0x51   : > { %p8460_p0 = pnand %p8459_p13, %p8453_p10 }
  0x53   : > { %8463 = shalt.err (!%p8460_p0)
}
  0x54   : > { %s11367_s5 = sld [smem:[#allocation69_spill]]  ;;  %s8475_s30 = scalar_lea.vmem %s767_s20, 256 }
  0x55   : > { %p8476_p2 = scmp.ne.s32.totalorder %s767_s20, %s8475_s30  ;;  %p8483_p8 = scmp.lt.s32.totalorder %s767_s20, %s767_s20 }
  0x56   : > { %p8484_p9 = scmp.lt.s32.totalorder %s8475_s30, %s8475_s30 }
  0x57   : > { %p8478_p4 = pnand %p8476_p2, %p9150_p6 }
  0x58   : > { %p8485_p10 = por %p8484_p9, %p8483_p8 }
  0x59   : > { %p8479_p7 = pneg %p8478_p4 }
  0x5a   : > { %8128 = dma.hbm_to_vmem [thread:$0]  (!%p9140_p5), %s11367_s5, 384, %s741_s26, [#allocation16], %s11326_s8, %s11326_s8, %s11327_s9  }
  0x5b   : > { %p8486_p11 = pnand %p8485_p10, %p8479_p7 }
  0x5d   : > { %8489 = shalt.err (!%p8486_p11)
}
  0x5e   : > { %s11368_s12 = sld [smem:[#allocation71_spill]]  ;;  %s8954_s26 = smov [#allocation21]  }
  0x5f   : > { %s791_s4 = sshll.u32 %s8954_s26, 4  ;;  %s8955_s10 = smov [#allocation24]   ;;  %s792_s4 = int_to_ptr.vmem [resolvable:$true] %s791_s4 }
  0x60   : > { %s818_s16 = sshll.u32 %s8955_s10, 4  ;;  %s8501_s5 = scalar_lea.vmem %s792_s4, 16  ;;  %s819_s16 = int_to_ptr.vmem [resolvable:$true] %s818_s16 }
  0x61   : > { %p8502_p12 = scmp.ne.s32.totalorder %s792_s4, %s8501_s5  ;;  %s8508_s30 = scalar_lea.vmem %s792_s4, 32 }
  0x62   : > { %p8509_p2 = scmp.lt.s32.totalorder %s792_s4, %s792_s4  ;;  %p8510_p4 = scmp.lt.s32.totalorder %s8508_s30, %s8501_s5 }
  0x63   : > { %p8504_p13 = pnand %p8502_p12, %p9150_p6 }
  0x64   : > { %8134 = dma.hbm_to_vmem [thread:$0]  (!%p9140_p5), %s11368_s12, 256, %s767_s20, [#allocation19], %s11326_s8, %s11326_s8, %s11327_s9  }
  0x65   : > { %p8505_p0 = pneg %p8504_p13  ;;  %p8511_p7 = por %p8510_p4, %p8509_p2 }
  0x67   : > { %p8512_p8 = pnand %p8511_p7, %p8505_p0 }
  0x69   : > { %8515 = shalt.err (!%p8512_p8)
}
  0x6a   : > { %8140 = dma.hbm_to_vmem [thread:$0]  (!%p9140_p5), %s11309_s14, 16, %s792_s4, [#allocation22]  }
  0x6b   : > { %s8527_s17 = scalar_lea.vmem %s819_s16, 1536  ;;  %p8535_p12 = scmp.lt.s32.totalorder %s819_s16, %s819_s16 }
  0x6c   : > { %p8528_p9 = scmp.ne.s32.totalorder %s819_s16, %s8527_s17  ;;  %p8536_p13 = scmp.lt.s32.totalorder %s8527_s17, %s8527_s17 }
  0x6e   : > { %p8530_p10 = pnand %p8528_p9, %p9150_p6  ;;  %p8537_p1 = por %p8536_p13, %p8535_p12 }
  0x70   : > { %p8531_p11 = pneg %p8530_p10 }
  0x72   : > { %p8538_p3 = pnand %p8537_p1, %p8531_p11 }
  0x74   : > { %8541 = shalt.err (!%p8538_p3)
}
  0x75   : > { %8146 = dma.hbm_to_vmem [thread:$0]  (!%p9140_p5), %s11313_s18, 1536, %s819_s16, [#allocation25], %s11326_s8, %s11326_s8, %s11327_s9  }
  0x76   : > { %s8956_s4 = smov [#allocation27]   ;;  %s8957_s30 = smov [#allocation30]  }
  0x77   : > { %s850_s5 = sshll.u32 %s8956_s4, 4  ;;  %s876_s1 = sshll.u32 %s8957_s30, 4  ;;  %s851_s5 = int_to_ptr.vmem [resolvable:$true] %s850_s5  ;;  %s877_s1 = int_to_ptr.vmem [resolvable:$true] %s876_s1 }
  0x78   : > { %s8553_s20 = scalar_lea.vmem %s851_s5, 768  ;;  %p8561_p2 = scmp.lt.s32.totalorder %s851_s5, %s851_s5 }
  0x79   : > { %p8554_p0 = scmp.ne.s32.totalorder %s851_s5, %s8553_s20  ;;  %p8562_p4 = scmp.lt.s32.totalorder %s8553_s20, %s8553_s20 }
  0x7b   : > { %p8556_p1 = pnand %p8554_p0, %p9150_p6  ;;  %p8563_p7 = por %p8562_p4, %p8561_p2 }
  0x7d   : > { %p8557_p3 = pneg %p8556_p1 }
  0x7f   : > { %p8564_p8 = pnand %p8563_p7, %p8557_p3 }
  0x81   : > { %8567 = shalt.err (!%p8564_p8)
}
  0x82   : > { %8152 = dma.hbm_to_vmem [thread:$0]  (!%p9140_p5), %s11317_s22, 768, %s851_s5, [#allocation28], %s11326_s8, %s11326_s8, %s11327_s9  }
  0x83   : > { %s11369_s4 = sld [smem:[#allocation59_spill]]  ;;  %s8579_s12 = scalar_lea.vmem %s877_s1, 256 }
  0x84   : > { %p8580_p9 = scmp.ne.s32.totalorder %s877_s1, %s8579_s12  ;;  %p8587_p12 = scmp.lt.s32.totalorder %s877_s1, %s877_s1 }
  0x85   : > { %p8588_p13 = scmp.lt.s32.totalorder %s8579_s12, %s8579_s12 }
  0x86   : > { %p8582_p10 = pnand %p8580_p9, %p9150_p6 }
  0x87   : > { %p8589_p0 = por %p8588_p13, %p8587_p12 }
  0x88   : > { %p8583_p11 = pneg %p8582_p10 }
  0x89   : > { %s649_s30 = sshll.u32 %s11369_s4, 4  ;;  %s650_s30 = int_to_ptr.vmem [resolvable:$true] %s649_s30 }
  0x8a   : > { %p8590_p1 = pnand %p8589_p0, %p8583_p11 }
  0x8c   : > { %8593 = shalt.err (!%p8590_p1)
}
  0x8d   : > { %8158 = dma.hbm_to_vmem [thread:$0]  (!%p9140_p5), %s11319_s24, 256, %s877_s1, [#allocation31], %s11326_s8, %s11326_s8, %s11327_s9  }
  0x8e   : > { %s8594_s16 = scalar_lea.vmem %s650_s30, 16  ;;  %p8602_p7 = scmp.lt.s32.totalorder %s650_s30, %s650_s30 }
  0x8f   : > { %p8595_p3 = scmp.ne.s32.totalorder %s650_s30, %s8594_s16  ;;  %p8603_p8 = scmp.lt.s32.totalorder %s8594_s16, %s8594_s16 }
  0x91   : > { %p8597_p2 = pnand %p8595_p3, %p9150_p6  ;;  %p8604_p9 = por %p8603_p8, %p8602_p7 }
  0x93   : > { %p8598_p4 = pneg %p8597_p2 }
  0x95   : > { %p8605_p10 = pnand %p8604_p9, %p8598_p4 }
  0x97   : > { %8608 = shalt.err (!%p8605_p10)
}
  0x98   : > { %s8958_s12 = smov [#allocation2]   ;;  %s8959_s17 = smov [#allocation8]  }
  0x99   : > { %8107 = dma.vmem_to_smem (!%p9140_p5), %s650_s30, 16, %s8958_s12, [#allocation4]  }
  0x9a   : > { %s672_s26 = sshll.u32 %s8959_s17, 4  ;;  %s8960_s10 = smov [#allocation11]   ;;  %s673_s26 = int_to_ptr.vmem [resolvable:$true] %s672_s26 }
  0x9b   : > { %s698_s1 = sshll.u32 %s8960_s10, 4  ;;  %s8620_s4 = scalar_lea.vmem %s673_s26, 768  ;;  %s699_s1 = int_to_ptr.vmem [resolvable:$true] %s698_s1 }
  0x9c   : > { %p8621_p11 = scmp.ne.s32.totalorder %s673_s26, %s8620_s4  ;;  %p8628_p0 = scmp.lt.s32.totalorder %s673_s26, %s673_s26 }
  0x9d   : > { %p8629_p1 = scmp.lt.s32.totalorder %s8620_s4, %s8620_s4 }
  0x9e   : > { %p8623_p12 = pnand %p8621_p11, %p9150_p6 }
  0x9f   : > { %p8630_p3 = por %p8629_p1, %p8628_p0 }
  0xa0   : > { %p8624_p13 = pneg %p8623_p12 }
  0xa2   : > { %p8631_p2 = pnand %p8630_p3, %p8624_p13 }
  0xa4   : > { %8634 = shalt.err (!%p8631_p2)
}
  0xa5   : > { %s11370_s20 = sld [smem:[#allocation63_spill]]  ;;  %s8646_s16 = scalar_lea.vmem %s699_s1, 256 }
  0xa6   : > { %p8647_p4 = scmp.ne.s32.totalorder %s699_s1, %s8646_s16  ;;  %p8654_p9 = scmp.lt.s32.totalorder %s699_s1, %s699_s1 }
  0xa7   : > { %p8655_p10 = scmp.lt.s32.totalorder %s8646_s16, %s8646_s16 }
  0xa8   : > { %p8649_p7 = pnand %p8647_p4, %p9150_p6 }
  0xa9   : > { %p8656_p11 = por %p8655_p10, %p8654_p9 }
  0xaa   : > { %p8650_p8 = pneg %p8649_p7 }
  0xab   : > { %8113 = dma.hbm_to_vmem [thread:$0]  (!%p9140_p5), %s11370_s20, 768, %s673_s26, [#allocation7], %s11326_s8, %s11326_s8, %s11327_s9  }
  0xac   : > { %p8657_p12 = pnand %p8656_p11, %p8650_p8 }
  0xae   : > { %8660 = shalt.err (!%p8657_p12)
}
  0xaf   : > { %s11371_s10 = sld [smem:[#allocation65_spill]]  ;;  %s8961_s26 = smov [#allocation14]  }
  0xb0   : > { %s727_s4 = sshll.u32 %s8961_s26, 4  ;;  %s8962_s30 = smov [#allocation17]   ;;  %s728_s4 = int_to_ptr.vmem [resolvable:$true] %s727_s4 }
  0xb1   : > { %s753_s5 = sshll.u32 %s8962_s30, 4  ;;  %s8672_s20 = scalar_lea.vmem %s728_s4, 768  ;;  %s754_s5 = int_to_ptr.vmem [resolvable:$true] %s753_s5 }
  0xb2   : > { %p8673_p13 = scmp.ne.s32.totalorder %s728_s4, %s8672_s20  ;;  %p8680_p3 = scmp.lt.s32.totalorder %s728_s4, %s728_s4 }
  0xb3   : > { %p8681_p2 = scmp.lt.s32.totalorder %s8672_s20, %s8672_s20 }
  0xb4   : > { %p8675_p0 = pnand %p8673_p13, %p9150_p6 }
  0xb5   : > { %8119 = dma.hbm_to_vmem [thread:$0]  (!%p9140_p5), %s11371_s10, 256, %s699_s1, [#allocation10], %s11326_s8, %s11326_s8, %s11327_s9  }
  0xb6   : > { %p8676_p1 = pneg %p8675_p0  ;;  %p8682_p4 = por %p8681_p2, %p8680_p3 }
  0xb8   : > { %p8683_p7 = pnand %p8682_p4, %p8676_p1 }
  0xba   : > { %8686 = shalt.err (!%p8683_p7)
}
  0xbb   : > { %s11372_s12 = sld [smem:[#allocation68_spill]]  ;;  %s8698_s17 = scalar_lea.vmem %s754_s5, 256 }
  0xbc   : > { %p8699_p8 = scmp.ne.s32.totalorder %s754_s5, %s8698_s17  ;;  %p8706_p11 = scmp.lt.s32.totalorder %s754_s5, %s754_s5 }
  0xbd   : > { %p8707_p12 = scmp.lt.s32.totalorder %s8698_s17, %s8698_s17 }
  0xbe   : > { %p8701_p9 = pnand %p8699_p8, %p9150_p6 }
  0xbf   : > { %p8708_p13 = por %p8707_p12, %p8706_p11 }
  0xc0   : > { %p8702_p10 = pneg %p8701_p9 }
  0xc1   : > { %8125 = dma.hbm_to_vmem [thread:$0]  (!%p9140_p5), %s11372_s12, 768, %s728_s4, [#allocation13], %s11326_s8, %s11326_s8, %s11327_s9  }
  0xc2   : > { %p8709_p0 = pnand %p8708_p13, %p8702_p10 }
  0xc4   : > { %8712 = shalt.err (!%p8709_p0)
}
  0xc5   : > { %s11373_s11 = sld [smem:[#allocation70_spill]]  ;;  %s8963_s4 = smov [#allocation20]  }
  0xc6   : > { %s780_s30 = sshll.u32 %s8963_s4, 4  ;;  %s8964_s20 = smov [#allocation23]   ;;  %s781_s30 = int_to_ptr.vmem [resolvable:$true] %s780_s30 }
  0xc7   : > { %s802_s1 = sshll.u32 %s8964_s20, 4  ;;  %s8724_s16 = scalar_lea.vmem %s781_s30, 16  ;;  %s803_s1 = int_to_ptr.vmem [resolvable:$true] %s802_s1 }
  0xc8   : > { %p8725_p1 = scmp.ne.s32.totalorder %s781_s30, %s8724_s16  ;;  %s8731_s12 = scalar_lea.vmem %s781_s30, 32 }
  0xc9   : > { %p8732_p4 = scmp.lt.s32.totalorder %s781_s30, %s781_s30  ;;  %p8733_p7 = scmp.lt.s32.totalorder %s8731_s12, %s8724_s16 }
  0xca   : > { %p8727_p3 = pnand %p8725_p1, %p9150_p6 }
  0xcb   : > { %8131 = dma.hbm_to_vmem [thread:$0]  (!%p9140_p5), %s11373_s11, 256, %s754_s5, [#allocation16], %s11326_s8, %s11326_s8, %s11327_s9  }
  0xcc   : > { %p8728_p2 = pneg %p8727_p3  ;;  %p8734_p8 = por %p8733_p7, %p8732_p4 }
  0xce   : > { %p8735_p9 = pnand %p8734_p8, %p8728_p2 }
  0xd0   : > { %8738 = shalt.err (!%p8735_p9)
}
  0xd1   : > { %8137 = dma.hbm_to_vmem [thread:$0]  (!%p9140_p5), %s11308_s13, 16, %s781_s30, [#allocation19]  }
  0xd2   : > { %s8750_s10 = scalar_lea.vmem %s803_s1, 16  ;;  %s8757_s26 = scalar_lea.vmem %s803_s1, 32 }
  0xd3   : > { %p8751_p10 = scmp.ne.s32.totalorder %s803_s1, %s8750_s10  ;;  %p8758_p13 = scmp.lt.s32.totalorder %s803_s1, %s803_s1 }
  0xd4   : > { %p8759_p0 = scmp.lt.s32.totalorder %s8757_s26, %s8750_s10 }
  0xd5   : > { %p8753_p11 = pnand %p8751_p10, %p9150_p6 }
  0xd6   : > { %p8760_p1 = por %p8759_p0, %p8758_p13 }
  0xd7   : > { %p8754_p12 = pneg %p8753_p11 }
  0xd9   : > { %p8761_p3 = pnand %p8760_p1, %p8754_p12 }
  0xdb   : > { %8764 = shalt.err (!%p8761_p3)
}
  0xdc   : > { %8143 = dma.hbm_to_vmem [thread:$0]  (!%p9140_p5), %s11310_s15, 16, %s803_s1, [#allocation22]  }
  0xdd   : > { %s8965_s16 = smov [#allocation26]   ;;  %s8966_s12 = smov [#allocation29]  }
  0xde   : > { %s837_s30 = sshll.u32 %s8965_s16, 4  ;;  %s863_s5 = sshll.u32 %s8966_s12, 4  ;;  %s838_s30 = int_to_ptr.vmem [resolvable:$true] %s837_s30  ;;  %s864_s5 = int_to_ptr.vmem [resolvable:$true] %s863_s5 }
  0xdf   : > { %s8776_s17 = scalar_lea.vmem %s838_s30, 256  ;;  %p8784_p8 = scmp.lt.s32.totalorder %s838_s30, %s838_s30 }
  0xe0   : > { %p8777_p2 = scmp.ne.s32.totalorder %s838_s30, %s8776_s17  ;;  %p8785_p9 = scmp.lt.s32.totalorder %s8776_s17, %s8776_s17 }
  0xe2   : > { %p8779_p4 = pnand %p8777_p2, %p9150_p6  ;;  %p8786_p10 = por %p8785_p9, %p8784_p8 }
  0xe4   : > { %p8780_p7 = pneg %p8779_p4 }
  0xe6   : > { %p8787_p11 = pnand %p8786_p10, %p8780_p7 }
  0xe8   : > { %8790 = shalt.err (!%p8787_p11)
}
  0xe9   : > { %8149 = dma.hbm_to_vmem [thread:$0]  (!%p9140_p5), %s11316_s21, 256, %s838_s30, [#allocation25], %s11326_s8, %s11326_s8, %s11327_s9  }
  0xea   : > { %s8802_s26 = scalar_lea.vmem %s864_s5, 384  ;;  %p8810_p1 = scmp.lt.s32.totalorder %s864_s5, %s864_s5 }
  0xeb   : > { %p8803_p12 = scmp.ne.s32.totalorder %s864_s5, %s8802_s26  ;;  %p8811_p3 = scmp.lt.s32.totalorder %s8802_s26, %s8802_s26 }
  0xed   : > { %p8805_p13 = pnand %p8803_p12, %p9150_p6  ;;  %p8812_p2 = por %p8811_p3, %p8810_p1 }
  0xef   : > { %p8806_p0 = pneg %p8805_p13 }
  0xf1   : > { %p8813_p4 = pnand %p8812_p2, %p8806_p0 }
  0xf3   : > { %8816 = shalt.err (!%p8813_p4)
}
  0xf4   : > { %8155 = dma.hbm_to_vmem [thread:$0]  (!%p9140_p5), %s11318_s23, 384, %s864_s5, [#allocation28], %s11326_s8, %s11326_s8, %s11327_s9  }
  0xf5   : > { %s8967_s16 = smov [#allocation32]  }
  0xf6   : > { %s890_s30 = sshll.u32 %s8967_s16, 4  ;;  %s891_s30 = int_to_ptr.vmem [resolvable:$true] %s890_s30 }
  0xf7   : > { %s8828_s12 = scalar_lea.vmem %s891_s30, 128  ;;  %p8836_p10 = scmp.lt.s32.totalorder %s891_s30, %s891_s30 }
  0xf8   : > { %p8829_p7 = scmp.ne.s32.totalorder %s891_s30, %s8828_s12  ;;  %p8837_p11 = scmp.lt.s32.totalorder %s8828_s12, %s8828_s12 }
  0xfa   : > { %p8831_p8 = pnand %p8829_p7, %p9150_p6  ;;  %p8838_p12 = por %p8837_p11, %p8836_p10 }
  0xfc   : > { %p8832_p9 = pneg %p8831_p8 }
  0xfe   : > { %p8839_p13 = pnand %p8838_p12, %p8832_p9 }
 0x100   : > { %8842 = shalt.err (!%p8839_p13)
}
 0x101   : > { %8161 = dma.hbm_to_vmem [thread:$0]  (!%p9140_p5), %s11320_s25, 128, %s891_s30, [#allocation31]  }
 0x102   : > { %s9340_s6 = sadd.s32 1, %s8945_s28   ;;  %s103_s5 = sadd.s32 1, %s8941_s7 }
 0x103   : > { %s100_s2 = ssub.s32 %s8945_s28, %s9340_s6  ;;  %p110_p0 = scmp.ne.s32.totalorder %s8941_s7, %s8937_s3 }
 0x104   : > { %p101_p6 = scmp.eq.s32.totalorder %s100_s2, 0  ;;  %p111_p1 = scmp.eq.s32.totalorder %s8945_s28, 0 }
 0x105   : > { %p116_p3 = scmp.ne.s32.totalorder %s8937_s3, %s8933_s27  ;;  %p11374_p4 = scmp.eq.s32.totalorder %s9127_s29, 0 }
 0x106   : > { %s9351_s10 = scalar_select %p101_p6, %s8941_s7, %s103_s5  }
 0x107   : > { %p112_p2 = por %p111_p1, %p110_p0  ;;  %p9355_p7 = por %p11374_p4, %p116_p3 }
 0x108   : > { %p8185_p8 = scmp.lt.s32.totalorder %s8945_s28, 6  ;;  %s909_s4 = sand.u32 1, %s8941_s7  }
 0x109   : > { %s11375_s26 = scalar_select %p9355_p7, 1, 0 }
 0x10a   : > { %s8002_s20 = smul.u32 96, %s909_s4  ;;  %p9362_p5 = pnand %p8185_p8, %p112_p2 }
 0x10b   : > { %s8003_s16 = smul.u32 1536, %s8945_s28  ;;  %s11377_s1 = sld [smem:[#allocation61_spill]] }
 0x10c   : > { %s913_s2 = scalar_lea.vmem [#allocation5], %s8002_s20  ;;  %s9373_s8 = scalar_lea.sflag [#allocation3], %s909_s4 }
 0x10d   : > { %s920_s5 = sshll.u32 %s913_s2, 4  ;;  %p8845_p10 = pneg %p9362_p5  ;;  %s9371_s5 = int_to_ptr.vmem [resolvable:$true] %s920_s5 }
 0x111   : > { %s9369_s27 = scalar_lea.hbm %s11377_s1, %s8003_s16  ;;  %s8848_s16 = scalar_lea.hbm %s11377_s1, 9216 }
 0x112   : > { %s8843_s28 = scalar_lea.hbm %s9369_s27, 1536  ;;  %p8849_p13 = scmp.lt.s32.totalorder %s9369_s27, %s11377_s1 }
 0x113   : > { %p8844_p9 = scmp.ne.s32.totalorder %s9369_s27, %s8843_s28  ;;  %p8850_p6 = scmp.lt.s32.totalorder %s8848_s16, %s8843_s28 }
 0x115   : > { %p8846_p11 = pnand %p8845_p10, %p8844_p9  ;;  %p8851_p0 = por %p8850_p6, %p8849_p13 }
 0x117   : > { %p8847_p12 = pneg %p8846_p11 }
 0x119   : > { %p8852_p1 = pnand %p8851_p0, %p8847_p12 }
 0x11b   : > { %8855 = shalt.err (!%p8852_p1)
}
 0x11c   : > { %s8856_s4 = scalar_lea.vmem %s9371_s5, 1536  ;;  %s8968_s20 = smov [#allocation5]  }
 0x11d   : > { %p8857_p3 = scmp.ne.s32.totalorder %s9371_s5, %s8856_s4  ;;  %s8861_s2 = sshll.u32 %s8968_s20, 4  ;;  %s8862_s2 = int_to_ptr.vmem [resolvable:$false] %s8861_s2 }
 0x11e   : > { %s8863_s9 = scalar_lea.vmem %s8862_s2, 3072  ;;  %p8864_p8 = scmp.lt.s32.totalorder %s9371_s5, %s8862_s2 }
 0x11f   : > { %p8859_p2 = pnand %p8857_p3, %p8845_p10  ;;  %p8865_p9 = scmp.lt.s32.totalorder %s8863_s9, %s8856_s4 }
 0x121   : > { %p8860_p4 = pneg %p8859_p2  ;;  %p8866_p11 = por %p8865_p9, %p8864_p8 }
 0x123   : > { %p8867_p7 = pnand %p8866_p11, %p8860_p4 }
 0x125   : > { %8870 = shalt.err (!%p8867_p7)
}
 0x126   : > { %s11378_s11 = smov 8   ;;  %s11379_s28 = smov 128  }
 0x127   : > { %8165 = dma.hbm_to_vmem [thread:$0]  (!%p9362_p5), %s9369_s27, 1536, %s9371_s5, %s9373_s8, %s11379_s28, %s11379_s28, %s11378_s11  }
 0x128   : > { %p11380_p10 = scmp.ne.s32.totalorder %s11361_s0, 0 }
 0x12a   : > { %932 = sbr.rel (%p11380_p10) target bundleno = 3373 (0xd2d), region = 124 }
 0x12f   : > { %p11381_p12 = scmp.eq.s32.totalorder %s9127_s29, 0 }
 0x131   : > { %8888 = dma.done.wait (%p11381_p12), [#allocation4], 16   ;;  %p11382_p13 = pmov %p11381_p12 }
 0x132   : > { %s938_s12 = sand.u32 1, %s8937_s3   ;;  %p11383_p7 = scmp.ne.s32.totalorder %s11375_s26, 0 }
 0x133   : > { %8890 = vsyncadd (%p11382_p13), [#allocation4], 4294967280  ;;  %s8004_s30 = smul.u32 96, %s938_s12  ;;  %s939_s16 = scalar_lea.sflag [#allocation3], %s938_s12 }
 0x135   : > { %s9404_s17 = scalar_lea.vmem [#allocation5], %s8004_s30 }
 0x136   : > { %8892 = dma.done.wait (%p11383_p7), %s939_s16, 1536  }
 0x137   : > { %8894 = vsyncadd (%p11383_p7), %s939_s16, 4294965760  ;;  %p11384_p5 = pmov %p11381_p12 }
 0x139   : > { %8896 = dma.done.wait (%p11384_p5), [#allocation7], 2304   ;;  %p11385_p6 = pmov %p11384_p5 }
 0x13a   : > { %p11386_p0 = pmov %p11384_p5 }
 0x13b   : > { %8898 = vsyncadd (%p11385_p6), [#allocation7], 4294964992 }
 0x13c   : > { %8900 = dma.done.wait (%p11386_p0), [#allocation10], 640   ;;  %p11387_p1 = pmov %p11386_p0 }
 0x13d   : > { %p11388_p3 = pmov %p11386_p0 }
 0x13e   : > { %8902 = vsyncadd (%p11387_p1), [#allocation10], 4294966656 }
 0x13f   : > { %8904 = dma.done.wait (%p11388_p3), [#allocation13], 2304   ;;  %p11389_p2 = pmov %p11386_p0 }
 0x140   : > { %p11390_p4 = pmov %p11386_p0 }
 0x141   : > { %8906 = vsyncadd (%p11389_p2), [#allocation13], 4294964992 }
 0x142   : > { %8908 = dma.done.wait (%p11390_p4), [#allocation16], 640   ;;  %p11391_p8 = pmov %p11386_p0 }
 0x143   : > { %p11392_p9 = pmov %p11386_p0 }
 0x144   : > { %8910 = vsyncadd (%p11391_p8), [#allocation16], 4294966656 }
 0x145   : > { %8912 = dma.done.wait (%p11392_p9), [#allocation19], 272   ;;  %p11393_p11 = pmov %p11386_p0 }
 0x146   : > { %p11394_p10 = pmov %p11386_p0 }
 0x147   : > { %8914 = vsyncadd (%p11393_p11), [#allocation19], 4294967024 }
 0x148   : > { %8916 = dma.done.wait (%p11394_p10), [#allocation22], 32   ;;  %p11395_p12 = pmov %p11386_p0 }
 0x149   : > { %p11396_p13 = pmov %p11386_p0 }
 0x14a   : > { %8918 = vsyncadd (%p11395_p12), [#allocation22], 4294967264 }
 0x14b   : > { %8920 = dma.done.wait (%p11396_p13), [#allocation25], 1792   ;;  %p11397_p7 = pmov %p11386_p0 }
 0x14c   : > { %p11398_p5 = pmov %p11386_p0 }
 0x14d   : > { %8922 = vsyncadd (%p11397_p7), [#allocation25], 4294965504 }
 0x14e   : > { %8924 = dma.done.wait (%p11398_p5), [#allocation28], 1152   ;;  %p11399_p6 = pmov %p11386_p0 }
 0x150   : > { %8926 = vsyncadd (%p11399_p6), [#allocation28], 4294966144 }
 0x151   : > { %8928 = dma.done.wait (%p11386_p0), [#allocation31], 384   ;;  %p11400_p1 = pmov %p11386_p0 }
 0x153   : > { %8930 = vsyncadd (%p11400_p1), [#allocation31], 4294966912 }
 0x154   : > { %1019 = sfence }
 0x155   : > { %v1134_v0 = vld [vmem:[#allocation6 + $0x58] sm:$0xff]  ;;  %v1133_v1 = vld [vmem:[#allocation6 + $0x50] sm:$0xff]  ;;  %p1088_p3 = scmp.lt.s32.totalorder %s9127_s29, 5  ;;  %v1132_v2 = vld [vmem:[#allocation6 + $0x48] sm:$0xff]  ;;  %vm1184_vm0 = vcmask 785408   ;;  %s11401_s27 = sld [smem:[#allocation60_spill]] }
 0x156   : > { %7356 = vmatprep.subr.mxu0 %v1134_v0  ;;  %v1131_v3 = vld [vmem:[#allocation6 + $0x40] sm:$0xff]  ;;  %v1130_v4 = vld [vmem:[#allocation6 + $0x38] sm:$0xff]  ;;  %v1129_v6 = vld [vmem:[#allocation6 + $0x30] sm:$0xff]  ;;  %s1097_s4 = sld [smem:[#allocation2]]  ;;  %vm3034_vm1 = vcmask 392192   ;;  %vm8970_vm2 = vmmov 0  }
 0x157   : > { %7357 = vmatpush3.msra.mxu0 %v1134_v0  ;;  %s11447_s29 = smov (!%p1088_p3, %s9127_s29), 5  ;;  %v1128_v7 = vld [vmem:[#allocation6 + $0x28] sm:$0xff]  ;;  %v1127_v8 = vld [vmem:[#allocation6 + $0x20] sm:$0xff]  ;;  %v1126_v9 = vld [vmem:[#allocation6 + $0x18] sm:$0xff]  ;;  %s10106_s9 = sld [smem:[#allocation2 + $0x1]]  ;;  %vm4231_vm3 = vcmask 195584  }
 0x158   : > { %7358 = vmatprep.subr.mxu0 %v1133_v1  ;;  %s8005_s0 = smul.u32 96, %s11447_s29  ;;  %v1125_v10 = vld [vmem:[#allocation6 + $0x10] sm:$0xff]  ;;  %v1124_v11 = vld [vmem:[#allocation6 + $0x8] sm:$0xff]  ;;  %v1123_v12 = vld [vmem:[#allocation6] sm:$0xff]  ;;  %s11433_s20 = sld [smem:[#allocation74_spill]]  ;;  %vm5114_vm4 = vcmask 1043456  }
 0x159   : > { %7359 = vmatpush3.msra.mxu0 %v1133_v1  ;;  %v9464_v14 = vld [vmem:[#allocation24 + $0x58] sm:$0xff]  ;;  %v9469_v16 = vld [vmem:[#allocation24 + $0x50] sm:$0xff]  ;;  %v9480_v18 = vld [vmem:[#allocation24 + $0x48] sm:$0xff]  ;;  %vm5127_vm5 = vcmask 97280   ;;  %s11434_s16 = sld [smem:[#allocation72_spill]]  ;;  %vm5926_vm6 = vcmask 1045504  }
 0x15a   : > { %7360 = vmatprep.subr.mxu0 %v1132_v2  ;;  %v9487_v20 = vld [vmem:[#allocation24 + $0x40] sm:$0xff]  ;;  %v9498_v22 = vld [vmem:[#allocation24 + $0x38] sm:$0xff]  ;;  %v9505_v24 = vld [vmem:[#allocation24 + $0x30] sm:$0xff]  ;;  %s11435_s8 = sld [smem:[#allocation66_spill]]  ;;  %vm5931_vm7 = vcmask 48128   ;;  %vm5929_vm8 = vcmask 1041408  }
 0x15b   : > { %7361 = vmatpush3.msra.mxu0 %v1132_v2  ;;  %s9454_s5 = scalar_lea.vmem %s11401_s27, %s8005_s0  ;;  %v9516_v26 = vld [vmem:[#allocation24 + $0x28] sm:$0xff]  ;;  %v9523_v28 = vld [vmem:[#allocation24 + $0x20] sm:$0xff]  ;;  %v9534_v30 = vld [vmem:[#allocation24 + $0x18] sm:$0xff]  ;;  %vm6346_vm9 = vcmask 1042432  }
 0x15c   : > { %7362 = vmatprep.subr.mxu0 %v1131_v3  ;;  %v9457_v5 = vld [vmem:[%s9454_s5] sm:$0xff]  ;;  %v9462_v13 = vld [vmem:[%s9454_s5 + $0x8] sm:$0xff]  ;;  %v9467_v15 = vld [vmem:[%s9454_s5 + $0x10] sm:$0xff] }
 0x15d   : > { %7363 = vmatpush3.msra.mxu0 %v1131_v3  ;;  %7380 = vmatprep.mubr.msk.f32.mxu0 %vm1184_vm0, %v9457_v5  ;;  %v9477_v17 = vld [vmem:[%s9454_s5 + $0x18] sm:$0xff]  ;;  %v9483_v19 = vld [vmem:[%s9454_s5 + $0x20] sm:$0xff]  ;;  %v9495_v21 = vld [vmem:[%s9454_s5 + $0x28] sm:$0xff]  ;;  %v1148_v48 = vmul.f32 %v9457_v5, %v9457_v5  ;;  %v1149_v49 = vmul.f32 %v9462_v13, %v9462_v13  ;;  %v1150_v50 = vmul.f32 %v9467_v15, %v9467_v15 }
 0x15e   : > { %7364 = vmatprep.subr.mxu0 %v1130_v4  ;;  %v9501_v23 = vld [vmem:[%s9454_s5 + $0x30] sm:$0xff]  ;;  %v9513_v25 = vld [vmem:[%s9454_s5 + $0x38] sm:$0xff]  ;;  %v9519_v27 = vld [vmem:[%s9454_s5 + $0x40] sm:$0xff]  ;;  %v1151_v51 = vmul.f32 %v9477_v17, %v9477_v17  ;;  %v1152_v52 = vmul.f32 %v9483_v19, %v9483_v19  ;;  %v1153_v53 = vmul.f32 %v9495_v21, %v9495_v21 }
 0x15f   : > { %7365 = vmatpush3.msra.mxu0 %v1130_v4  ;;  %v9531_v29 = vld [vmem:[%s9454_s5 + $0x48] sm:$0xff]  ;;  %v9537_v31 = vld [vmem:[%s9454_s5 + $0x50] sm:$0xff]  ;;  %v9549_v33 = vld [vmem:[%s9454_s5 + $0x58] sm:$0xff]  ;;  %v1154_v54 = vmul.f32 %v9501_v23, %v9501_v23  ;;  %v1155_v55 = vmul.f32 %v9513_v25, %v9513_v25  ;;  %v1156_v56 = vmul.f32 %v9519_v27, %v9519_v27  ;;  %s11436_s5 = sld [smem:[#allocation73_spill]] }
 0x160   : > { %7366 = vmatprep.subr.mxu0 %v1129_v6  ;;  %v9541_v32 = vld [vmem:[#allocation24 + $0x10] sm:$0xff]  ;;  %v9552_v34 = vld [vmem:[#allocation24 + $0x8] sm:$0xff]  ;;  %v9555_v35 = vld [vmem:[%s9404_s17] sm:$0xff]  ;;  %v1157_v57 = vmul.f32 %v9531_v29, %v9531_v29  ;;  %v1158_v58 = vmul.f32 %v9537_v31, %v9537_v31  ;;  %v1159_v59 = vmul.f32 %v9549_v33, %v9549_v33 }
 0x161   : > { %7367 = vmatpush3.msra.mxu0 %v1129_v6  ;;  %v9559_v36 = vld [vmem:[#allocation24] sm:$0xff]  ;;  %v9571_v38 = vld [vmem:[%s9404_s17 + $0x10] sm:$0xff]  ;;  %v9581_v39 = vld [vmem:[%s9404_s17 + $0x18] sm:$0xff]  ;;  %v1160_v60 = vmul.f32 %v9555_v35, %v9555_v35 }
 0x162   : > { %7368 = vmatprep.subr.mxu0 %v1128_v7  ;;  %v9567_v37 = vld [vmem:[%s9404_s17 + $0x8] sm:$0xff]  ;;  %v9584_v40 = vld [vmem:[%s9404_s17 + $0x20] sm:$0xff]  ;;  %v9594_v42 = vld [vmem:[%s9404_s17 + $0x30] sm:$0xff]  ;;  %v1162_v62 = vmul.f32 %v9571_v38, %v9571_v38  ;;  %v1163_v63 = vmul.f32 %v9581_v39, %v9581_v39 }
 0x163   : > { %7369 = vmatpush3.msra.mxu0 %v1128_v7  ;;  %v9591_v41 = vld [vmem:[%s9404_s17 + $0x28] sm:$0xff]  ;;  %v9601_v43 = vld [vmem:[%s9404_s17 + $0x38] sm:$0xff]  ;;  %v9604_v44 = vld [vmem:[%s9404_s17 + $0x40] sm:$0xff]  ;;  %v1161_v61 = vmul.f32 %v9567_v37, %v9567_v37  ;;  %v1164_v0 = vmul.f32 %v9584_v40, %v9584_v40  ;;  %v1166_v2 = vmul.f32 %v9594_v42, %v9594_v42 }
 0x164   : > { %7370 = vmatprep.subr.mxu0 %v1127_v8  ;;  %v9611_v45 = vld [vmem:[%s9404_s17 + $0x48] sm:$0xff]  ;;  %v9614_v46 = vld [vmem:[%s9404_s17 + $0x50] sm:$0xff]  ;;  %v9621_v47 = vld [vmem:[%s9404_s17 + $0x58] sm:$0xff]  ;;  %v1165_v1 = vmul.f32 %v9591_v41, %v9591_v41  ;;  %v1167_v3 = vmul.f32 %v9601_v43, %v9601_v43  ;;  %v1168_v4 = vmul.f32 %v9604_v44, %v9604_v44 }
 0x165   : > { %7371 = vmatpush3.msra.mxu0 %v1127_v8  ;;  %v1169_v6 = vmul.f32 %v9611_v45, %v9611_v45  ;;  %v1170_v7 = vmul.f32 %v9614_v46, %v9614_v46  ;;  %v1171_v8 = vmul.f32 %v9621_v47, %v9621_v47 }
 0x166   : > { %7372 = vmatprep.subr.mxu0 %v1126_v9 }
 0x167   : > { %7373 = vmatpush3.msra.mxu0 %v1126_v9  ;;  %v1172_v9 = vmul.f32 %v9555_v35, %v9457_v5 }
 0x168   : > { %7374 = vmatprep.subr.mxu0 %v1125_v10 }
 0x169   : > { %7375 = vmatpush3.msra.mxu0 %v1125_v10  ;;  %v1173_v10 = vmul.f32 %v9567_v37, %v9462_v13 }
 0x16a   : > { %7376 = vmatprep.subr.mxu0 %v1124_v11 }
 0x16b   : > { %7377 = vmatpush3.msra.mxu0 %v1124_v11  ;;  %v1174_v11 = vmul.f32 %v9571_v38, %v9467_v15 }
 0x16c   : > { %7378 = vmatprep.subr.mxu0 %v1123_v12 }
 0x16d   : > { %7379 = vmatpush3.msra.mxu0 %v1123_v12  ;;  %v1175_v12 = vmul.f32 %v9581_v39, %v9477_v17 }
 0x16e   : > { %7381 = vmatmul.mubr.msk.f32.vlgmr.msra.gmra.mxu0 %vm1184_vm0, %v9462_v13  ;;  %7512 = vmatprep.subr.mxu0 %v9464_v14 }
 0x16f   : > { %7383 = vmatprep.mubr.msk.f32.mxu0 %vm1184_vm0, %v9467_v15  ;;  %7513 = vmatpush3.msra.mxu0 %v9464_v14 }
 0x170   : > { %7514 = vmatprep.subr.mxu0 %v9469_v16 }
 0x171   : > { %7515 = vmatpush3.msra.mxu0 %v9469_v16 }
 0x172   : > { %7384 = vmatmul.mubr.msk.f32.gmra.mxu0 %vm1184_vm0, %v9477_v17  ;;  %7516 = vmatprep.subr.mxu0 %v9480_v18 }
 0x173   : > { %7386 = vmatprep.mubr.msk.f32.mxu0 %vm1184_vm0, %v9483_v19  ;;  %7517 = vmatpush3.msra.mxu0 %v9480_v18 }
 0x174   : > { %7518 = vmatprep.subr.mxu0 %v9487_v20 }
 0x175   : > { %7519 = vmatpush3.msra.mxu0 %v9487_v20 }
 0x176   : > { %7387 = vmatmul.mubr.msk.f32.gmra.mxu0 %vm1184_vm0, %v9495_v21  ;;  %7520 = vmatprep.subr.mxu0 %v9498_v22 }
 0x177   : > { %7389 = vmatprep.mubr.msk.f32.mxu0 %vm1184_vm0, %v9501_v23  ;;  %7521 = vmatpush3.msra.mxu0 %v9498_v22 }
 0x178   : > { %7522 = vmatprep.subr.mxu0 %v9505_v24 }
 0x179   : > { %7523 = vmatpush3.msra.mxu0 %v9505_v24 }
 0x17a   : > { %7390 = vmatmul.mubr.msk.f32.gmra.mxu0 %vm1184_vm0, %v9513_v25  ;;  %7524 = vmatprep.subr.mxu0 %v9516_v26 }
 0x17b   : > { %7392 = vmatprep.mubr.msk.f32.mxu0 %vm1184_vm0, %v9519_v27  ;;  %7525 = vmatpush3.msra.mxu0 %v9516_v26 }
 0x17c   : > { %7526 = vmatprep.subr.mxu0 %v9523_v28 }
 0x17d   : > { %7527 = vmatpush3.msra.mxu0 %v9523_v28 }
 0x17e   : > { %7393 = vmatmul.mubr.msk.f32.gmra.mxu0 %vm1184_vm0, %v9531_v29  ;;  %7528 = vmatprep.subr.mxu0 %v9534_v30 }
 0x17f   : > { %7395 = vmatprep.mubr.msk.f32.mxu0 %vm1184_vm0, %v9537_v31  ;;  %7529 = vmatpush3.msra.mxu0 %v9534_v30 }
 0x180   : > { %7530 = vmatprep.subr.mxu0 %v9541_v32 }
 0x181   : > { %7531 = vmatpush3.msra.mxu0 %v9541_v32 }
 0x182   : > { %7396 = vmatmul.mubr.msk.f32.gmra.mxu0 %vm1184_vm0, %v9549_v33  ;;  %7532 = vmatprep.subr.mxu0 %v9552_v34 }
 0x183   : > { %7398 = vmatprep.mubr.msk.f32.mxu0 %vm1184_vm0, %v9555_v35  ;;  %7533 = vmatpush3.msra.mxu0 %v9552_v34 }
 0x184   : > { %7534 = vmatprep.subr.mxu0 %v9559_v36 }
 0x185   : > { %7535 = vmatpush3.msra.mxu0 %v9559_v36 }
 0x186   : > { %7399 = vmatmul.mubr.msk.f32.gmra.mxu0 %vm1184_vm0, %v9567_v37  ;;  %7587 = vmatprep.subr.mxu0 %v9464_v14 }
 0x187   : > { %7401 = vmatprep.mubr.msk.f32.mxu0 %vm1184_vm0, %v9571_v38 }
 0x18a   : > { %7402 = vmatmul.mubr.msk.f32.gmra.mxu0 %vm1184_vm0, %v9581_v39 }
 0x18b   : > { %7404 = vmatprep.mubr.msk.f32.mxu0 %vm1184_vm0, %v9584_v40 }
 0x18e   : > { %7405 = vmatmul.mubr.msk.f32.gmra.mxu0 %vm1184_vm0, %v9591_v41 }
 0x18f   : > { %7407 = vmatprep.mubr.msk.f32.mxu0 %vm1184_vm0, %v9594_v42 }
 0x192   : > { %7408 = vmatmul.mubr.msk.f32.gmra.mxu0 %vm1184_vm0, %v9601_v43 }
 0x193   : > { %7410 = vmatprep.mubr.msk.f32.mxu0 %vm1184_vm0, %v9604_v44 }
 0x196   : > { %7411 = vmatmul.mubr.msk.f32.gmra.mxu0 %vm1184_vm0, %v9611_v45 }
 0x197   : > { %7413 = vmatprep.mubr.msk.f32.mxu0 %vm1184_vm0, %v9614_v46 }
 0x19a   : > { %7414 = vmatmul.mubr.msk.f32.gmra.mxu0 %vm1184_vm0, %v9621_v47 }
 0x19b   : > { %7416 = vmatprep.mubr.msk.f32.mxu0 %vm1184_vm0, %v1148_v48  ;;  %v1176_v48 = vmul.f32 %v9584_v40, %v9483_v19 }
 0x19e   : > { %7417 = vmatmul.mubr.msk.f32.gmra.mxu0 %vm1184_vm0, %v1149_v49  ;;  %v1177_v49 = vmul.f32 %v9591_v41, %v9495_v21 }
 0x19f   : > { %7419 = vmatprep.mubr.msk.f32.mxu0 %vm1184_vm0, %v1150_v50  ;;  %v1178_v50 = vmul.f32 %v9594_v42, %v9501_v23 }
 0x1a2   : > { %7420 = vmatmul.mubr.msk.f32.gmra.mxu0 %vm1184_vm0, %v1151_v51  ;;  %v1179_v51 = vmul.f32 %v9601_v43, %v9513_v25 }
 0x1a3   : > { %7422 = vmatprep.mubr.msk.f32.mxu0 %vm1184_vm0, %v1152_v52  ;;  %v1180_v52 = vmul.f32 %v9604_v44, %v9519_v27 }
 0x1a6   : > { %7423 = vmatmul.mubr.msk.f32.gmra.mxu0 %vm1184_vm0, %v1153_v53  ;;  %v1181_v53 = vmul.f32 %v9611_v45, %v9531_v29 }
 0x1a7   : > { %7425 = vmatprep.mubr.msk.f32.mxu0 %vm1184_vm0, %v1154_v54  ;;  %v1182_v54 = vmul.f32 %v9614_v46, %v9537_v31 }
 0x1aa   : > { %7426 = vmatmul.mubr.msk.f32.gmra.mxu0 %vm1184_vm0, %v1155_v55  ;;  %v1183_v55 = vmul.f32 %v9621_v47, %v9549_v33 }
 0x1ab   : > { %7428 = vmatprep.mubr.msk.f32.mxu0 %vm1184_vm0, %v1156_v56 }
 0x1ae   : > { %7429 = vmatmul.mubr.msk.f32.gmra.mxu0 %vm1184_vm0, %v1157_v57 }
 0x1af   : > { %7431 = vmatprep.mubr.msk.f32.mxu0 %vm1184_vm0, %v1158_v58  ;;  %v9827_v58 = vld [vmem:[#allocation12 + $0x8] sm:$0xff] }
 0x1b2   : > { %7432 = vmatmul.mubr.msk.f32.gmra.mxu0 %vm1184_vm0, %v1159_v59 }
 0x1b3   : > { %7434 = vmatprep.mubr.msk.f32.mxu0 %vm1184_vm0, %v1160_v60 }
 0x1b6   : > { %7435 = vmatmul.mubr.msk.f32.gmra.mxu0 %vm1184_vm0, %v1161_v61  ;;  %v9836_v61 = vld [vmem:[#allocation12 + $0x10] sm:$0xff] }
 0x1b7   : > { %7437 = vmatprep.mubr.msk.f32.mxu0 %vm1184_vm0, %v1162_v62 }
 0x1ba   : > { %7438 = vmatmul.mubr.msk.f32.gmra.mxu0 %vm1184_vm0, %v1163_v63 }
 0x1bb   : > { %7440 = vmatprep.mubr.msk.f32.mxu0 %vm1184_vm0, %v1164_v0  ;;  %v9841_v0 = vld [vmem:[#allocation12 + $0x18] sm:$0xff] }
 0x1be   : > { %7441 = vmatmul.mubr.msk.f32.gmra.mxu0 %vm1184_vm0, %v1165_v1 }
 0x1bf   : > { %7443 = vmatprep.mubr.msk.f32.mxu0 %vm1184_vm0, %v1166_v2 }
 0x1c2   : > { %7444 = vmatmul.mubr.msk.f32.gmra.mxu0 %vm1184_vm0, %v1167_v3  ;;  %v9846_v3 = vld [vmem:[#allocation12 + $0x20] sm:$0xff] }
 0x1c3   : > { %7446 = vmatprep.mubr.msk.f32.mxu0 %vm1184_vm0, %v1168_v4 }
 0x1c6   : > { %7447 = vmatmul.mubr.msk.f32.gmra.mxu0 %vm1184_vm0, %v1169_v6 }
 0x1c7   : > { %7449 = vmatprep.mubr.msk.f32.mxu0 %vm1184_vm0, %v1170_v7  ;;  %v9851_v7 = vld [vmem:[#allocation12 + $0x28] sm:$0xff] }
 0x1ca   : > { %7450 = vmatmul.mubr.msk.f32.gmra.mxu0 %vm1184_vm0, %v1171_v8 }
 0x1cb   : > { %7452 = vmatprep.mubr.msk.f32.mxu0 %vm1184_vm0, %v1172_v9 }
 0x1ce   : > { %7453 = vmatmul.mubr.msk.f32.gmra.mxu0 %vm1184_vm0, %v1173_v10  ;;  %v9856_v10 = vld [vmem:[#allocation12 + $0x30] sm:$0xff] }
 0x1cf   : > { %7455 = vmatprep.mubr.msk.f32.mxu0 %vm1184_vm0, %v1174_v11 }
 0x1d2   : > { %7456 = vmatmul.mubr.msk.f32.gmra.mxu0 %vm1184_vm0, %v1175_v12 }
 0x1d3   : > { %7458 = vmatprep.mubr.msk.f32.mxu0 %vm1184_vm0, %v1176_v48  ;;  %v9861_v48 = vld [vmem:[#allocation12 + $0x38] sm:$0xff] }
 0x1d6   : > { %7459 = vmatmul.mubr.msk.f32.gmra.mxu0 %vm1184_vm0, %v1177_v49 }
 0x1d7   : > { %7461 = vmatprep.mubr.msk.f32.mxu0 %vm1184_vm0, %v1178_v50 }
 0x1da   : > { %7462 = vmatmul.mubr.msk.f32.gmra.mxu0 %vm1184_vm0, %v1179_v51  ;;  %v9870_v51 = vld [vmem:[#allocation12 + $0x40] sm:$0xff] }
 0x1db   : > { %7464 = vmatprep.mubr.msk.f32.mxu0 %vm1184_vm0, %v1180_v52 }
 0x1de   : > { %7465 = vmatmul.mubr.msk.f32.gmra.mxu0 %vm1184_vm0, %v1181_v53 }
 0x1df   : > { %7467 = vmatprep.mubr.msk.f32.mxu0 %vm1184_vm0, %v1182_v54  ;;  %v9880_v54 = vld [vmem:[#allocation12 + $0x48] sm:$0xff] }
 0x1e2   : > { %7468 = vmatmul.mubr.msk.f32.gmra.mxu0 %vm1184_vm0, %v1183_v55 }
 0x1e3   : > { %7536 = vmatprep.mubr.msk.f32.mxu0 %vm1184_vm0, %v9457_v5  ;;  %v11329_v5 = vmov 0.0  }
 0x1e4   : > { %1830 = vmatprep.mubr.f32.mxu1 %v11329_v5 }
 0x1e6   : > { %7537 = vmatmul.mubr.msk.f32.vlgmr.msra.gmra.mxu0 %vm1184_vm0, %v9462_v13 }
 0x1e7   : > { %7588 = vmatpush3.msra.mxu0 %v9464_v14  ;;  %7539 = vmatprep.mubr.msk.f32.mxu0 %vm1184_vm0, %v9467_v15 }
 0x1e8   : > { %7589 = vmatprep.subr.mxu0 %v9469_v16 }
 0x1e9   : > { %7590 = vmatpush3.msra.mxu0 %v9469_v16 }
 0x1ea   : > { %7540 = vmatmul.mubr.msk.f32.gmra.mxu0 %vm1184_vm0, %v9477_v17  ;;  %7591 = vmatprep.subr.mxu0 %v9480_v18 }
 0x1eb   : > { %7592 = vmatpush3.msra.mxu0 %v9480_v18  ;;  %7542 = vmatprep.mubr.msk.f32.mxu0 %vm1184_vm0, %v9483_v19 }
 0x1ec   : > { %7593 = vmatprep.subr.mxu0 %v9487_v20 }
 0x1ed   : > { %7594 = vmatpush3.msra.mxu0 %v9487_v20 }
 0x1ee   : > { %7543 = vmatmul.mubr.msk.f32.gmra.mxu0 %vm1184_vm0, %v9495_v21  ;;  %7595 = vmatprep.subr.mxu0 %v9498_v22 }
 0x1ef   : > { %7596 = vmatpush3.msra.mxu0 %v9498_v22  ;;  %7545 = vmatprep.mubr.msk.f32.mxu0 %vm1184_vm0, %v9501_v23 }
 0x1f0   : > { %7597 = vmatprep.subr.mxu0 %v9505_v24 }
 0x1f1   : > { %7598 = vmatpush3.msra.mxu0 %v9505_v24 }
 0x1f2   : > { %7546 = vmatmul.mubr.msk.f32.gmra.mxu0 %vm1184_vm0, %v9513_v25  ;;  %7599 = vmatprep.subr.mxu0 %v9516_v26 }
 0x1f3   : > { %7600 = vmatpush3.msra.mxu0 %v9516_v26  ;;  %7548 = vmatprep.mubr.msk.f32.mxu0 %vm1184_vm0, %v9519_v27 }
 0x1f4   : > { %7601 = vmatprep.subr.mxu0 %v9523_v28 }
 0x1f5   : > { %7602 = vmatpush3.msra.mxu0 %v9523_v28 }
 0x1f6   : > { %7549 = vmatmul.mubr.msk.f32.gmra.mxu0 %vm1184_vm0, %v9531_v29  ;;  %7603 = vmatprep.subr.mxu0 %v9534_v30 }
 0x1f7   : > { %7604 = vmatpush3.msra.mxu0 %v9534_v30  ;;  %7551 = vmatprep.mubr.msk.f32.mxu0 %vm1184_vm0, %v9537_v31 }
 0x1f8   : > { %7605 = vmatprep.subr.mxu0 %v9541_v32 }
 0x1f9   : > { %7606 = vmatpush3.msra.mxu0 %v9541_v32 }
 0x1fa   : > { %7552 = vmatmul.mubr.msk.f32.gmra.mxu0 %vm1184_vm0, %v9549_v33  ;;  %7607 = vmatprep.subr.mxu0 %v9552_v34 }
 0x1fb   : > { %7608 = vmatpush3.msra.mxu0 %v9552_v34  ;;  %7611 = vmatprep.mubr.msk.f32.mxu0 %vm1184_vm0, %v9555_v35 }
 0x1fc   : > { %7609 = vmatprep.subr.mxu0 %v9559_v36 }
 0x1fd   : > { %7610 = vmatpush3.msra.mxu0 %v9559_v36 }
 0x1fe   : > { %7612 = vmatmul.mubr.msk.f32.vlgmr.msra.gmra.mxu0 %vm1184_vm0, %v9567_v37 }
 0x1ff   : > { %7614 = vmatprep.mubr.msk.f32.mxu0 %vm1184_vm0, %v9571_v38 }
 0x202   : > { %7615 = vmatmul.mubr.msk.f32.gmra.mxu0 %vm1184_vm0, %v9581_v39 }
 0x203   : > { %7617 = vmatprep.mubr.msk.f32.mxu0 %vm1184_vm0, %v9584_v40 }
 0x206   : > { %7618 = vmatmul.mubr.msk.f32.gmra.mxu0 %vm1184_vm0, %v9591_v41 }
 0x207   : > { %7620 = vmatprep.mubr.msk.f32.mxu0 %vm1184_vm0, %v9594_v42 }
 0x20a   : > { %7621 = vmatmul.mubr.msk.f32.gmra.mxu0 %vm1184_vm0, %v9601_v43 }
 0x20b   : > { %7623 = vmatprep.mubr.msk.f32.mxu0 %vm1184_vm0, %v9604_v44 }
 0x20e   : > { %7624 = vmatmul.mubr.msk.f32.gmra.mxu0 %vm1184_vm0, %v9611_v45 }
 0x20f   : > { %7626 = vmatprep.mubr.msk.f32.mxu0 %vm1184_vm0, %v9614_v46 }
 0x212   : > { %7627 = vmatmul.mubr.msk.f32.gmra.mxu0 %vm1184_vm0, %v9621_v47  ;;  %v9822_v47 = vld [vmem:[#allocation12] sm:$0xff] }
 0x213   : > { %3422 = vmatprep.mubr.f32.mxu0 %v11329_v5 }
 0x22e   : > { %v7382_v13 = vpop.f32.mrf.mxu0 }
 0x230   : > { %v1431_v14 = vpop.f32.mrf.mxu0 }
 0x232   : > { %v7385_v15 = vpop.f32.mrf.mxu0 }
 0x234   : > { %v1441_v16 = vpop.f32.mrf.mxu0 }
 0x236   : > { %v7388_v17 = vpop.f32.mrf.mxu0 }
 0x238   : > { %v1451_v18 = vpop.f32.mrf.mxu0 }
 0x23a   : > { %v7391_v19 = vpop.f32.mrf.mxu0 }
 0x23c   : > { %v1461_v20 = vpop.f32.mrf.mxu0 }
 0x23e   : > { %v7394_v21 = vpop.f32.mrf.mxu0 }
 0x240   : > { %v1471_v22 = vpop.f32.mrf.mxu0 }
 0x242   : > { %v7397_v23 = vpop.f32.mrf.mxu0 }
 0x244   : > { %v1481_v24 = vpop.f32.mrf.mxu0 }
 0x246   : > { %v7400_v25 = vpop.f32.mrf.mxu0 }
 0x248   : > { %v1491_v26 = vpop.f32.mrf.mxu0 }
 0x24a   : > { %v7403_v27 = vpop.f32.mrf.mxu0 }
 0x24c   : > { %v1501_v28 = vpop.f32.mrf.mxu0 }
 0x24e   : > { %v7406_v29 = vpop.f32.mrf.mxu0 }
 0x250   : > { %v1511_v30 = vpop.f32.mrf.mxu0 }
 0x252   : > { %v7409_v31 = vpop.f32.mrf.mxu0 }
 0x254   : > { %v1521_v32 = vpop.f32.mrf.mxu0 }
 0x256   : > { %v7412_v33 = vpop.f32.mrf.mxu0 }
 0x258   : > { %v1531_v34 = vpop.f32.mrf.mxu0 }
 0x25a   : > { %v7415_v35 = vpop.f32.mrf.mxu0 }
 0x25b   : > { %1774 = vmatprep.subr.mxu1 %v7415_v35 }
 0x25c   : > { %v1541_v36 = vpop.f32.mrf.mxu0  ;;  %1775 = vmatpush1.msra.mxu1 %v7397_v23 }
 0x25d   : > { %1776 = vmatprep.subr.mxu1 %v1541_v36 }
 0x25e   : > { %v9806_v37 = vpop.f32.mrf.mxu0  ;;  %1777 = vmatpush1.msra.mxu1 %v1481_v24 }
 0x25f   : > { %1778 = vmatprep.subr.mxu1 %v7412_v33 }
 0x260   : > { %v9808_v38 = vpop.f32.mrf.mxu0  ;;  %1779 = vmatpush1.msra.mxu1 %v7394_v21 }
 0x261   : > { %1780 = vmatprep.subr.mxu1 %v1531_v34 }
 0x262   : > { %v9810_v39 = vpop.f32.mrf.mxu0  ;;  %1781 = vmatpush1.msra.mxu1 %v1471_v22 }
 0x263   : > { %1782 = vmatprep.subr.mxu1 %v7409_v31 }
 0x264   : > { %v9812_v40 = vpop.f32.mrf.mxu0  ;;  %1783 = vmatpush1.msra.mxu1 %v7391_v19 }
 0x265   : > { %1784 = vmatprep.subr.mxu1 %v1521_v32 }
 0x266   : > { %v9814_v41 = vpop.f32.mrf.mxu0  ;;  %1785 = vmatpush1.msra.mxu1 %v1461_v20 }
 0x267   : > { %1786 = vmatprep.subr.mxu1 %v7406_v29 }
 0x268   : > { %v9816_v42 = vpop.f32.mrf.mxu0  ;;  %1787 = vmatpush1.msra.mxu1 %v7388_v17  ;;  %v9894_v17 = vld [vmem:[#allocation12 + $0x58] sm:$0xff] }
 0x269   : > { %1788 = vmatprep.subr.mxu1 %v1511_v30 }
 0x26a   : > { %v9818_v43 = vpop.f32.mrf.mxu0  ;;  %1789 = vmatpush1.msra.mxu1 %v1451_v18 }
 0x26b   : > { %1790 = vmatprep.subr.mxu1 %v7403_v27 }
 0x26c   : > { %v9820_v44 = vpop.f32.mrf.mxu0  ;;  %1791 = vmatpush1.msra.mxu1 %v7385_v15 }
 0x26d   : > { %1792 = vmatprep.subr.mxu1 %v1501_v28 }
 0x26e   : > { %v7430_v45 = vpop.f32.mrf.mxu0  ;;  %1793 = vmatpush1.msra.mxu1 %v1441_v16 }
 0x26f   : > { %1794 = vmatprep.subr.mxu1 %v7400_v25 }
 0x270   : > { %v1591_v46 = vpop.f32.mrf.mxu0  ;;  %1795 = vmatpush1.msra.mxu1 %v7382_v13 }
 0x271   : > { %1796 = vmatprep.subr.mxu1 %v1491_v26 }
 0x272   : > { %v7433_v56 = vpop.f32.mrf.mxu0  ;;  %1797 = vmatpush1.msra.mxu1 %v1431_v14  ;;  %v9887_v14 = vld [vmem:[#allocation12 + $0x50] sm:$0xff] }
 0x273   : > { %6779 = vmatmul.mubr.msk.f32.vlgmr.msra.gmra.mxu1 %vm1184_vm0, %v9822_v47 }
 0x274   : > { %v1601_v57 = vpop.f32.mrf.mxu0  ;;  %1836 = vmatprep.mubr.f32.mxu1 %v11329_v5 }
 0x276   : > { %v9829_v59 = vpop.f32.mrf.mxu0 }
 0x277   : > { %6780 = vmatmul.mubr.msk.f32.gmra.mxu1 %vm1184_vm0, %v9827_v58 }
 0x278   : > { %v9833_v60 = vpop.f32.mrf.mxu0  ;;  %1842 = vmatprep.mubr.f32.mxu1 %v11329_v5 }
 0x27a   : > { %v7439_v62 = vpop.f32.mrf.mxu0 }
 0x27b   : > { %6781 = vmatmul.mubr.msk.f32.gmra.mxu1 %vm1184_vm0, %v9836_v61 }
 0x27c   : > { %v1621_v63 = vpop.f32.mrf.mxu0  ;;  %1848 = vmatprep.mubr.f32.mxu1 %v11329_v5 }
 0x27e   : > { %v7442_v1 = vpop.f32.mrf.mxu0 }
 0x27f   : > { %6782 = vmatmul.mubr.msk.f32.gmra.mxu1 %vm1184_vm0, %v9841_v0 }
 0x280   : > { %v1631_v2 = vpop.f32.mrf.mxu0  ;;  %1854 = vmatprep.mubr.f32.mxu1 %v11329_v5 }
 0x282   : > { %v7445_v4 = vpop.f32.mrf.mxu0 }
 0x283   : > { %6783 = vmatmul.mubr.msk.f32.gmra.mxu1 %vm1184_vm0, %v9846_v3 }
 0x284   : > { %v1641_v6 = vpop.f32.mrf.mxu0  ;;  %1860 = vmatprep.mubr.f32.mxu1 %v11329_v5 }
 0x286   : > { %v7448_v8 = vpop.f32.mrf.mxu0 }
 0x287   : > { %6784 = vmatmul.mubr.msk.f32.gmra.mxu1 %vm1184_vm0, %v9851_v7 }
 0x288   : > { %v1651_v9 = vpop.f32.mrf.mxu0  ;;  %1866 = vmatprep.mubr.f32.mxu1 %v11329_v5 }
 0x28a   : > { %v7451_v11 = vpop.f32.mrf.mxu0 }
 0x28b   : > { %6785 = vmatmul.mubr.msk.f32.gmra.mxu1 %vm1184_vm0, %v9856_v10  ;;  %1911 = vmatprep.subr.mxu1 %v7451_v11 }
 0x28c   : > { %v1661_v12 = vpop.f32.mrf.mxu0  ;;  %1912 = vmatpush1.msra.mxu1 %v7433_v56  ;;  %1872 = vmatprep.mubr.f32.mxu1 %v11329_v5 }
 0x28d   : > { %1913 = vmatprep.subr.mxu1 %v1661_v12 }
 0x28e   : > { %v9863_v49 = vpop.f32.mrf.mxu0  ;;  %1914 = vmatpush1.msra.mxu1 %v1601_v57  ;;  %v2542_v57 = vld [vmem:[#allocation27 + $0x18] sm:$0xff] }
 0x28f   : > { %6786 = vmatmul.mubr.msk.f32.gmra.mxu1 %vm1184_vm0, %v9861_v48  ;;  %1915 = vmatprep.subr.mxu1 %v7448_v8 }
 0x290   : > { %v9867_v50 = vpop.f32.mrf.mxu0  ;;  %1916 = vmatpush1.msra.mxu1 %v7430_v45  ;;  %1878 = vmatprep.mubr.f32.mxu1 %v11329_v5 }
 0x291   : > { %1917 = vmatprep.subr.mxu1 %v1651_v9 }
 0x292   : > { %v9872_v52 = vpop.f32.mrf.mxu0  ;;  %1918 = vmatpush1.msra.mxu1 %v1591_v46  ;;  %v2540_v46 = vld [vmem:[#allocation27 + $0x8] sm:$0xff] }
 0x293   : > { %6787 = vmatmul.mubr.msk.f32.gmra.mxu1 %vm1184_vm0, %v9870_v51  ;;  %1919 = vmatprep.subr.mxu1 %v7445_v4 }
 0x294   : > { %v9876_v53 = vpop.f32.mrf.mxu0  ;;  %1920 = vmatpush1.msra.mxu1 %v9818_v43  ;;  %1884 = vmatprep.mubr.f32.mxu1 %v11329_v5 }
 0x295   : > { %1921 = vmatprep.subr.mxu1 %v1641_v6 }
 0x296   : > { %v7460_v55 = vpop.f32.mrf.mxu0  ;;  %1922 = vmatpush1.msra.mxu1 %v9820_v44  ;;  %v2539_v44 = vld [vmem:[#allocation27] sm:$0xff] }
 0x297   : > { %6788 = vmatmul.mubr.msk.f32.gmra.mxu1 %vm1184_vm0, %v9880_v54  ;;  %1923 = vmatprep.subr.mxu1 %v7442_v1  ;;  %v3003_v1 = vld [vmem:[#allocation8] sm:$0xff] }
 0x298   : > { %v1691_v13 = vpop.f32.mrf.mxu0  ;;  %1924 = vmatpush1.msra.mxu1 %v9814_v41  ;;  %1890 = vmatprep.mubr.f32.mxu1 %v11329_v5 }
 0x299   : > { %1925 = vmatprep.subr.mxu1 %v1631_v2 }
 0x29a   : > { %v7463_v15 = vpop.f32.mrf.mxu0  ;;  %1926 = vmatpush1.msra.mxu1 %v9816_v42 }
 0x29b   : > { %6789 = vmatmul.mubr.msk.f32.gmra.mxu1 %vm1184_vm0, %v9887_v14  ;;  %1927 = vmatprep.subr.mxu1 %v7439_v62  ;;  %v3006_v62 = vld [vmem:[#allocation8 + $0x18] sm:$0xff] }
 0x29c   : > { %v1701_v16 = vpop.f32.mrf.mxu0  ;;  %1928 = vmatpush1.msra.mxu1 %v9810_v39  ;;  %1896 = vmatprep.mubr.f32.mxu1 %v11329_v5 }
 0x29d   : > { %1929 = vmatprep.subr.mxu1 %v1621_v63  ;;  %v3005_v63 = vld [vmem:[#allocation8 + $0x10] sm:$0xff] }
 0x29e   : > { %v7466_v18 = vpop.f32.mrf.mxu0  ;;  %1930 = vmatpush1.msra.mxu1 %v9812_v40 }
 0x29f   : > { %6790 = vmatmul.mubr.msk.f32.gmra.mxu1 %vm1184_vm0, %v9894_v17  ;;  %1931 = vmatprep.subr.mxu1 %v9829_v59  ;;  %v2544_v59 = vld [vmem:[#allocation27 + $0x28] sm:$0xff] }
 0x2a0   : > { %v1711_v19 = vpop.f32.mrf.mxu0  ;;  %1932 = vmatpush1.msra.mxu1 %v9806_v37  ;;  %1967 = vmatprep.mubr.f32.mxu1 %v11329_v5 }
 0x2a1   : > { %1933 = vmatprep.subr.mxu1 %v9833_v60  ;;  %v3008_v60 = vld [vmem:[#allocation8 + $0x28] sm:$0xff] }
 0x2a2   : > { %v7469_v20 = vpop.f32.mrf.mxu0  ;;  %1934 = vmatpush1.msra.mxu1 %v9808_v38 }
 0x2a3   : > { %6791 = vmatmul.mubr.msk.f32.vlgmr.msra.gmra.mxu1 %vm1184_vm0, %v9822_v47  ;;  %7470 = vmatprep.subr.mxu1 %v7469_v20 }
 0x2a4   : > { %v1721_v21 = vpop.f32.mrf.mxu0  ;;  %7471 = vmatpush3.msra.mxu1 %v7469_v20  ;;  %1973 = vmatprep.mubr.f32.mxu1 %v11329_v5 }
 0x2a5   : > { %7472 = vmatprep.subr.mxu1 %v1721_v21 }
 0x2a6   : > { %7473 = vmatpush3.msra.mxu1 %v1721_v21  ;;  %v9907_v22 = vpop.f32.mrf.mxu0 }
 0x2a7   : > { %6792 = vmatmul.mubr.msk.f32.gmra.mxu1 %vm1184_vm0, %v9827_v58  ;;  %7474 = vmatprep.subr.mxu1 %v7466_v18 }
 0x2a8   : > { %7475 = vmatpush3.msra.mxu1 %v7466_v18  ;;  %1979 = vmatprep.mubr.f32.mxu1 %v11329_v5  ;;  %v9912_v23 = vpop.f32.mrf.mxu0  ;;  %v10057_v18 = vstv %s1097_s4 }
 0x2a9   : > { %7476 = vmatprep.subr.mxu1 %v1711_v19 }
 0x2aa   : > { %7477 = vmatpush3.msra.mxu1 %v1711_v19  ;;  %v9914_v24 = vpop.f32.mrf.mxu0 }
 0x2ab   : > { %6793 = vmatmul.mubr.msk.f32.gmra.mxu1 %vm1184_vm0, %v9836_v61  ;;  %7478 = vmatprep.subr.mxu1 %v7463_v15 }
 0x2ac   : > { %7479 = vmatpush3.msra.mxu1 %v7463_v15  ;;  %1985 = vmatprep.mubr.f32.mxu1 %v11329_v5  ;;  %v9919_v25 = vpop.f32.mrf.mxu0 }
 0x2ad   : > { %7480 = vmatprep.subr.mxu1 %v1701_v16 }
 0x2ae   : > { %7481 = vmatpush3.msra.mxu1 %v1701_v16  ;;  %v9921_v26 = vpop.f32.mrf.mxu0 }
 0x2af   : > { %6794 = vmatmul.mubr.msk.f32.gmra.mxu1 %vm1184_vm0, %v9841_v0  ;;  %7482 = vmatprep.subr.mxu1 %v7460_v55 }
 0x2b0   : > { %7483 = vmatpush3.msra.mxu1 %v7460_v55  ;;  %1991 = vmatprep.mubr.f32.mxu1 %v11329_v5  ;;  %v9926_v27 = vpop.f32.mrf.mxu0 }
 0x2b1   : > { %7484 = vmatprep.subr.mxu1 %v1691_v13 }
 0x2b2   : > { %7485 = vmatpush3.msra.mxu1 %v1691_v13  ;;  %v7547_v28 = vpop.f32.mrf.mxu0 }
 0x2b3   : > { %6795 = vmatmul.mubr.msk.f32.gmra.mxu1 %vm1184_vm0, %v9846_v3  ;;  %7486 = vmatprep.subr.mxu1 %v9872_v52 }
 0x2b4   : > { %7487 = vmatpush3.msra.mxu1 %v9872_v52  ;;  %1997 = vmatprep.mubr.f32.mxu1 %v11329_v5  ;;  %v2641_v29 = vpop.f32.mrf.mxu0 }
 0x2b5   : > { %7488 = vmatprep.subr.mxu1 %v9876_v53 }
 0x2b6   : > { %7489 = vmatpush3.msra.mxu1 %v9876_v53  ;;  %v7550_v30 = vpop.f32.mrf.mxu0 }
 0x2b7   : > { %6796 = vmatmul.mubr.msk.f32.gmra.mxu1 %vm1184_vm0, %v9851_v7  ;;  %7490 = vmatprep.subr.mxu1 %v9863_v49 }
 0x2b8   : > { %7491 = vmatpush3.msra.mxu1 %v9863_v49  ;;  %2003 = vmatprep.mubr.f32.mxu1 %v11329_v5  ;;  %v2651_v31 = vpop.f32.mrf.mxu0 }
 0x2b9   : > { %7492 = vmatprep.subr.mxu1 %v9867_v50 }
 0x2ba   : > { %7493 = vmatpush3.msra.mxu1 %v9867_v50  ;;  %v7553_v32 = vpop.f32.mrf.mxu0 }
 0x2bb   : > { %6797 = vmatmul.mubr.msk.f32.gmra.mxu1 %vm1184_vm0, %v9856_v10  ;;  %7554 = vmatprep.subr.mxu1 %v7553_v32 }
 0x2bc   : > { %2009 = vmatprep.mubr.f32.mxu1 %v11329_v5  ;;  %v2661_v33 = vpop.f32.mrf.mxu0 }
 0x2be   : > { %v9948_v34 = vpop.f32.mrf.mxu0 }
 0x2bf   : > { %6798 = vmatmul.mubr.msk.f32.gmra.mxu1 %vm1184_vm0, %v9861_v48 }
 0x2c0   : > { %2015 = vmatprep.mubr.f32.mxu1 %v11329_v5  ;;  %v9953_v35 = vpop.f32.mrf.mxu0 }
 0x2c2   : > { %v9958_v36 = vpop.f32.mrf.mxu0 }
 0x2c3   : > { %6799 = vmatmul.mubr.msk.f32.gmra.mxu1 %vm1184_vm0, %v9870_v51 }
 0x2c4   : > { %2021 = vmatprep.mubr.f32.mxu1 %v11329_v5  ;;  %v9963_v37 = vpop.f32.mrf.mxu0 }
 0x2c6   : > { %v9969_v38 = vpop.f32.mrf.mxu0 }
 0x2c7   : > { %6800 = vmatmul.mubr.msk.f32.gmra.mxu1 %vm1184_vm0, %v9880_v54 }
 0x2c8   : > { %2027 = vmatprep.mubr.f32.mxu1 %v11329_v5  ;;  %v9975_v39 = vpop.f32.mrf.mxu0 }
 0x2ca   : > { %v7622_v40 = vpop.f32.mrf.mxu0 }
 0x2cb   : > { %6801 = vmatmul.mubr.msk.f32.gmra.mxu1 %vm1184_vm0, %v9887_v14 }
 0x2cc   : > { %2033 = vmatprep.mubr.f32.mxu1 %v11329_v5  ;;  %v2879_v41 = vpop.f32.mrf.mxu0 }
 0x2ce   : > { %v7625_v42 = vpop.f32.mrf.mxu0 }
 0x2cf   : > { %6802 = vmatmul.mubr.msk.f32.gmra.mxu1 %vm1184_vm0, %v9894_v17 }
 0x2d0   : > { %7494 = vmatprep.mubr.msk.f32.mxu1 %vm1184_vm0, %v9822_v47  ;;  %v2889_v43 = vpop.f32.mrf.mxu0  ;;  %v2541_v47 = vld [vmem:[#allocation27 + $0x10] sm:$0xff] }
 0x2d2   : > { %v7628_v45 = vpop.f32.mrf.mxu0 }
 0x2d3   : > { %7495 = vmatmul.mubr.msk.f32.vlgmr.msra.gmra.mxu1 %vm1184_vm0, %v9827_v58  ;;  %v2543_v58 = vld [vmem:[#allocation27 + $0x20] sm:$0xff] }
 0x2d4   : > { %7555 = vmatpush3.msra.mxu1 %v7553_v32  ;;  %7497 = vmatprep.mubr.msk.f32.mxu1 %vm1184_vm0, %v9836_v61  ;;  %v2899_v56 = vpop.f32.mrf.mxu0  ;;  %v3007_v61 = vld [vmem:[#allocation8 + $0x20] sm:$0xff] }
 0x2d5   : > { %7556 = vmatprep.subr.mxu1 %v2661_v33 }
 0x2d6   : > { %7557 = vmatpush3.msra.mxu1 %v2661_v33 }
 0x2d7   : > { %7558 = vmatprep.subr.mxu1 %v7550_v30  ;;  %7498 = vmatmul.mubr.msk.f32.gmra.mxu1 %vm1184_vm0, %v9841_v0  ;;  %v3004_v0 = vld [vmem:[#allocation8 + $0x8] sm:$0xff] }
 0x2d8   : > { %7559 = vmatpush3.msra.mxu1 %v7550_v30  ;;  %7500 = vmatprep.mubr.msk.f32.mxu1 %vm1184_vm0, %v9846_v3  ;;  %v10082_v30 = vld [vmem:[%s11314_s19 + $0x28] sm:$0xff] }
 0x2d9   : > { %7560 = vmatprep.subr.mxu1 %v2651_v31  ;;  %11405 = vst [vmem:[#allocation47_spill] sm:$0xff] %v10082_v30 }
 0x2da   : > { %7561 = vmatpush3.msra.mxu1 %v2651_v31 }
 0x2db   : > { %7562 = vmatprep.subr.mxu1 %v7547_v28  ;;  %7501 = vmatmul.mubr.msk.f32.gmra.mxu1 %vm1184_vm0, %v9851_v7 }
 0x2dc   : > { %7563 = vmatpush3.msra.mxu1 %v7547_v28  ;;  %7503 = vmatprep.mubr.msk.f32.mxu1 %vm1184_vm0, %v9856_v10 }
 0x2dd   : > { %7564 = vmatprep.subr.mxu1 %v2641_v29 }
 0x2de   : > { %7565 = vmatpush3.msra.mxu1 %v2641_v29 }
 0x2df   : > { %7566 = vmatprep.subr.mxu1 %v9921_v26  ;;  %7504 = vmatmul.mubr.msk.f32.gmra.mxu1 %vm1184_vm0, %v9861_v48 }
 0x2e0   : > { %7567 = vmatpush3.msra.mxu1 %v9921_v26  ;;  %7506 = vmatprep.mubr.msk.f32.mxu1 %vm1184_vm0, %v9870_v51 }
 0x2e1   : > { %7568 = vmatprep.subr.mxu1 %v9926_v27 }
 0x2e2   : > { %7569 = vmatpush3.msra.mxu1 %v9926_v27 }
 0x2e3   : > { %7570 = vmatprep.subr.mxu1 %v9914_v24  ;;  %7507 = vmatmul.mubr.msk.f32.gmra.mxu1 %vm1184_vm0, %v9880_v54 }
 0x2e4   : > { %7571 = vmatpush3.msra.mxu1 %v9914_v24  ;;  %7509 = vmatprep.mubr.msk.f32.mxu1 %vm1184_vm0, %v9887_v14 }
 0x2e5   : > { %7572 = vmatprep.subr.mxu1 %v9919_v25 }
 0x2e6   : > { %7573 = vmatpush3.msra.mxu1 %v9919_v25 }
 0x2e7   : > { %7574 = vmatprep.subr.mxu1 %v9907_v22  ;;  %7510 = vmatmul.mubr.msk.f32.gmra.mxu1 %vm1184_vm0, %v9894_v17 }
 0x2e8   : > { %7575 = vmatpush3.msra.mxu1 %v9907_v22  ;;  %7578 = vmatprep.mubr.msk.f32.mxu1 %vm1184_vm0, %v2539_v44 }
 0x2e9   : > { %7576 = vmatprep.subr.mxu1 %v9912_v23 }
 0x2ea   : > { %7577 = vmatpush3.msra.mxu1 %v9912_v23 }
 0x2eb   : > { %7629 = vmatprep.subr.mxu1 %v7628_v45  ;;  %7579 = vmatmul.mubr.msk.f32.vlgmr.msra.gmra.mxu1 %vm1184_vm0, %v2540_v46 }
 0x2ec   : > { %7630 = vmatpush3.msra.mxu1 %v7628_v45  ;;  %7581 = vmatprep.mubr.msk.f32.mxu1 %vm1184_vm0, %v2541_v47 }
 0x2ed   : > { %7631 = vmatprep.subr.mxu1 %v2899_v56 }
 0x2ee   : > { %7632 = vmatpush3.msra.mxu1 %v2899_v56 }
 0x2ef   : > { %7633 = vmatprep.subr.mxu1 %v7625_v42  ;;  %7582 = vmatmul.mubr.msk.f32.gmra.mxu1 %vm1184_vm0, %v2542_v57 }
 0x2f0   : > { %7634 = vmatpush3.msra.mxu1 %v7625_v42  ;;  %7584 = vmatprep.mubr.msk.f32.mxu1 %vm1184_vm0, %v2543_v58 }
 0x2f1   : > { %7635 = vmatprep.subr.mxu1 %v2889_v43 }
 0x2f2   : > { %7636 = vmatpush3.msra.mxu1 %v2889_v43 }
 0x2f3   : > { %7637 = vmatprep.subr.mxu1 %v7622_v40  ;;  %7585 = vmatmul.mubr.msk.f32.gmra.mxu1 %vm1184_vm0, %v2544_v59 }
 0x2f4   : > { %7638 = vmatpush3.msra.mxu1 %v7622_v40  ;;  %7653 = vmatprep.mubr.msk.f32.mxu1 %vm1184_vm0, %v2539_v44 }
 0x2f5   : > { %7639 = vmatprep.subr.mxu1 %v2879_v41 }
 0x2f6   : > { %7640 = vmatpush3.msra.mxu1 %v2879_v41 }
 0x2f7   : > { %7641 = vmatprep.subr.mxu1 %v9969_v38 }
 0x2f8   : > { %7642 = vmatpush3.msra.mxu1 %v9969_v38 }
 0x2f9   : > { %7643 = vmatprep.subr.mxu1 %v9975_v39 }
 0x2fa   : > { %7644 = vmatpush3.msra.mxu1 %v9975_v39 }
 0x2fb   : > { %7645 = vmatprep.subr.mxu1 %v9958_v36 }
 0x2fc   : > { %7646 = vmatpush3.msra.mxu1 %v9958_v36 }
 0x2fd   : > { %7647 = vmatprep.subr.mxu1 %v9963_v37 }
 0x2fe   : > { %7648 = vmatpush3.msra.mxu1 %v9963_v37 }
 0x2ff   : > { %7649 = vmatprep.subr.mxu1 %v9948_v34 }
 0x300   : > { %7650 = vmatpush3.msra.mxu1 %v9948_v34 }
 0x301   : > { %7651 = vmatprep.subr.mxu1 %v9953_v35 }
 0x302   : > { %7652 = vmatpush3.msra.mxu1 %v9953_v35 }
 0x303   : > { %7654 = vmatmul.mubr.msk.f32.vlgmr.msra.gmra.mxu1 %vm1184_vm0, %v2540_v46  ;;  %7662 = vmatprep.subr.mxu1 %v3008_v60 }
 0x304   : > { %7656 = vmatprep.mubr.msk.f32.mxu1 %vm1184_vm0, %v2541_v47  ;;  %7663 = vmatpush3.msra.mxu1 %v3008_v60 }
 0x305   : > { %7664 = vmatprep.subr.mxu1 %v3007_v61 }
 0x306   : > { %7665 = vmatpush3.msra.mxu1 %v3007_v61 }
 0x307   : > { %7657 = vmatmul.mubr.msk.f32.gmra.mxu1 %vm1184_vm0, %v2542_v57  ;;  %7666 = vmatprep.subr.mxu1 %v3006_v62 }
 0x308   : > { %7659 = vmatprep.mubr.msk.f32.mxu1 %vm1184_vm0, %v2543_v58  ;;  %7667 = vmatpush3.msra.mxu1 %v3006_v62 }
 0x309   : > { %7668 = vmatprep.subr.mxu1 %v3005_v63 }
 0x30a   : > { %7669 = vmatpush3.msra.mxu1 %v3005_v63 }
 0x30b   : > { %7660 = vmatmul.mubr.msk.f32.gmra.mxu1 %vm1184_vm0, %v2544_v59  ;;  %7670 = vmatprep.subr.mxu1 %v3004_v0 }
 0x30c   : > { %7671 = vmatpush3.msra.mxu1 %v3004_v0 }
 0x30d   : > { %7672 = vmatprep.subr.mxu1 %v3003_v1 }
 0x30e   : > { %7673 = vmatpush3.msra.mxu1 %v3003_v1 }
 0x30f   : > { %7740 = vmatprep.subr.mxu1 %v10082_v30 }
 0x333   : > { %v1832_v2 = vpop.f32.mrf.mxu1 }
 0x334   : > { %v10047_v13 = vmul.f32 %v1832_v2, %v1832_v2 }
 0x335   : > { %v1834_v3 = vpop.f32.mrf.mxu1 }
 0x336   : > { %v10043_v54 = vmul.f32 %v1834_v3, %v1834_v3  ;;  %v10098_v37 = vmul.f32 %v1834_v3, %v1832_v2 }
 0x337   : > { %v1838_v4 = vpop.f32.mrf.mxu1 }
 0x338   : > { %v2389_v16 = vadd.f32 %v10043_v54, %v10047_v13  ;;  %v10055_v17 = vmul.f32 %v1838_v4, %v1838_v4  ;;  %11406 = vst [vmem:[#allocation48_spill] sm:$0xff] %v10098_v37  ;;  %v2364_v62 = vmul.f32 2.0, %v10098_v37 }
 0x339   : > { %v1840_v6 = vpop.f32.mrf.mxu1 }
 0x33a   : > { %v10049_v14 = vmul.f32 %v1840_v6, %v1840_v6  ;;  %v2401_v22 = vadd.f32 %v2389_v16, %v10057_v18  ;;  %v10108_v40 = vmul.f32 %v1840_v6, %v1838_v4 }
 0x33b   : > { %v1844_v7 = vpop.f32.mrf.mxu1 }
 0x33c   : > { %v2390_v20 = vadd.f32 %v10049_v14, %v10055_v17  ;;  %8260 = vrcp.f32 %v2401_v22  ;;  %v10073_v27 = vmul.f32 %v1844_v7, %v1844_v7  ;;  %11407 = vst [vmem:[#allocation49_spill] sm:$0xff] %v10108_v40 }
 0x33d   : > { %v1846_v8 = vpop.f32.mrf.mxu1 }
 0x33e   : > { %v2402_v24 = vadd.f32 %v2390_v20, %v10057_v18  ;;  %v10069_v25 = vmul.f32 %v1846_v8, %v1846_v8  ;;  %v10110_v41 = vmul.f32 %v1846_v8, %v1844_v7  ;;  %v2365_v7 = vmul.f32 2.0, %v10108_v40 }
 0x33f   : > { %v1850_v9 = vpop.f32.mrf.mxu1 }
 0x340   : > { %8262 = vrcp.f32 %v2402_v24  ;;  %v2391_v29 = vadd.f32 %v10069_v25, %v10073_v27  ;;  %v10100_v38 = vmul.f32 %v1850_v9, %v1850_v9  ;;  %11408 = vst [vmem:[#allocation50_spill] sm:$0xff] %v10110_v41  ;;  %v2366_v2 = vmul.f32 2.0, %v10110_v41 }
 0x341   : > { %v1852_v10 = vpop.f32.mrf.mxu1  ;;  %v2377_v41 = vadd.f32 %v10057_v18, %v2364_v62  ;;  %v10186_v37 = vadd.f32 %v10057_v18, %v2365_v7 }
 0x342   : > { %v10090_v33 = vadd.f32 %v2391_v29, %v10057_v18  ;;  %v10092_v34 = vmul.f32 %v1852_v10, %v1852_v10  ;;  %v10120_v45 = vmul.f32 %v1852_v10, %v1850_v9 }
 0x343   : > { %v1856_v11 = vpop.f32.mrf.mxu1 }
 0x344   : > { %v10112_v42 = vmul.f32 %v1856_v11, %v1856_v11  ;;  %11409 = vst [vmem:[#allocation51_spill] sm:$0xff] %v10120_v45  ;;  %8264 = vrcp.f32 %v10090_v33  ;;  %v2392_v46 = vadd.f32 %v10092_v34, %v10100_v38  ;;  %v2367_v10 = vmul.f32 2.0, %v10120_v45 }
 0x345   : > { %v1858_v12 = vpop.f32.mrf.mxu1  ;;  %v10180_v45 = vadd.f32 %v10057_v18, %v2366_v2 }
 0x346   : > { %v10094_v35 = vmul.f32 %v1858_v12, %v1858_v12  ;;  %v10133_v57 = vmul.f32 %v1858_v12, %v1856_v11  ;;  %v10161_v8 = vadd.f32 %v2392_v46, %v10057_v18  ;;  %v10176_v46 = vstv %s10106_s9 }
 0x347   : > { %v10031_v48 = vpop.f32.mrf.mxu1  ;;  %11411 = vst [vmem:[#allocation53_spill] sm:$0xff] %v10180_v45 }
 0x348   : > { %v10127_v47 = vmul.f32 %v10031_v48, %v10031_v48  ;;  %11410 = vst [vmem:[#allocation52_spill] sm:$0xff] %v10133_v57  ;;  %v2393_v58 = vadd.f32 %v10094_v35, %v10112_v42  ;;  %v2368_v12 = vmul.f32 2.0, %v10133_v57  ;;  %8266 = vrcp.f32 %v10161_v8 }
 0x349   : > { %v10033_v49 = vpop.f32.mrf.mxu1  ;;  %v8261_v1 = vpop.eup %8260 }
 0x34a   : > { %v10104_v39 = vmul.f32 %v10033_v49, %v10033_v49  ;;  %v10168_v16 = vadd.f32 %v2393_v58, %v10057_v18  ;;  %v2425_v5 = vmul.f32 %v8261_v1, %v2401_v22  ;;  %v10196_v62 = vadd.f32 %v10057_v18, %v2368_v12 }
 0x34b   : > { %v10035_v50 = vpop.f32.mrf.mxu1 }
 0x34c   : > { %v10139_v59 = vmul.f32 %v10035_v50, %v10035_v50  ;;  %v2394_v63 = vadd.f32 %v10104_v39, %v10127_v47  ;;  %11413 = vst [vmem:[#allocation55_spill] sm:$0xff] %v10196_v62  ;;  %8268 = vrcp.f32 %v10168_v16  ;;  %v2437_v7 = vsub.f32 2.0, %v2425_v5 }
 0x34d   : > { %v10037_v51 = vpop.f32.mrf.mxu1  ;;  %v8263_v11 = vpop.eup %8262 }
 0x34e   : > { %v10116_v43 = vmul.f32 %v10037_v51, %v10037_v51  ;;  %v10173_v30 = vadd.f32 %v2394_v63, %v10057_v18  ;;  %v2426_v40 = vmul.f32 %v8263_v11, %v2402_v24  ;;  %v10193_v63 = vadd.f32 %v10057_v18, %v2367_v10 }
 0x34f   : > { %v10039_v52 = vpop.f32.mrf.mxu1  ;;  %v10213_v10 = vmul.f32 %v10033_v49, %v10031_v48  ;;  %v10217_v12 = vmul.f32 %v10037_v51, %v10035_v50 }
 0x350   : > { %v10150_v0 = vmul.f32 %v10039_v52, %v10039_v52  ;;  %v2395_v3 = vadd.f32 %v10116_v43, %v10139_v59  ;;  %11412 = vst [vmem:[#allocation54_spill] sm:$0xff] %v10193_v63  ;;  %8270 = vrcp.f32 %v10173_v30  ;;  %v2438_v63 = vsub.f32 2.0, %v2426_v40 }
 0x351   : > { %v10041_v53 = vpop.f32.mrf.mxu1  ;;  %v8265_v50 = vpop.eup %8264 }
 0x352   : > { %v10131_v56 = vmul.f32 %v10041_v53, %v10041_v53  ;;  %v10183_v57 = vadd.f32 %v2395_v3, %v10057_v18 }
 0x353   : > { %v10045_v55 = vpop.f32.mrf.mxu1 }
 0x354   : > { %v10157_v4 = vmul.f32 %v10045_v55, %v10045_v55  ;;  %v2396_v9 = vadd.f32 %v10131_v56, %v10150_v0  ;;  %8272 = vrcp.f32 %v10183_v57 }
 0x355   : > { %v10051_v15 = vpop.f32.mrf.mxu1 }
 0x356   : > { %v10143_v60 = vmul.f32 %v10051_v15, %v10051_v15  ;;  %v10190_v22 = vadd.f32 %v2396_v9, %v10057_v18 }
 0x357   : > { %v10059_v19 = vpop.f32.mrf.mxu1 }
 0x358   : > { %v2397_v20 = vadd.f32 %v10143_v60, %v10157_v4  ;;  %8274 = vrcp.f32 %v10190_v22 }
 0x359   : > { %v10063_v21 = vpop.f32.mrf.mxu1 }
 0x35a   : > { %11402 = vst [vmem:[#allocation44_spill] sm:$0xff] %v10063_v21  ;;  %v10200_v2 = vadd.f32 %v2397_v20, %v10057_v18  ;;  %v10204_v3 = vmul.f32 %v10063_v21, %v10063_v21  ;;  %v10222_v20 = vmul.f32 %v10059_v19, %v10059_v19 }
 0x35b   : > { %v10066_v23 = vpop.f32.mrf.mxu1 }
 0x35c   : > { %11403 = vst [vmem:[#allocation45_spill] sm:$0xff] %v10066_v23  ;;  %11414 = vst [vmem:[#allocation56_spill] sm:$0xff] %v10204_v3  ;;  %v10228_v48 = vmul.f32 %v10066_v23, %v10066_v23  ;;  %8276 = vrcp.f32 %v10200_v2  ;;  %v2398_v51 = vadd.f32 %v10204_v3, %v10222_v20  ;;  %v2449_v23 = vmul.f32 %v8261_v1, %v2437_v7 }
 0x35d   : > { %v10071_v26 = vpop.f32.mrf.mxu1  ;;  %11416 = vst [vmem:[#allocation58_spill] sm:$0xff] %v10222_v20 }
 0x35e   : > { %11404 = vst [vmem:[#allocation46_spill] sm:$0xff] %v10071_v26  ;;  %v10209_v9 = vmul.f32 %v10071_v26, %v10071_v26 }
 0x35f   : > { %v10075_v28 = vpop.f32.mrf.mxu1 }
 0x360   : > { %11415 = vst [vmem:[#allocation57_spill] sm:$0xff] %v10209_v9  ;;  %v2399_v45 = vadd.f32 %v10209_v9, %v10228_v48 }
 0x361   : > { %v10084_v31 = vpop.f32.mrf.mxu1 }
 0x363   : > { %v10087_v32 = vpop.f32.mrf.mxu1 }
 0x364   : > { %v2201_v26 = vsub.f32 %v10087_v32, %v10047_v13  ;;  %v10250_v13 = vadd.f32 %v2398_v51, %v10057_v18 }
 0x365   : > { %v10096_v36 = vpop.f32.mrf.mxu1 }
 0x366   : > { %v2213_v49 = vsub.f32 %v10096_v36, %v10043_v54  ;;  %v2369_v36 = vmul.f32 2.0, %v10213_v10  ;;  %8278 = vrcp.f32 %v10250_v13 }
 0x367   : > { %v10118_v44 = vpop.f32.mrf.mxu1 }
 0x368   : > { %v10262_v7 = vadd.f32 %v10057_v18, %v2369_v36  ;;  %v10313_v36 = vmul.f32 %v10051_v15, %v10045_v55 }
 0x369   : > { %v1977_v61 = vpop.f32.mrf.mxu1 }
 0x36a   : > { %v2214_v5 = vsub.f32 %v1977_v61, %v10049_v14  ;;  %v2202_v14 = vsub.f32 %v10118_v44, %v10055_v17  ;;  %v2370_v44 = vmul.f32 2.0, %v10217_v12 }
 0x36b   : > { %v1981_v6 = vpop.f32.mrf.mxu1 }
 0x36c   : > { %v2263_v21 = vadd.f32 %v2214_v5, %v2202_v14  ;;  %v2203_v3 = vsub.f32 %v1981_v6, %v10073_v27  ;;  %v10254_v27 = vadd.f32 %v2399_v45, %v10057_v18  ;;  %v10271_v45 = vadd.f32 %v10057_v18, %v2370_v44 }
 0x36d   : > { %v1983_v29 = vpop.f32.mrf.mxu1  ;;  %v10295_v5 = vmul.f32 %v10084_v31, %v10084_v31 }
 0x36e   : > { %v2215_v40 = vsub.f32 %v1983_v29, %v10069_v25  ;;  %v2427_v25 = vmul.f32 %v8265_v50, %v10090_v33  ;;  %v2262_v29 = vadd.f32 %v2213_v49, %v2201_v26  ;;  %v10259_v26 = vadd.f32 %v2263_v21, %v10176_v46  ;;  %v8267_v21 = vpop.eup %8266 }
 0x36f   : > { %v1987_v58 = vpop.f32.mrf.mxu1  ;;  %8280 = vrcp.f32 %v10254_v27 }
 0x370   : > { %v2204_v9 = vsub.f32 %v1987_v58, %v10100_v38  ;;  %v2264_v32 = vadd.f32 %v2215_v40, %v2203_v3  ;;  %8282 = vrcp.f32 %v10259_v26 }
 0x371   : > { %v1989_v24 = vpop.f32.mrf.mxu1 }
 0x372   : > { %v2216_v54 = vsub.f32 %v1989_v24, %v10092_v34  ;;  %v2450_v24 = vmul.f32 %v8263_v11, %v2438_v63  ;;  %v10268_v11 = vmul.f32 %v2449_v23, %v2377_v41  ;;  %v2439_v63 = vsub.f32 2.0, %v2427_v25 }
 0x373   : > { %v1993_v62 = vpop.f32.mrf.mxu1 }
 0x374   : > { %v2205_v34 = vsub.f32 %v1993_v62, %v10112_v42  ;;  %v10266_v42 = vmul.f32 %v10041_v53, %v10039_v52  ;;  %v10278_v62 = vadd.f32 %v2264_v32, %v10176_v46  ;;  %v10281_v52 = vmul.f32 %v2450_v24, %v10186_v37  ;;  %v10283_v53 = vpop.eup %8268 }
 0x375   : > { %v1995_v61 = vpop.f32.mrf.mxu1  ;;  %v2429_v55 = vmul.f32 %v10283_v53, %v10168_v16 }
 0x376   : > { %v2217_v20 = vsub.f32 %v1995_v61, %v10094_v35  ;;  %v2265_v35 = vadd.f32 %v2216_v54, %v2204_v9  ;;  %v2371_v51 = vmul.f32 2.0, %v10266_v42  ;;  %v2451_v54 = vmul.f32 %v8265_v50, %v2439_v63 }
 0x377   : > { %v1999_v17 = vpop.f32.mrf.mxu1 }
 0x378   : > { %v2206_v6 = vsub.f32 %v1999_v17, %v10127_v47  ;;  %v2266_v38 = vadd.f32 %v2217_v20, %v2205_v34  ;;  %v10274_v47 = vadd.f32 %v2262_v29, %v10176_v46  ;;  %v10287_v23 = vadd.f32 %v2265_v35, %v10176_v46  ;;  %v10291_v20 = vpop.eup %8270 }
 0x379   : > { %v2001_v1 = vpop.f32.mrf.mxu1  ;;  %v10302_v14 = vpop.eup %8272  ;;  %v10317_v17 = vmul.f32 %v10075_v28, %v10075_v28  ;;  %v10332_v34 = vadd.f32 %v10057_v18, %v2371_v51  ;;  %v2430_v24 = vmul.f32 %v10291_v20, %v10173_v30 }
 0x37a   : > { %v2218_v33 = vsub.f32 %v2001_v1, %v10104_v39  ;;  %v10299_v37 = vadd.f32 %v2266_v38, %v10176_v46  ;;  %8284 = vrcp.f32 %v10274_v47  ;;  %v10309_v61 = vpop.eup %8274 }
 0x37b   : > { %v2005_v58 = vpop.f32.mrf.mxu1  ;;  %8286 = vrcp.f32 %v10278_v62  ;;  %v8277_v25 = vpop.eup %8276  ;;  %v2400_v15 = vadd.f32 %v10295_v5, %v10317_v17  ;;  %v2432_v16 = vmul.f32 %v10309_v61, %v10190_v22  ;;  %v11417_v22 = vld [vmem:[#allocation44_spill] sm:$0xff] }
 0x37c   : > { %v2267_v39 = vadd.f32 %v2218_v33, %v2206_v6  ;;  %v2207_v41 = vsub.f32 %v2005_v58, %v10139_v59  ;;  %v2428_v59 = vmul.f32 %v8267_v21, %v10161_v8  ;;  %8288 = vrcp.f32 %v10287_v23 }
 0x37d   : > { %v2007_v3 = vpop.f32.mrf.mxu1  ;;  %8290 = vrcp.f32 %v10299_v37  ;;  %v2433_v35 = vmul.f32 %v8277_v25, %v10200_v2  ;;  %v2372_v33 = vmul.f32 2.0, %v10313_v36  ;;  %v10354_v2 = vmul.f32 %v11417_v22, %v10059_v19 }
 0x37e   : > { %v2219_v9 = vsub.f32 %v2007_v3, %v10116_v43  ;;  %v10307_v43 = vadd.f32 %v2267_v39, %v10176_v46  ;;  %v2440_v1 = vsub.f32 2.0, %v2428_v59  ;;  %v2441_v39 = vsub.f32 2.0, %v2429_v55  ;;  %v11418_v3 = vld [vmem:[#allocation45_spill] sm:$0xff]  ;;  %v10364_v55 = vpop.eup %8278 }
 0x37f   : > { %v2011_v49 = vpop.f32.mrf.mxu1  ;;  %v11420_v59 = vld [vmem:[#allocation53_spill] sm:$0xff]  ;;  %v2385_v19 = vadd.f32 %v10057_v18, %v2372_v33  ;;  %v11423_v33 = vld [vmem:[#allocation54_spill] sm:$0xff]  ;;  %v10384_v22 = vmul.f32 %v10084_v31, %v10075_v28 }
 0x380   : > { %v2268_v40 = vadd.f32 %v2219_v9, %v2207_v41  ;;  %v2208_v29 = vsub.f32 %v2011_v49, %v10150_v0  ;;  %8292 = vrcp.f32 %v10307_v43  ;;  %v11419_v41 = vld [vmem:[#allocation46_spill] sm:$0xff]  ;;  %v2442_v49 = vsub.f32 2.0, %v2430_v24  ;;  %v11424_v31 = vld [vmem:[#allocation57_spill] sm:$0xff] }
 0x381   : > { %v2013_v8 = vpop.f32.mrf.mxu1  ;;  %v10358_v9 = vmul.f32 %v11419_v41, %v11418_v3  ;;  %v2434_v41 = vmul.f32 %v10364_v55, %v10250_v13 }
 0x382   : > { %v10322_v44 = vadd.f32 %v2268_v40, %v10176_v46  ;;  %v2220_v50 = vsub.f32 %v2013_v8, %v10131_v56  ;;  %v2431_v56 = vmul.f32 %v10302_v14, %v10183_v57  ;;  %v10350_v57 = vadd.f32 %v2400_v15, %v10057_v18 }
 0x383   : > { %v2017_v32 = vpop.f32.mrf.mxu1  ;;  %v2444_v8 = vsub.f32 2.0, %v2432_v16 }
 0x384   : > { %v2269_v0 = vadd.f32 %v2220_v50, %v2208_v29  ;;  %8294 = vrcp.f32 %v10322_v44  ;;  %v2209_v30 = vsub.f32 %v2017_v32, %v10157_v4  ;;  %v2452_v4 = vmul.f32 %v8267_v21, %v2440_v1  ;;  %v11421_v32 = vld [vmem:[#allocation58_spill] sm:$0xff] }
 0x385   : > { %v2019_v6 = vpop.f32.mrf.mxu1  ;;  %v2443_v40 = vsub.f32 2.0, %v2431_v56  ;;  %v2445_v29 = vsub.f32 2.0, %v2433_v35  ;;  %v2453_v21 = vmul.f32 %v10283_v53, %v2441_v39  ;;  %v2373_v1 = vmul.f32 2.0, %v10354_v2 }
 0x386   : > { %v10345_v38 = vadd.f32 %v2269_v0, %v10176_v46  ;;  %v2221_v58 = vsub.f32 %v2019_v6, %v10143_v60  ;;  %v10362_v60 = vmul.f32 %v2451_v54, %v11420_v59  ;;  %v11422_v0 = vld [vmem:[#allocation56_spill] sm:$0xff]  ;;  %v2374_v56 = vmul.f32 2.0, %v10358_v9 }
 0x387   : > { %v2023_v63 = vpop.f32.mrf.mxu1  ;;  %v2455_v53 = vmul.f32 %v10302_v14, %v2443_v40  ;;  %v2457_v39 = vmul.f32 %v8277_v25, %v2445_v29  ;;  %v2456_v59 = vmul.f32 %v10309_v61, %v2444_v8  ;;  %v11425_v14 = vld [vmem:[#allocation55_spill] sm:$0xff]  ;;  %v10407_v61 = vadd.f32 %v10057_v18, %v2373_v1 }
 0x388   : > { %8296 = vrcp.f32 %v10345_v38  ;;  %v2270_v51 = vadd.f32 %v2221_v58, %v2209_v30  ;;  %v2210_v24 = vsub.f32 %v2023_v63, %v11421_v32  ;;  %v10372_v30 = vpop.eup %8280  ;;  %v10379_v58 = vmul.f32 %v2452_v4, %v11423_v33 }
 0x389   : > { %v2025_v50 = vpop.f32.mrf.mxu1  ;;  %8298 = vrcp.f32 %v10350_v57  ;;  %v8283_v16 = vpop.eup %8282  ;;  %v2454_v63 = vmul.f32 %v10291_v20, %v2442_v49  ;;  %v10403_v25 = vmul.f32 %v2453_v21, %v11425_v14  ;;  %v10410_v8 = vadd.f32 %v10057_v18, %v2374_v56  ;;  %v11427_v14 = vld [vmem:[#allocation48_spill] sm:$0xff] }
 0x38a   : > { %v10368_v15 = vadd.f32 %v2270_v51, %v10176_v46  ;;  %v2222_v6 = vsub.f32 %v2025_v50, %v11422_v0  ;;  %v10386_v3 = vpop.eup %8284  ;;  %v2299_v13 = vmul.f32 %v8283_v16, %v10259_v26  ;;  %v10424_v26 = vmul.f32 %v2455_v53, %v10271_v45 }
 0x38b   : > { %v2029_v54 = vpop.f32.mrf.mxu1  ;;  %v10392_v50 = vpop.eup %8286  ;;  %v10416_v32 = vmul.f32 %v2454_v63, %v10262_v7  ;;  %v2298_v21 = vmul.f32 %v10386_v3, %v10274_v47  ;;  %v10429_v1 = vmul.f32 %v2456_v59, %v10332_v34  ;;  %v10440_v45 = vmul.f32 %v10372_v30, %v10254_v27 }
 0x38c   : > { %v2271_v35 = vadd.f32 %v2222_v6, %v2210_v24  ;;  %8300 = vrcp.f32 %v10368_v15  ;;  %v2211_v28 = vsub.f32 %v2029_v54, %v10228_v48  ;;  %v10400_v4 = vpop.eup %8288  ;;  %v10419_v24 = vmul.f32 2.0, %v10384_v22 }
 0x38d   : > { %v2031_v51 = vpop.f32.mrf.mxu1  ;;  %v10412_v29 = vpop.eup %8290  ;;  %v2446_v6 = vsub.f32 2.0, %v2434_v41  ;;  %v2311_v53 = vsub.f32 2.0, %v2299_v13  ;;  %v2300_v47 = vmul.f32 %v10392_v50, %v10278_v62  ;;  %v2301_v34 = vmul.f32 %v10400_v4, %v10287_v23  ;;  %v11426_v41 = vld [vmem:[#allocation49_spill] sm:$0xff] }
 0x38e   : > { %v10396_v20 = vadd.f32 %v2271_v35, %v10176_v46  ;;  %v2223_v49 = vsub.f32 %v2031_v51, %v11424_v31  ;;  %v10421_v0 = vpop.eup %8292  ;;  %v10431_v35 = vmul.f32 %v2457_v39, %v2385_v19  ;;  %v2302_v39 = vmul.f32 %v10412_v29, %v10299_v37 }
 0x38f   : > { %v2035_v40 = vpop.f32.mrf.mxu1  ;;  %v2310_v59 = vsub.f32 2.0, %v2298_v21  ;;  %v2303_v27 = vmul.f32 %v10421_v0, %v10307_v43  ;;  %v10454_v31 = vmul.f32 %v10364_v55, %v2446_v6  ;;  %v2313_v21 = vsub.f32 2.0, %v2301_v34 }
 0x390   : > { %8302 = vrcp.f32 %v10396_v20  ;;  %v2272_v48 = vadd.f32 %v2223_v49, %v2211_v28  ;;  %v2212_v33 = vsub.f32 %v2035_v40, %v10317_v17  ;;  %v2447_v40 = vsub.f32 2.0, %v10440_v45 }
 0x391   : > { %v2037_v54 = vpop.f32.mrf.mxu1  ;;  %v8295_v56 = vpop.eup %8294  ;;  %v2315_v6 = vsub.f32 2.0, %v2303_v27 }
 0x392   : > { %v10434_v7 = vadd.f32 %v2272_v48, %v10176_v46  ;;  %v2224_v63 = vsub.f32 %v2037_v54, %v10295_v5  ;;  %v2304_v28 = vmul.f32 %v8295_v56, %v10322_v44  ;;  %v2312_v48 = vsub.f32 2.0, %v2300_v47 }
 0x393   : > { %v7496_v19 = vpop.f32.mrf.mxu1  ;;  %v2323_v54 = vmul.f32 %v8283_v16, %v2311_v53  ;;  %v2314_v44 = vsub.f32 2.0, %v2302_v39 }
 0x394   : > { %8304 = vrcp.f32 %v10434_v7  ;;  %v2273_v17 = vadd.f32 %v2224_v63, %v2212_v33  ;;  %v2226_v5 = vsub.f32 %v7496_v19, %v11426_v41  ;;  %v2316_v63 = vsub.f32 2.0, %v2304_v28  ;;  %v10466_v19 = vld [vmem:[#allocation20] ss:$0 sm:$0xff]  ;;  %v11428_v41 = vld [vmem:[#allocation51_spill] sm:$0xff] }
 0x395   : > { %v8297_v51 = vpop.eup %8296  ;;  %v2106_v62 = vpop.f32.mrf.mxu1  ;;  %v2325_v28 = vmul.f32 %v10400_v4, %v2313_v21 }
 0x396   : > { %v2305_v23 = vmul.f32 %v8297_v51, %v10345_v38  ;;  %v10458_v37 = vadd.f32 %v2273_v17, %v10176_v46  ;;  %v2238_v49 = vmul.f32 2.0, %v2226_v5  ;;  %v2225_v13 = vsub.f32 %v2106_v62, %v11427_v14  ;;  %v10462_v33 = vpop.eup %8298  ;;  %v11429_v62 = vld [vmem:[#allocation50_spill] sm:$0xff] }
 0x397   : > { %v7499_v43 = vpop.f32.mrf.mxu1  ;;  %v2322_v17 = vmul.f32 %v10386_v3, %v2310_v59  ;;  %v2324_v3 = vmul.f32 %v10392_v50, %v2312_v48 }
 0x398   : > { %8306 = vrcp.f32 %v10458_v37  ;;  %v2251_v55 = vadd.f32 %v10176_v46, %v2238_v49  ;;  %v2237_v38 = vmul.f32 2.0, %v2225_v13  ;;  %v2228_v5 = vsub.f32 %v7499_v43, %v11428_v41 }
 0x399   : > { %v2116_v47 = vpop.f32.mrf.mxu1  ;;  %v2317_v34 = vsub.f32 2.0, %v2305_v23  ;;  %v10472_v14 = vpop.eup %8300  ;;  %v10476_v49 = vmul.f32 %v10462_v33, %v10350_v57  ;;  %v2326_v43 = vmul.f32 %v10412_v29, %v2314_v44  ;;  %v2327_v57 = vmul.f32 %v10421_v0, %v2315_v6 }
 0x39a   : > { %v2335_v16 = vmul.f32 %v2323_v54, %v2251_v55  ;;  %v2250_v53 = vadd.f32 %v10176_v46, %v2237_v38  ;;  %v2227_v39 = vsub.f32 %v2116_v47, %v11429_v62  ;;  %v2240_v27 = vmul.f32 2.0, %v2228_v5 }
 0x39b   : > { %v7502_v59 = vpop.f32.mrf.mxu1  ;;  %v2328_v5 = vmul.f32 %v8295_v56, %v2316_v63  ;;  %v10487_v4 = vmul.f32 %v10472_v14, %v10368_v15  ;;  %v2329_v21 = vmul.f32 %v8297_v51, %v2317_v34 }
 0x39c   : > { %v2353_v13 = vmul.f32 %v10466_v19, %v2335_v16  ;;  %v2334_v23 = vmul.f32 %v2322_v17, %v2250_v53  ;;  %v2239_v54 = vmul.f32 2.0, %v2227_v39  ;;  %v2253_v38 = vadd.f32 %v10176_v46, %v2240_v27  ;;  %v11430_v16 = vld [vmem:[#allocation52_spill] sm:$0xff] }
 0x39d   : > { %v8303_v55 = vpop.eup %8302  ;;  %v2230_v41 = vsub.f32 %v7502_v59, %v10213_v10  ;;  %v2126_v47 = vpop.f32.mrf.mxu1 }
 0x39e   : > { %v2352_v50 = vmul.f32 %v10466_v19, %v2334_v23  ;;  %v2252_v48 = vadd.f32 %v10176_v46, %v2239_v54  ;;  %v2307_v29 = vmul.f32 %v8303_v55, %v10396_v20  ;;  %v2337_v44 = vmul.f32 %v2325_v28, %v2253_v38 }
 0x39f   : > { %v2242_v17 = vmul.f32 2.0, %v2230_v41  ;;  %v2229_v53 = vsub.f32 %v2126_v47, %v11430_v16  ;;  %v7505_v10 = vpop.f32.mrf.mxu1  ;;  %v2474_v0 = vmul.f32 %v10281_v52, %v2353_v13 }
 0x3a0   : > { %v2473_v56 = vmul.f32 %v10268_v11, %v2352_v50  ;;  %v2506_v6 = vadd.f32 %v2353_v13, %v2352_v50  ;;  %v2336_v63 = vmul.f32 %v2324_v3, %v2252_v48  ;;  %v2355_v62 = vmul.f32 %v10466_v19, %v2337_v44 }
 0x3a1   : > { %v10495_v15 = vpop.eup %8304  ;;  %v2255_v39 = vadd.f32 %v10176_v46, %v2242_v17  ;;  %v2241_v51 = vmul.f32 2.0, %v2229_v53  ;;  %v2232_v20 = vsub.f32 %v7505_v10, %v10266_v42  ;;  %v2136_v34 = vpop.f32.mrf.mxu1  ;;  %v2318_v3 = vsub.f32 2.0, %v10487_v4 }
 0x3a2   : > { %v2308_v27 = vmul.f32 %v10495_v15, %v10434_v7  ;;  %v2485_v28 = vadd.f32 %v2474_v0, %v2473_v56  ;;  %v2354_v52 = vmul.f32 %v10466_v19, %v2336_v63  ;;  %v2231_v11 = vsub.f32 %v2136_v34, %v10217_v12 }
 0x3a3   : > { %v2339_v59 = vmul.f32 %v2327_v57, %v2255_v39  ;;  %v2254_v13 = vadd.f32 %v10176_v46, %v2241_v51  ;;  %v2244_v23 = vmul.f32 2.0, %v2232_v20  ;;  %v7508_v54 = vpop.f32.mrf.mxu1  ;;  %v2319_v38 = vsub.f32 2.0, %v2307_v29 }
 0x3a4   : > { %v2475_v42 = vmul.f32 %v10362_v60, %v2354_v52  ;;  %v2507_v41 = vadd.f32 %v2506_v6, %v2354_v52  ;;  %v2243_v47 = vmul.f32 2.0, %v2231_v11  ;;  %v2476_v7 = vmul.f32 %v10379_v58, %v2355_v62 }
 0x3a5   : > { %v8307_v50 = vpop.eup %8306  ;;  %v2338_v48 = vmul.f32 %v2326_v43, %v2254_v13  ;;  %v2257_v44 = vadd.f32 %v10176_v46, %v2244_v23  ;;  %v2234_v12 = vsub.f32 %v7508_v54, %v10354_v2  ;;  %v2146_v4 = vpop.f32.mrf.mxu1  ;;  %v2320_v57 = vsub.f32 2.0, %v2308_v27 }
 0x3a6   : > { %v2486_v17 = vadd.f32 %v2485_v28, %v2475_v42  ;;  %v2508_v16 = vadd.f32 %v2507_v41, %v2355_v62  ;;  %v2256_v53 = vadd.f32 %v10176_v46, %v2243_v47  ;;  %v2309_v29 = vmul.f32 %v8307_v50, %v10458_v37 }
 0x3a7   : > { %v2357_v60 = vmul.f32 %v10466_v19, %v2339_v59  ;;  %v2356_v10 = vmul.f32 %v10466_v19, %v2338_v48  ;;  %v2246_v0 = vmul.f32 2.0, %v2234_v12  ;;  %v7511_v56 = vpop.f32.mrf.mxu1  ;;  %v2341_v43 = vmul.f32 %v2329_v21, %v2257_v44  ;;  %v11431_v12 = vld [vmem:[#allocation47_spill] sm:$0xff] }
 0x3a8   : > { %v2487_v58 = vadd.f32 %v2486_v17, %v2476_v7  ;;  %v2340_v6 = vmul.f32 %v2328_v5, %v2256_v53  ;;  %v2233_v63 = vsub.f32 %v2146_v4, %v10313_v36  ;;  %v2331_v51 = vmul.f32 %v8303_v55, %v2319_v38 }
 0x3a9   : > { %v2477_v2 = vmul.f32 %v10403_v25, %v2356_v10  ;;  %v2509_v39 = vadd.f32 %v2508_v16, %v2356_v10  ;;  %v2259_v62 = vadd.f32 %v10176_v46, %v2246_v0  ;;  %v2156_v20 = vpop.f32.mrf.mxu1  ;;  %v2236_v27 = vsub.f32 %v7511_v56, %v10384_v22  ;;  %v10584_v56 = vld [vmem:[%s11314_s19 + $0x8] sm:$0xff] }
 0x3aa   : > { %v2358_v37 = vmul.f32 %v10466_v19, %v2340_v6  ;;  %v2245_v34 = vmul.f32 2.0, %v2233_v63  ;;  %v2235_v28 = vsub.f32 %v2156_v20, %v10358_v9  ;;  %v2478_v52 = vmul.f32 %v10416_v32, %v2357_v60 }
 0x3ab   : > { %v2488_v21 = vadd.f32 %v2487_v58, %v2477_v2  ;;  %v2330_v5 = vmul.f32 %v10472_v14, %v2318_v3  ;;  %v10522_v36 = vpop.f32.mrf.mxu1  ;;  %v2459_v25 = vmul.f32 %v10372_v30, %v2447_v40  ;;  %v2343_v55 = vmul.f32 %v2331_v51, %v2259_v62  ;;  %v10540_v40 = vld [vmem:[%s11314_s19 + $0x20] sm:$0xff] }
 0x3ac   : > { %v2258_v11 = vadd.f32 %v10176_v46, %v2245_v34  ;;  %v2248_v59 = vmul.f32 2.0, %v2236_v27  ;;  %v2247_v13 = vmul.f32 2.0, %v2235_v28  ;;  %v2359_v22 = vmul.f32 %v10466_v19, %v2341_v43 }
 0x3ad   : > { %v2479_v9 = vmul.f32 %v10424_v26, %v2358_v37  ;;  %v10530_v23 = vpop.f32.mrf.mxu1  ;;  %v2321_v32 = vsub.f32 2.0, %v2309_v29  ;;  %v2510_v54 = vadd.f32 %v2509_v39, %v2357_v60  ;;  %v2332_v30 = vmul.f32 %v10495_v15, %v2320_v57 }
 0x3ae   : > { %v2342_v14 = vmul.f32 %v2330_v5, %v2258_v11  ;;  %v2261_v3 = vadd.f32 %v10176_v46, %v2248_v59  ;;  %v2260_v45 = vadd.f32 %v10176_v46, %v2247_v13  ;;  %7674 = vmatprep.mubr.msk.f32.mxu1 %vm3034_vm1, %v10530_v23  ;;  %v2448_v41 = vsub.f32 2.0, %v10476_v49 }
 0x3af   : > { %7675 = vmatmul.mubr.msk.f32.vlgmr.msra.gmra.mxu1 %vm3034_vm1, %v10522_v36  ;;  %v2333_v26 = vmul.f32 %v8307_v50, %v2321_v32  ;;  %v2511_v38 = vadd.f32 %v2510_v54, %v2358_v37  ;;  %v10544_v42 = vpop.f32.mrf.mxu1  ;;  %v2489_v47 = vadd.f32 %v2488_v21, %v2478_v52  ;;  %v2470_v15 = vmul.f32 %v10454_v31, %v10407_v61  ;;  %v10555_v50 = vld [vmem:[%s11314_s19 + $0x18] sm:$0xff] }
 0x3b0   : > { %v2344_v7 = vmul.f32 %v2332_v30, %v2260_v45  ;;  %v2360_v48 = vmul.f32 %v10466_v19, %v2342_v14  ;;  %v2361_v44 = vmul.f32 %v10466_v19, %v2343_v55  ;;  %7741 = vmatpush3.msra.mxu1 %v11431_v12  ;;  %v2480_v4 = vmul.f32 %v10429_v1, %v2359_v22  ;;  %v10570_v1 = vld [vmem:[%s11314_s19 + $0x10] sm:$0xff] }
 0x3b1   : > { %v2345_v57 = vmul.f32 %v2333_v26, %v2261_v3  ;;  %v2512_v49 = vadd.f32 %v2511_v38, %v2359_v22  ;;  %v10558_v17 = vpop.f32.mrf.mxu1  ;;  %v2490_v16 = vadd.f32 %v2489_v47, %v2479_v9  ;;  %7742 = vmatprep.subr.mxu1 %v10540_v40  ;;  %v2471_v31 = vmul.f32 %v2459_v25, %v10410_v8 }
 0x3b2   : > { %v2362_v61 = vmul.f32 %v10466_v19, %v2344_v7  ;;  %v2481_v53 = vmul.f32 %v10431_v35, %v2360_v48  ;;  %7677 = vmatprep.mubr.msk.f32.mxu1 %vm3034_vm1, %v10558_v17  ;;  %7743 = vmatpush3.msra.mxu1 %v10540_v40  ;;  %v2460_v60 = vmul.f32 %v10462_v33, %v2448_v41 }
 0x3b3   : > { %v2513_v29 = vadd.f32 %v2512_v49, %v2360_v48  ;;  %v2491_v10 = vadd.f32 %v2490_v16, %v2480_v4  ;;  %v10573_v0 = vpop.f32.mrf.mxu1  ;;  %7678 = vmatmul.mubr.msk.f32.gmra.mxu1 %vm3034_vm1, %v10544_v42  ;;  %7744 = vmatprep.subr.mxu1 %v10555_v50  ;;  %v2388_v8 = vadd.f32 %v10057_v18, %v10419_v24  ;;  %v10596_v24 = vld [vmem:[%s11314_s19] sm:$0xff] }
 0x3b4   : > { %v2482_v35 = vmul.f32 %v2470_v15, %v2361_v44  ;;  %7745 = vmatpush3.msra.mxu1 %v10555_v50  ;;  %v2363_v33 = vmul.f32 %v10466_v19, %v2345_v57  ;;  %v2483_v43 = vmul.f32 %v2471_v31, %v2362_v61  ;;  %v3016_v25 = vmul.f32 %v10530_v23, %v10530_v23 }
 0x3b5   : > { %v2514_v58 = vadd.f32 %v2513_v29, %v2361_v44  ;;  %v2492_v6 = vadd.f32 %v2491_v10, %v2481_v53  ;;  %v10587_v63 = vpop.f32.mrf.mxu1  ;;  %7746 = vmatprep.subr.mxu1 %v10570_v1  ;;  %v2472_v39 = vmul.f32 %v2460_v60, %v2388_v8  ;;  %v3017_v55 = vmul.f32 %v10522_v36, %v10522_v36 }
 0x3b6   : > { %7680 = vmatprep.mubr.msk.f32.mxu1 %vm3034_vm1, %v10587_v63  ;;  %7747 = vmatpush3.msra.mxu1 %v10570_v1  ;;  %v3018_v11 = vmul.f32 %v10558_v17, %v10558_v17  ;;  %v3019_v59 = vmul.f32 %v10544_v42, %v10544_v42  ;;  %v3020_v13 = vmul.f32 %v10587_v63, %v10587_v63 }
 0x3b7   : > { %v2515_v2 = vadd.f32 %v2514_v58, %v2362_v61  ;;  %v2493_v19 = vadd.f32 %v2492_v6, %v2482_v35  ;;  %7681 = vmatmul.mubr.msk.f32.gmra.mxu1 %vm3034_vm1, %v10573_v0  ;;  %7748 = vmatprep.subr.mxu1 %v10584_v56  ;;  %v2484_v51 = vmul.f32 %v2472_v39, %v2363_v33 }
 0x3b8   : > { %7749 = vmatpush3.msra.mxu1 %v10584_v56  ;;  %v3021_v22 = vmul.f32 %v10573_v0, %v10573_v0 }
 0x3b9   : > { %v2516_v62 = vadd.f32 %v2515_v2, %v2363_v33  ;;  %v2494_v20 = vadd.f32 %v2493_v19, %v2483_v43  ;;  %7750 = vmatprep.subr.mxu1 %v10596_v24  ;;  %v10707_v2 = vld [vmem:[#allocation14] sm:$0xff] }
 0x3ba   : > { %7751 = vmatpush3.msra.mxu1 %v10596_v24 }
 0x3bb   : > { %2517 = vadd.xlane.f32.xlu0 %v2516_v62  ;;  %v2495_v37 = vadd.f32 %v2494_v20, %v2484_v51  ;;  %7782 = vmatprep.subr.mxu1 %v11431_v12  ;;  %v10712_v62 = vld [vmem:[#allocation14 + $0x8] sm:$0xff] }
 0x3bf   : > { %2496 = vadd.xlane.f32.xlu0 %v2495_v37  ;;  %v10717_v37 = vld [vmem:[#allocation14 + $0x10] sm:$0xff] }
 0x3c3   : > { %v10605_v34 = vpop.f32.mrf.mxu1 }
 0x3c4   : > { %v3023_v32 = vmul.f32 %v10605_v34, %v10605_v34  ;;  %v3029_v26 = vmul.f32 %v10605_v34, %v10522_v36 }
 0x3c5   : > { %v2974_v27 = vpop.f32.mrf.mxu1 }
 0x3c6   : > { %7683 = vmatprep.mubr.msk.f32.mxu1 %vm3034_vm1, %v2974_v27  ;;  %v3022_v9 = vmul.f32 %v2974_v27, %v2974_v27  ;;  %v3028_v30 = vmul.f32 %v2974_v27, %v10530_v23 }
 0x3c7   : > { %v10608_v28 = vpop.f32.mrf.mxu1  ;;  %7684 = vmatmul.mubr.msk.f32.gmra.mxu1 %vm3034_vm1, %v10605_v34 }
 0x3c8   : > { %v3025_v14 = vmul.f32 %v10608_v28, %v10608_v28  ;;  %v3031_v41 = vmul.f32 %v10608_v28, %v10544_v42 }
 0x3c9   : > { %v10612_v52 = vpop.f32.mrf.mxu1 }
 0x3ca   : > { %7686 = vmatprep.mubr.msk.f32.mxu1 %vm3034_vm1, %v10612_v52  ;;  %v3024_v54 = vmul.f32 %v10612_v52, %v10612_v52  ;;  %v3030_v38 = vmul.f32 %v10612_v52, %v10558_v17 }
 0x3cb   : > { %v10616_v21 = vpop.f32.mrf.mxu1  ;;  %7687 = vmatmul.mubr.msk.f32.gmra.mxu1 %vm3034_vm1, %v10608_v28 }
 0x3cc   : > { %v3027_v45 = vmul.f32 %v10616_v21, %v10616_v21  ;;  %v3033_v15 = vmul.f32 %v10616_v21, %v10573_v0 }
 0x3cd   : > { %v2994_v5 = vpop.f32.mrf.mxu1 }
 0x3ce   : > { %7689 = vmatprep.mubr.msk.f32.mxu1 %vm3034_vm1, %v2994_v5  ;;  %v3026_v3 = vmul.f32 %v2994_v5, %v2994_v5  ;;  %v3032_v47 = vmul.f32 %v2994_v5, %v10587_v63 }
 0x3cf   : > { %7690 = vmatmul.mubr.msk.f32.gmra.mxu1 %vm3034_vm1, %v10616_v21 }
 0x3d0   : > { %7692 = vmatprep.mubr.msk.f32.mxu1 %vm3034_vm1, %v3016_v25 }
 0x3d3   : > { %7693 = vmatmul.mubr.msk.f32.gmra.mxu1 %vm3034_vm1, %v3017_v55 }
 0x3d4   : > { %7695 = vmatprep.mubr.msk.f32.mxu1 %vm3034_vm1, %v3018_v11  ;;  %v3014_v11 = vld [vmem:[#allocation14 + $0x28] sm:$0xff] }
 0x3d7   : > { %7696 = vmatmul.mubr.msk.f32.gmra.mxu1 %vm3034_vm1, %v3019_v59 }
 0x3d8   : > { %7698 = vmatprep.mubr.msk.f32.mxu1 %vm3034_vm1, %v3020_v13 }
 0x3db   : > { %7699 = vmatmul.mubr.msk.f32.gmra.mxu1 %vm3034_vm1, %v3021_v22 }
 0x3dc   : > { %7701 = vmatprep.mubr.msk.f32.mxu1 %vm3034_vm1, %v3022_v9 }
 0x3df   : > { %7702 = vmatmul.mubr.msk.f32.gmra.mxu1 %vm3034_vm1, %v3023_v32 }
 0x3e0   : > { %7704 = vmatprep.mubr.msk.f32.mxu1 %vm3034_vm1, %v3024_v54 }
 0x3e3   : > { %7705 = vmatmul.mubr.msk.f32.gmra.mxu1 %vm3034_vm1, %v3025_v14 }
 0x3e4   : > { %7707 = vmatprep.mubr.msk.f32.mxu1 %vm3034_vm1, %v3026_v3 }
 0x3e7   : > { %7708 = vmatmul.mubr.msk.f32.gmra.mxu1 %vm3034_vm1, %v3027_v45 }
 0x3e8   : > { %7710 = vmatprep.mubr.msk.f32.mxu1 %vm3034_vm1, %v3028_v30 }
 0x3eb   : > { %7711 = vmatmul.mubr.msk.f32.gmra.mxu1 %vm3034_vm1, %v3029_v26 }
 0x3ec   : > { %7713 = vmatprep.mubr.msk.f32.mxu1 %vm3034_vm1, %v3030_v38 }
 0x3ef   : > { %7714 = vmatmul.mubr.msk.f32.gmra.mxu1 %vm3034_vm1, %v3031_v41 }
 0x3f0   : > { %7716 = vmatprep.mubr.msk.f32.mxu1 %vm3034_vm1, %v3032_v47 }
 0x3f3   : > { %7717 = vmatmul.mubr.msk.f32.gmra.mxu1 %vm3034_vm1, %v3033_v15  ;;  %v3853_v15 = vld [vmem:[#allocation29] sm:$0xff] }
 0x3f4   : > { %7752 = vmatprep.mubr.msk.f32.mxu1 %vm3034_vm1, %v10530_v23 }
 0x3f7   : > { %7753 = vmatmul.mubr.msk.f32.vlgmr.msra.gmra.mxu1 %vm3034_vm1, %v10522_v36  ;;  %v11432_v36 = vmov 0.0  }
 0x3f8   : > { %7755 = vmatprep.mubr.msk.f32.mxu1 %vm3034_vm1, %v10558_v17  ;;  %7783 = vmatpush3.msra.mxu1 %v11431_v12 }
 0x3f9   : > { %7784 = vmatprep.subr.mxu1 %v10540_v40 }
 0x3fa   : > { %7785 = vmatpush3.msra.mxu1 %v10540_v40 }
 0x3fb   : > { %7756 = vmatmul.mubr.msk.f32.gmra.mxu1 %vm3034_vm1, %v10544_v42  ;;  %7786 = vmatprep.subr.mxu1 %v10555_v50 }
 0x3fc   : > { %7758 = vmatprep.mubr.msk.f32.mxu1 %vm3034_vm1, %v10587_v63  ;;  %7787 = vmatpush3.msra.mxu1 %v10555_v50 }
 0x3fd   : > { %7788 = vmatprep.subr.mxu1 %v10570_v1 }
 0x3fe   : > { %7789 = vmatpush3.msra.mxu1 %v10570_v1 }
 0x3ff   : > { %7759 = vmatmul.mubr.msk.f32.gmra.mxu1 %vm3034_vm1, %v10573_v0  ;;  %7790 = vmatprep.subr.mxu1 %v10584_v56 }
 0x400   : > { %7791 = vmatpush3.msra.mxu1 %v10584_v56  ;;  %7794 = vmatprep.mubr.msk.f32.mxu1 %vm3034_vm1, %v2974_v27 }
 0x401   : > { %7792 = vmatprep.subr.mxu1 %v10596_v24 }
 0x402   : > { %7793 = vmatpush3.msra.mxu1 %v10596_v24 }
 0x403   : > { %7795 = vmatmul.mubr.msk.f32.vlgmr.msra.gmra.mxu1 %vm3034_vm1, %v10605_v34  ;;  %7824 = vmatprep.subr.mxu1 %v11432_v36 }
 0x404   : > { %7797 = vmatprep.mubr.msk.f32.mxu1 %vm3034_vm1, %v10612_v52 }
 0x407   : > { %7798 = vmatmul.mubr.msk.f32.gmra.mxu1 %vm3034_vm1, %v10608_v28  ;;  %v10722_v28 = vld [vmem:[#allocation14 + $0x18] sm:$0xff] }
 0x408   : > { %7800 = vmatprep.mubr.msk.f32.mxu1 %vm3034_vm1, %v2994_v5  ;;  %v10727_v5 = vld [vmem:[#allocation14 + $0x20] sm:$0xff] }
 0x40b   : > { %7801 = vmatmul.mubr.msk.f32.gmra.mxu1 %vm3034_vm1, %v10616_v21 }
 0x40c   : > { %7830 = vmatprep.mubr.msk.f32.mxu1 %vm8970_vm2, %v11432_v36 }
 0x444   : > { %v2518_v23 = vpop.xlane.xlu0 %2517 }
 0x445   : > { %v2519_v40 = vrot.slane %v2518_v23, 4 }
 0x447   : > { %v2520_v42 = vadd.f32 %v2519_v40, %v2518_v23  ;;  %v3854_v40 = vld [vmem:[#allocation29 + $0x8] sm:$0xff] }
 0x448   : > { %v2497_v7 = vpop.xlane.xlu0 %2496 }
 0x449   : > { %v2521_v48 = vrot.slane %v2520_v42, 2  ;;  %v2498_v44 = vrot.slane %v2497_v7, 4 }
 0x44b   : > { %v2499_v12 = vadd.f32 %v2498_v44, %v2497_v7  ;;  %v2522_v50 = vadd.f32 %v2521_v48, %v2520_v42  ;;  %v3855_v7 = vld [vmem:[#allocation29 + $0x10] sm:$0xff]  ;;  %v4217_v48 = vld [vmem:[#allocation9 + $0x10] sm:$0xff] }
 0x44c   : > { %7825 = vmatpush3.msra.mxu1 %v4217_v48  ;;  %v4216_v44 = vld [vmem:[#allocation9 + $0x8] sm:$0xff] }
 0x44d   : > { %v2500_v4 = vrot.slane %v2499_v12, 2  ;;  %v2523_v49 = vrot.slane %v2522_v50, 1  ;;  %7826 = vmatprep.subr.mxu1 %v11432_v36 }
 0x44e   : > { %7827 = vmatpush3.msra.mxu1 %v4216_v44 }
 0x44f   : > { %v2501_v57 = vadd.f32 %v2500_v4, %v2499_v12  ;;  %v2524_v61 = vadd.f32 %v2523_v49, %v2522_v50  ;;  %7828 = vmatprep.subr.mxu1 %v11432_v36  ;;  %v4215_v12 = vld [vmem:[#allocation9] sm:$0xff] }
 0x450   : > { %7829 = vmatpush3.msra.mxu1 %v4215_v12 }
 0x451   : > { %v2502_v17 = vrot.slane %v2501_v57, 1  ;;  %7914 = vmatprep.subr.mxu1 %v11432_v36 }
 0x453   : > { %v2503_v16 = vadd.f32 %v2502_v17, %v2501_v57 }
 0x455   : > { %8006 = vpush %v2503_v16 }
 0x456   : > { %8008 = vpush %v2524_v61 }
 0x46f   : > { %v7676_v31 = vpop.f32.mrf.mxu1 }
 0x471   : > { %v3191_v53 = vpop.f32.mrf.mxu1 }
 0x473   : > { %v7679_v1 = vpop.f32.mrf.mxu1 }
 0x475   : > { %v3201_v29 = vpop.f32.mrf.mxu1 }
 0x477   : > { %v7682_v60 = vpop.f32.mrf.mxu1 }
 0x479   : > { %v3211_v10 = vpop.f32.mrf.mxu1 }
 0x486   : > { %s8007_s4 = spop %8006 }
 0x487   : > { %v7685_v0 = vpop.f32.mrf.mxu1  ;;  %s2505_s2 = smul.f32 0.000108506945, %s8007_s4  ;;  %s8009_s9 = spop %8008 }
 0x488   : > { %s2526_s28 = smul.f32 0.000108506945, %s8009_s9 }
 0x489   : > { %v3221_v8 = vpop.f32.mrf.mxu1 }
 0x48b   : > { %v7688_v35 = vpop.f32.mrf.mxu1 }
 0x48d   : > { %v3231_v56 = vpop.f32.mrf.mxu1 }
 0x48f   : > { %v7691_v33 = vpop.f32.mrf.mxu1 }
 0x490   : > { %3378 = vmatprep.subr.mxu0 %v7691_v33 }
 0x491   : > { %v3241_v58 = vpop.f32.mrf.mxu1  ;;  %3379 = vmatpush1.msra.mxu0 %v7682_v60 }
 0x492   : > { %3380 = vmatprep.subr.mxu0 %v3241_v58 }
 0x493   : > { %v7694_v43 = vpop.f32.mrf.mxu1  ;;  %3381 = vmatpush1.msra.mxu0 %v3211_v10 }
 0x494   : > { %3382 = vmatprep.subr.mxu0 %v7688_v35 }
 0x495   : > { %v3251_v6 = vpop.f32.mrf.mxu1  ;;  %3383 = vmatpush1.msra.mxu0 %v7679_v1 }
 0x496   : > { %3384 = vmatprep.subr.mxu0 %v3231_v56 }
 0x497   : > { %v7697_v63 = vpop.f32.mrf.mxu1  ;;  %3385 = vmatpush1.msra.mxu0 %v3201_v29 }
 0x498   : > { %3386 = vmatprep.subr.mxu0 %v7685_v0 }
 0x499   : > { %v3261_v24 = vpop.f32.mrf.mxu1  ;;  %3387 = vmatpush1.msra.mxu0 %v7676_v31 }
 0x49a   : > { %3388 = vmatprep.subr.mxu0 %v3221_v8 }
 0x49b   : > { %v7700_v39 = vpop.f32.mrf.mxu1  ;;  %3389 = vmatpush1.msra.mxu0 %v3191_v53 }
 0x49c   : > { %6882 = vmatmul.mubr.msk.f32.vlgmr.msra.gmra.mxu0 %vm3034_vm1, %v10707_v2 }
 0x49d   : > { %v3271_v19 = vpop.f32.mrf.mxu1  ;;  %3428 = vmatprep.mubr.f32.mxu0 %v11432_v36 }
 0x49f   : > { %v7703_v51 = vpop.f32.mrf.mxu1 }
 0x4a0   : > { %6883 = vmatmul.mubr.msk.f32.gmra.mxu0 %vm3034_vm1, %v10712_v62 }
 0x4a1   : > { %v3281_v20 = vpop.f32.mrf.mxu1  ;;  %3434 = vmatprep.mubr.f32.mxu0 %v11432_v36 }
 0x4a3   : > { %v7706_v34 = vpop.f32.mrf.mxu1 }
 0x4a4   : > { %6884 = vmatmul.mubr.msk.f32.gmra.mxu0 %vm3034_vm1, %v10717_v37 }
 0x4a5   : > { %v3291_v27 = vpop.f32.mrf.mxu1  ;;  %3440 = vmatprep.mubr.f32.mxu0 %v11432_v36 }
 0x4a7   : > { %v7709_v52 = vpop.f32.mrf.mxu1 }
 0x4a8   : > { %6885 = vmatmul.mubr.msk.f32.gmra.mxu0 %vm3034_vm1, %v10722_v28  ;;  %3479 = vmatprep.subr.mxu0 %v7709_v52 }
 0x4a9   : > { %v3301_v21 = vpop.f32.mrf.mxu1  ;;  %3480 = vmatpush1.msra.mxu0 %v7700_v39  ;;  %3446 = vmatprep.mubr.f32.mxu0 %v11432_v36 }
 0x4aa   : > { %3481 = vmatprep.subr.mxu0 %v3301_v21 }
 0x4ab   : > { %v7712_v25 = vpop.f32.mrf.mxu1  ;;  %3482 = vmatpush1.msra.mxu0 %v3271_v19 }
 0x4ac   : > { %6886 = vmatmul.mubr.msk.f32.gmra.mxu0 %vm3034_vm1, %v10727_v5  ;;  %3483 = vmatprep.subr.mxu0 %v7706_v34 }
 0x4ad   : > { %v3311_v55 = vpop.f32.mrf.mxu1  ;;  %3484 = vmatpush1.msra.mxu0 %v7697_v63  ;;  %3452 = vmatprep.mubr.f32.mxu0 %v11432_v36 }
 0x4ae   : > { %3485 = vmatprep.subr.mxu0 %v3291_v27 }
 0x4af   : > { %v7715_v59 = vpop.f32.mrf.mxu1  ;;  %3486 = vmatpush1.msra.mxu0 %v3261_v24 }
 0x4b0   : > { %6887 = vmatmul.mubr.msk.f32.gmra.mxu0 %vm3034_vm1, %v3014_v11  ;;  %3487 = vmatprep.subr.mxu0 %v7703_v51 }
 0x4b1   : > { %v3321_v13 = vpop.f32.mrf.mxu1  ;;  %3488 = vmatpush1.msra.mxu0 %v7694_v43  ;;  %3523 = vmatprep.mubr.f32.mxu0 %v11432_v36 }
 0x4b2   : > { %3489 = vmatprep.subr.mxu0 %v3281_v20 }
 0x4b3   : > { %v7718_v22 = vpop.f32.mrf.mxu1  ;;  %3490 = vmatpush1.msra.mxu0 %v3251_v6 }
 0x4b4   : > { %6888 = vmatmul.mubr.msk.f32.vlgmr.msra.gmra.mxu0 %vm3034_vm1, %v10707_v2  ;;  %7719 = vmatprep.subr.mxu0 %v7718_v22 }
 0x4b5   : > { %v3331_v9 = vpop.f32.mrf.mxu1  ;;  %7720 = vmatpush3.msra.mxu0 %v7718_v22  ;;  %3529 = vmatprep.mubr.f32.mxu0 %v11432_v36 }
 0x4b6   : > { %7721 = vmatprep.subr.mxu0 %v3331_v9 }
 0x4b7   : > { %7722 = vmatpush3.msra.mxu0 %v3331_v9  ;;  %v7754_v32 = vpop.f32.mrf.mxu1 }
 0x4b8   : > { %6889 = vmatmul.mubr.msk.f32.gmra.mxu0 %vm3034_vm1, %v10712_v62  ;;  %7723 = vmatprep.subr.mxu0 %v7715_v59 }
 0x4b9   : > { %7724 = vmatpush3.msra.mxu0 %v7715_v59  ;;  %v3922_v54 = vpop.f32.mrf.mxu1  ;;  %3535 = vmatprep.mubr.f32.mxu0 %v11432_v36 }
 0x4ba   : > { %7725 = vmatprep.subr.mxu0 %v3321_v13 }
 0x4bb   : > { %7726 = vmatpush3.msra.mxu0 %v3321_v13  ;;  %v7757_v14 = vpop.f32.mrf.mxu1 }
 0x4bc   : > { %6890 = vmatmul.mubr.msk.f32.gmra.mxu0 %vm3034_vm1, %v10717_v37  ;;  %7727 = vmatprep.subr.mxu0 %v7712_v25 }
 0x4bd   : > { %7728 = vmatpush3.msra.mxu0 %v7712_v25  ;;  %v3932_v3 = vpop.f32.mrf.mxu1  ;;  %3541 = vmatprep.mubr.f32.mxu0 %v11432_v36 }
 0x4be   : > { %7729 = vmatprep.subr.mxu0 %v3311_v55 }
 0x4bf   : > { %7730 = vmatpush3.msra.mxu0 %v3311_v55  ;;  %v7760_v45 = vpop.f32.mrf.mxu1 }
 0x4c0   : > { %6891 = vmatmul.mubr.msk.f32.gmra.mxu0 %vm3034_vm1, %v10722_v28  ;;  %7761 = vmatprep.subr.mxu0 %v11432_v36 }
 0x4c1   : > { %3547 = vmatprep.mubr.f32.mxu0 %v11432_v36  ;;  %v3942_v30 = vpop.f32.mrf.mxu1 }
 0x4c3   : > { %v7796_v26 = vpop.f32.mrf.mxu1 }
 0x4c4   : > { %6892 = vmatmul.mubr.msk.f32.gmra.mxu0 %vm3034_vm1, %v10727_v5 }
 0x4c5   : > { %3553 = vmatprep.mubr.f32.mxu0 %v11432_v36  ;;  %v4106_v38 = vpop.f32.mrf.mxu1 }
 0x4c7   : > { %v7799_v41 = vpop.f32.mrf.mxu1 }
 0x4c8   : > { %6893 = vmatmul.mubr.msk.f32.gmra.mxu0 %vm3034_vm1, %v3014_v11 }
 0x4c9   : > { %7731 = vmatprep.mubr.msk.f32.mxu0 %vm3034_vm1, %v10707_v2  ;;  %v4116_v47 = vpop.f32.mrf.mxu1 }
 0x4cb   : > { %v7802_v23 = vpop.f32.mrf.mxu1 }
 0x4cc   : > { %7732 = vmatmul.mubr.msk.f32.vlgmr.msra.gmra.mxu0 %vm3034_vm1, %v10712_v62 }
 0x4cd   : > { %7762 = vmatpush3.msra.mxu0 %v7760_v45  ;;  %7734 = vmatprep.mubr.msk.f32.mxu0 %vm3034_vm1, %v10717_v37  ;;  %v4126_v42 = vpop.f32.mrf.mxu1 }
 0x4ce   : > { %7763 = vmatprep.subr.mxu0 %v11432_v36 }
 0x4cf   : > { %7764 = vmatpush3.msra.mxu0 %v3942_v30 }
 0x4d0   : > { %7765 = vmatprep.subr.mxu0 %v11432_v36  ;;  %7735 = vmatmul.mubr.msk.f32.gmra.mxu0 %vm3034_vm1, %v10722_v28 }
 0x4d1   : > { %7766 = vmatpush3.msra.mxu0 %v7757_v14  ;;  %7737 = vmatprep.mubr.msk.f32.mxu0 %vm3034_vm1, %v10727_v5 }
 0x4d2   : > { %7767 = vmatprep.subr.mxu0 %v11432_v36 }
 0x4d3   : > { %7768 = vmatpush3.msra.mxu0 %v3932_v3 }
 0x4d4   : > { %7769 = vmatprep.subr.mxu0 %v11432_v36  ;;  %7738 = vmatmul.mubr.msk.f32.gmra.mxu0 %vm3034_vm1, %v3014_v11 }
 0x4d5   : > { %7770 = vmatpush3.msra.mxu0 %v7754_v32  ;;  %7773 = vmatprep.mubr.msk.f32.mxu0 %vm8970_vm2, %v11432_v36 }
 0x4d6   : > { %7771 = vmatprep.subr.mxu0 %v11432_v36 }
 0x4d7   : > { %7772 = vmatpush3.msra.mxu0 %v3922_v54 }
 0x4d8   : > { %7803 = vmatprep.subr.mxu0 %v11432_v36  ;;  %7774 = vmatmul.mubr.msk.f32.vlgmr.msra.gmra.mxu0 %vm3034_vm1, %v3853_v15 }
 0x4d9   : > { %7804 = vmatpush3.msra.mxu0 %v7802_v23  ;;  %7776 = vmatprep.mubr.msk.f32.mxu0 %vm8970_vm2, %v11432_v36 }
 0x4da   : > { %7805 = vmatprep.subr.mxu0 %v11432_v36 }
 0x4db   : > { %7806 = vmatpush3.msra.mxu0 %v4126_v42 }
 0x4dc   : > { %7807 = vmatprep.subr.mxu0 %v11432_v36  ;;  %7777 = vmatmul.mubr.msk.f32.gmra.mxu0 %vm3034_vm1, %v3854_v40 }
 0x4dd   : > { %7808 = vmatpush3.msra.mxu0 %v7799_v41  ;;  %7779 = vmatprep.mubr.msk.f32.mxu0 %vm8970_vm2, %v11432_v36 }
 0x4de   : > { %7809 = vmatprep.subr.mxu0 %v11432_v36 }
 0x4df   : > { %7810 = vmatpush3.msra.mxu0 %v4116_v47 }
 0x4e0   : > { %7811 = vmatprep.subr.mxu0 %v11432_v36  ;;  %7780 = vmatmul.mubr.msk.f32.gmra.mxu0 %vm3034_vm1, %v3855_v7 }
 0x4e1   : > { %7812 = vmatpush3.msra.mxu0 %v7796_v26  ;;  %7815 = vmatprep.mubr.msk.f32.mxu0 %vm8970_vm2, %v11432_v36 }
 0x4e2   : > { %7813 = vmatprep.subr.mxu0 %v11432_v36 }
 0x4e3   : > { %7814 = vmatpush3.msra.mxu0 %v4106_v38 }
 0x4e4   : > { %7816 = vmatmul.mubr.msk.f32.vlgmr.msra.gmra.mxu0 %vm3034_vm1, %v3853_v15 }
 0x4e5   : > { %7818 = vmatprep.mubr.msk.f32.mxu0 %vm8970_vm2, %v11432_v36 }
 0x4e8   : > { %7819 = vmatmul.mubr.msk.f32.gmra.mxu0 %vm3034_vm1, %v3854_v40 }
 0x4e9   : > { %7821 = vmatprep.mubr.msk.f32.mxu0 %vm8970_vm2, %v11432_v36 }
 0x4ec   : > { %7822 = vmatmul.mubr.msk.f32.gmra.mxu0 %vm3034_vm1, %v3855_v7 }
 0x4ed   : > { %4490 = vmatprep.mubr.f32.mxu0 %v11432_v36 }
 0x55c   : > { %v10795_v50 = vpop.f32.mrf.mxu0 }
 0x55d   : > { %v3655_v0 = vmul.f32 %v10795_v50, %v10795_v50 }
 0x55e   : > { %v10797_v4 = vpop.f32.mrf.mxu0 }
 0x55f   : > { %v3661_v60 = vmul.f32 %v10797_v4, %v10797_v4 }
 0x560   : > { %v10799_v57 = vpop.f32.mrf.mxu0 }
 0x561   : > { %v3769_v56 = vadd.f32 %v3661_v60, %v3655_v0  ;;  %v3656_v33 = vmul.f32 %v10799_v57, %v10799_v57 }
 0x562   : > { %v10801_v49 = vpop.f32.mrf.mxu0 }
 0x563   : > { %v3662_v8 = vmul.f32 %v10801_v49, %v10801_v49  ;;  %v10832_v19 = vadd.f32 %v3769_v56, %v10057_v18  ;;  %v3668_v56 = vmul.f32 %v10801_v49, %v10799_v57 }
 0x564   : > { %v10803_v17 = vpop.f32.mrf.mxu0 }
 0x565   : > { %v3770_v24 = vadd.f32 %v3662_v8, %v3656_v33  ;;  %v3657_v2 = vmul.f32 %v10803_v17, %v10803_v17  ;;  %8308 = vrcp.f32 %v10832_v19 }
 0x566   : > { %v10805_v16 = vpop.f32.mrf.mxu0 }
 0x567   : > { %v3663_v58 = vmul.f32 %v10805_v16, %v10805_v16  ;;  %v10842_v21 = vadd.f32 %v3770_v24, %v10057_v18 }
 0x568   : > { %v10807_v61 = vpop.f32.mrf.mxu0 }
 0x569   : > { %v3771_v51 = vadd.f32 %v3663_v58, %v3657_v2  ;;  %v3658_v5 = vmul.f32 %v10807_v61, %v10807_v61 }
 0x56a   : > { %v10809_v31 = vpop.f32.mrf.mxu0 }
 0x56b   : > { %v3664_v20 = vmul.f32 %v10809_v31, %v10809_v31  ;;  %v10850_v59 = vadd.f32 %v3771_v51, %v10057_v18 }
 0x56c   : > { %v10811_v53 = vpop.f32.mrf.mxu0 }
 0x56d   : > { %v3659_v55 = vmul.f32 %v10811_v53, %v10811_v53  ;;  %v3772_v13 = vadd.f32 %v3664_v20, %v3658_v5 }
 0x56e   : > { %v10813_v1 = vpop.f32.mrf.mxu0 }
 0x56f   : > { %v3665_v34 = vmul.f32 %v10813_v1, %v10813_v1  ;;  %v10861_v38 = vadd.f32 %v3772_v13, %v10057_v18 }
 0x570   : > { %v10815_v29 = vpop.f32.mrf.mxu0 }
 0x571   : > { %v3773_v32 = vadd.f32 %v3665_v34, %v3659_v55  ;;  %v3660_v45 = vmul.f32 %v10815_v29, %v10815_v29 }
 0x572   : > { %v10819_v10 = vpop.f32.mrf.mxu0 }
 0x573   : > { %v3666_v22 = vmul.f32 %v10819_v10, %v10819_v10  ;;  %v10864_v15 = vadd.f32 %v3773_v32, %v10057_v18 }
 0x574   : > { %v3525_v35 = vpop.f32.mrf.mxu0 }
 0x575   : > { %v3673_v6 = vsub.f32 %v3525_v35, %v3655_v0  ;;  %v3774_v41 = vadd.f32 %v3666_v22, %v3660_v45  ;;  %v3667_v35 = vmul.f32 %v10797_v4, %v10795_v50 }
 0x576   : > { %v3527_v43 = vpop.f32.mrf.mxu0 }
 0x577   : > { %v3679_v63 = vsub.f32 %v3527_v43, %v3661_v60  ;;  %v10869_v44 = vadd.f32 %v3774_v41, %v10057_v18  ;;  %v10880_v43 = vpop.eup %8308  ;;  %v3757_v49 = vmul.f32 2.0, %v3667_v35 }
 0x578   : > { %v3531_v39 = vpop.f32.mrf.mxu0 }
 0x579   : > { %v3703_v62 = vadd.f32 %v3679_v63, %v3673_v6  ;;  %v3674_v28 = vsub.f32 %v3531_v39, %v3656_v33  ;;  %v3669_v6 = vmul.f32 %v10805_v16, %v10803_v17  ;;  %v3758_v39 = vmul.f32 2.0, %v3668_v56 }
 0x57a   : > { %v3533_v37 = vpop.f32.mrf.mxu0 }
 0x57b   : > { %v10839_v27 = vadd.f32 %v3703_v62, %v10176_v46  ;;  %v3680_v52 = vsub.f32 %v3533_v37, %v3662_v8  ;;  %v3759_v16 = vmul.f32 2.0, %v3669_v6  ;;  %v10903_v13 = vadd.f32 %v3758_v39, %v10057_v18 }
 0x57c   : > { %v3537_v25 = vpop.f32.mrf.mxu0 }
 0x57d   : > { %v3704_v11 = vadd.f32 %v3680_v52, %v3674_v28  ;;  %8310 = vrcp.f32 %v10839_v27  ;;  %v3675_v14 = vsub.f32 %v3537_v25, %v3657_v2  ;;  %v3670_v2 = vmul.f32 %v10809_v31, %v10807_v61 }
 0x57e   : > { %v3539_v9 = vpop.f32.mrf.mxu0  ;;  %8312 = vrcp.f32 %v10842_v21 }
 0x57f   : > { %v3710_v54 = vadd.f32 %v3704_v11, %v10176_v46  ;;  %v3681_v3 = vsub.f32 %v3539_v9, %v3663_v58  ;;  %v3760_v61 = vmul.f32 2.0, %v3670_v2  ;;  %v3787_v11 = vmul.f32 %v10880_v43, %v10832_v19 }
 0x580   : > { %v3543_v30 = vpop.f32.mrf.mxu0 }
 0x581   : > { %8314 = vrcp.f32 %v3710_v54  ;;  %v3705_v26 = vadd.f32 %v3681_v3, %v3675_v14  ;;  %v3676_v40 = vsub.f32 %v3543_v30, %v3658_v5  ;;  %v10908_v14 = vadd.f32 %v3759_v16, %v10057_v18 }
 0x582   : > { %8316 = vrcp.f32 %v10850_v59  ;;  %v3545_v47 = vpop.f32.mrf.mxu0 }
 0x583   : > { %v3711_v23 = vadd.f32 %v3705_v26, %v10176_v46  ;;  %v3682_v42 = vsub.f32 %v3545_v47, %v3664_v20  ;;  %v10915_v47 = vadd.f32 %v3760_v61, %v10057_v18 }
 0x584   : > { %v3549_v7 = vpop.f32.mrf.mxu0 }
 0x585   : > { %8318 = vrcp.f32 %v3711_v23  ;;  %v3706_v48 = vadd.f32 %v3682_v42, %v3676_v40  ;;  %v3677_v0 = vsub.f32 %v3549_v7, %v3659_v55  ;;  %v10898_v55 = vadd.f32 %v3757_v49, %v10057_v18  ;;  %v10936_v49 = vld [vmem:[%s11433_s20 + $0x10] sm:$0xff] }
 0x586   : > { %8320 = vrcp.f32 %v10861_v38  ;;  %v3551_v12 = vpop.f32.mrf.mxu0  ;;  %v3671_v7 = vmul.f32 %v10813_v1, %v10811_v53 }
 0x587   : > { %8322 = vrcp.f32 %v10864_v15  ;;  %v10873_v60 = vadd.f32 %v3706_v48, %v10176_v46  ;;  %v3683_v8 = vsub.f32 %v3551_v12, %v3665_v34  ;;  %v3672_v48 = vmul.f32 %v10819_v10, %v10815_v29 }
 0x588   : > { %v3555_v33 = vpop.f32.mrf.mxu0 }
 0x589   : > { %8324 = vrcp.f32 %v10873_v60  ;;  %v3707_v58 = vadd.f32 %v3683_v8, %v3677_v0  ;;  %v3678_v4 = vsub.f32 %v3555_v33, %v3660_v45 }
 0x58a   : > { %8326 = vrcp.f32 %v10869_v44  ;;  %v3557_v63 = vpop.f32.mrf.mxu0  ;;  %v8311_v24 = vpop.eup %8310 }
 0x58b   : > { %v10888_v50 = vadd.f32 %v3707_v58, %v10176_v46  ;;  %v3684_v57 = vsub.f32 %v3557_v63, %v3666_v22  ;;  %v8313_v51 = vpop.eup %8312  ;;  %v3721_v37 = vmul.f32 %v8311_v24, %v10839_v27 }
 0x58c   : > { %v7733_v62 = vpop.f32.mrf.mxu0  ;;  %v3788_v22 = vmul.f32 %v8313_v51, %v10842_v21 }
 0x58d   : > { %8328 = vrcp.f32 %v10888_v50  ;;  %v3708_v20 = vadd.f32 %v3684_v57, %v3678_v4  ;;  %v3686_v34 = vsub.f32 %v7733_v62, %v3668_v56  ;;  %v3727_v3 = vsub.f32 2.0, %v3721_v37 }
 0x58e   : > { %v8315_v17 = vpop.eup %8314  ;;  %v3626_v28 = vpop.f32.mrf.mxu0  ;;  %v3794_v56 = vsub.f32 2.0, %v3788_v22  ;;  %v3761_v37 = vmul.f32 2.0, %v3671_v7 }
 0x58f   : > { %v10892_v52 = vpop.eup %8316  ;;  %v3722_v31 = vmul.f32 %v8315_v17, %v3710_v54  ;;  %v10895_v5 = vadd.f32 %v3708_v20, %v10176_v46  ;;  %v3685_v25 = vsub.f32 %v3626_v28, %v3667_v35  ;;  %v3692_v45 = vmul.f32 2.0, %v3686_v34  ;;  %v10941_v34 = vld [vmem:[#allocation21] ss:$0 sm:$0xff] }
 0x590   : > { %v7736_v27 = vpop.f32.mrf.mxu0  ;;  %v3789_v41 = vmul.f32 %v10892_v52, %v10850_v59  ;;  %v3793_v35 = vsub.f32 2.0, %v3787_v11  ;;  %v3733_v63 = vmul.f32 %v8311_v24, %v3727_v3  ;;  %v3800_v16 = vmul.f32 %v8313_v51, %v3794_v56 }
 0x591   : > { %v3728_v9 = vsub.f32 2.0, %v3722_v31  ;;  %8330 = vrcp.f32 %v10895_v5  ;;  %v3691_v32 = vmul.f32 2.0, %v3685_v25  ;;  %v3688_v30 = vsub.f32 %v7736_v27, %v3670_v2 }
 0x592   : > { %v8319_v54 = vpop.eup %8318  ;;  %v3636_v26 = vpop.f32.mrf.mxu0  ;;  %v3795_v29 = vsub.f32 2.0, %v3789_v41 }
 0x593   : > { %v10910_v19 = vpop.eup %8320  ;;  %v3723_v21 = vmul.f32 %v8319_v54, %v3711_v23  ;;  %v3687_v40 = vsub.f32 %v3636_v26, %v3669_v6  ;;  %v3734_v12 = vmul.f32 %v8315_v17, %v3728_v9  ;;  %v3697_v0 = vadd.f32 %v3691_v32, %v10176_v46 }
 0x594   : > { %v10917_v42 = vpop.eup %8322  ;;  %v7739_v8 = vpop.f32.mrf.mxu0  ;;  %v3790_v23 = vmul.f32 %v10910_v19, %v10861_v38  ;;  %v3698_v6 = vadd.f32 %v3692_v45, %v10176_v46  ;;  %v3694_v2 = vmul.f32 2.0, %v3688_v30  ;;  %v3799_v17 = vmul.f32 %v10880_v43, %v3793_v35 }
 0x595   : > { %v3729_v59 = vsub.f32 2.0, %v3723_v21  ;;  %v3693_v33 = vmul.f32 2.0, %v3687_v40  ;;  %v3791_v10 = vmul.f32 %v10917_v42, %v10864_v15  ;;  %v3739_v39 = vmul.f32 %v3733_v63, %v3697_v0 }
 0x596   : > { %v8325_v58 = vpop.eup %8324  ;;  %v3646_v53 = vpop.f32.mrf.mxu0  ;;  %v3740_v38 = vmul.f32 %v3734_v12, %v3698_v6  ;;  %v3796_v61 = vsub.f32 2.0, %v3790_v23  ;;  %v3700_v43 = vadd.f32 %v3694_v2, %v10176_v46  ;;  %v3690_v51 = vsub.f32 %v7739_v8, %v3672_v48 }
 0x597   : > { %v10927_v1 = vpop.eup %8326  ;;  %v3724_v4 = vmul.f32 %v8325_v58, %v10873_v60  ;;  %v3699_v57 = vadd.f32 %v3693_v33, %v10176_v46  ;;  %v3735_v24 = vmul.f32 %v8319_v54, %v3729_v59  ;;  %v3689_v62 = vsub.f32 %v3646_v53, %v3671_v7  ;;  %v10948_v60 = vld [vmem:[%s11433_s20 + $0x8] sm:$0xff] }
 0x598   : > { %v10938_v20 = vpop.f32.mrf.mxu0  ;;  %v3792_v31 = vmul.f32 %v10927_v1, %v10869_v44  ;;  %v10961_v44 = vld [vmem:[%s11433_s20] sm:$0xff]  ;;  %v3801_v32 = vmul.f32 %v10892_v52, %v3795_v29  ;;  %v3797_v54 = vsub.f32 2.0, %v3791_v10  ;;  %v3752_v3 = vmul.f32 %v10941_v34, %v3740_v38 }
 0x599   : > { %v3730_v15 = vsub.f32 2.0, %v3724_v4  ;;  %7831 = vmatmul.mubr.msk.f32.vlgmr.msra.gmra.mxu1 %vm4231_vm3, %v10938_v20  ;;  %v3741_v22 = vmul.f32 %v3735_v24, %v3699_v57  ;;  %v3695_v9 = vmul.f32 2.0, %v3689_v62  ;;  %v3751_v45 = vmul.f32 %v10941_v34, %v3739_v39 }
 0x59a   : > { %v8329_v28 = vpop.eup %8328  ;;  %v7775_v25 = vpop.f32.mrf.mxu0  ;;  %7833 = vmatprep.mubr.msk.f32.mxu1 %vm8970_vm2, %v11432_v36  ;;  %7915 = vmatpush3.msra.mxu1 %v10936_v49  ;;  %v3762_v26 = vmul.f32 2.0, %v3672_v48  ;;  %v3806_v40 = vmul.f32 %v3800_v16, %v10903_v13  ;;  %v3802_v7 = vmul.f32 %v10910_v19, %v3796_v61  ;;  %v3798_v12 = vsub.f32 2.0, %v3792_v31 }
 0x59b   : > { %v3725_v11 = vmul.f32 %v8329_v28, %v10888_v50  ;;  %v3736_v27 = vmul.f32 %v8325_v58, %v3730_v15  ;;  %7916 = vmatprep.subr.mxu1 %v11432_v36  ;;  %v3805_v50 = vmul.f32 %v3799_v17, %v10898_v55  ;;  %v3696_v0 = vmul.f32 2.0, %v3690_v51 }
 0x59c   : > { %v10966_v30 = vpop.f32.mrf.mxu0  ;;  %7917 = vmatpush3.msra.mxu1 %v10948_v60  ;;  %v3753_v48 = vmul.f32 %v10941_v34, %v3741_v22  ;;  %v3701_v35 = vadd.f32 %v3695_v9, %v10176_v46  ;;  %v3807_v59 = vmul.f32 %v3801_v32, %v10908_v14  ;;  %v3812_v13 = vmul.f32 %v3806_v40, %v3752_v3 }
 0x59d   : > { %v3731_v41 = vsub.f32 2.0, %v3725_v11  ;;  %v3742_v21 = vmul.f32 %v3736_v27, %v3700_v43  ;;  %7834 = vmatmul.mubr.msk.f32.gmra.mxu1 %vm4231_vm3, %v10966_v30  ;;  %7918 = vmatprep.subr.mxu1 %v11432_v36  ;;  %v3811_v33 = vmul.f32 %v3805_v50, %v3751_v45  ;;  %v3803_v58 = vmul.f32 %v10917_v42, %v3797_v54 }
 0x59e   : > { %v8331_v52 = vpop.eup %8330  ;;  %v7778_v8 = vpop.f32.mrf.mxu0  ;;  %7836 = vmatprep.mubr.msk.f32.mxu1 %vm8970_vm2, %v11432_v36  ;;  %7919 = vmatpush3.msra.mxu1 %v10961_v44  ;;  %v3832_v63 = vadd.f32 %v3752_v3, %v3751_v45  ;;  %v3808_v2 = vmul.f32 %v3802_v7, %v10915_v47  ;;  %v3767_v53 = vadd.f32 %v3761_v37, %v10057_v18 }
 0x59f   : > { %v3726_v55 = vmul.f32 %v8331_v52, %v10895_v5  ;;  %v3737_v56 = vmul.f32 %v8329_v28, %v3731_v41  ;;  %v3754_v5 = vmul.f32 %v10941_v34, %v3742_v21  ;;  %v3702_v14 = vadd.f32 %v3696_v0, %v10176_v46 }
 0x5a0   : > { %v10982_v19 = vpop.f32.mrf.mxu0  ;;  %v3804_v42 = vmul.f32 %v10927_v1, %v3798_v12  ;;  %v3813_v10 = vmul.f32 %v3807_v59, %v3753_v48  ;;  %v3833_v38 = vadd.f32 %v3832_v63, %v3753_v48  ;;  %v3768_v39 = vadd.f32 %v3762_v26, %v10057_v18 }
 0x5a1   : > { %v3732_v23 = vsub.f32 2.0, %v3726_v55  ;;  %v3743_v6 = vmul.f32 %v3737_v56, %v3701_v35  ;;  %7837 = vmatmul.mubr.msk.f32.gmra.mxu1 %vm4231_vm3, %v10982_v19  ;;  %v3809_v62 = vmul.f32 %v3803_v58, %v3767_v53  ;;  %v3814_v16 = vmul.f32 %v3808_v2, %v3754_v5 }
 0x5a2   : > { %v7781_v29 = vpop.f32.mrf.mxu0  ;;  %7839 = vmatprep.mubr.msk.f32.mxu1 %vm8970_vm2, %v11432_v36  ;;  %v3834_v17 = vadd.f32 %v3833_v38, %v3754_v5  ;;  %v3817_v37 = vadd.f32 %v3812_v13, %v3811_v33  ;;  %v3810_v1 = vmul.f32 %v3804_v42, %v3768_v39  ;;  %v4222_v3 = vmul.f32 %v10938_v20, %v10938_v20 }
 0x5a3   : > { %v3738_v4 = vmul.f32 %v8331_v52, %v3732_v23  ;;  %v3755_v57 = vmul.f32 %v10941_v34, %v3743_v6  ;;  %v4223_v45 = vmul.f32 %v10966_v30, %v10966_v30  ;;  %v4224_v50 = vmul.f32 %v10982_v19, %v10982_v19 }
 0x5a4   : > { %v4201_v24 = vpop.f32.mrf.mxu0  ;;  %v3818_v43 = vadd.f32 %v3817_v37, %v3813_v10  ;;  %v4219_v37 = vld [vmem:[#allocation15 + $0x8] sm:$0xff] }
 0x5a5   : > { %7840 = vmatmul.mubr.msk.f32.gmra.mxu1 %vm4231_vm3, %v4201_v24  ;;  %v3744_v47 = vmul.f32 %v3738_v4, %v3702_v14  ;;  %v3835_v61 = vadd.f32 %v3834_v17, %v3755_v57  ;;  %v3815_v31 = vmul.f32 %v3809_v62, %v3755_v57  ;;  %v4225_v26 = vmul.f32 %v4201_v24, %v4201_v24 }
 0x5a6   : > { %v7817_v15 = vpop.f32.mrf.mxu0  ;;  %7842 = vmatprep.mubr.msk.f32.mxu1 %vm8970_vm2, %v11432_v36  ;;  %v3819_v27 = vadd.f32 %v3818_v43, %v3814_v16  ;;  %v4228_v52 = vmul.f32 %v4201_v24, %v10938_v20 }
 0x5a7   : > { %v3756_v28 = vmul.f32 %v10941_v34, %v3744_v47  ;;  %v4218_v47 = vld [vmem:[#allocation15] sm:$0xff] }
 0x5a8   : > { %v4206_v51 = vpop.f32.mrf.mxu0  ;;  %v3820_v9 = vadd.f32 %v3819_v27, %v3815_v31 }
 0x5a9   : > { %7843 = vmatmul.mubr.msk.f32.gmra.mxu1 %vm4231_vm3, %v4206_v51  ;;  %v3836_v25 = vadd.f32 %v3835_v61, %v3756_v28  ;;  %v3816_v11 = vmul.f32 %v3810_v1, %v3756_v28  ;;  %v4226_v41 = vmul.f32 %v4206_v51, %v4206_v51  ;;  %v4229_v40 = vmul.f32 %v4206_v51, %v10966_v30  ;;  %v4220_v28 = vld [vmem:[#allocation15 + $0x10] sm:$0xff] }
 0x5aa   : > { %v7820_v22 = vpop.f32.mrf.mxu0  ;;  %7845 = vmatprep.mubr.msk.f32.mxu1 %vm8970_vm2, %v11432_v36 }
 0x5ab   : > { %3837 = vadd.xlane.f32.xlu1 %v3836_v25  ;;  %v3821_v54 = vadd.f32 %v3820_v9, %v3816_v11 }
 0x5ac   : > { %v4211_v32 = vpop.f32.mrf.mxu0 }
 0x5ad   : > { %7846 = vmatmul.mubr.msk.f32.gmra.mxu1 %vm4231_vm3, %v4211_v32  ;;  %v4227_v21 = vmul.f32 %v4211_v32, %v4211_v32  ;;  %v4230_v7 = vmul.f32 %v4211_v32, %v10982_v19 }
 0x5ae   : > { %7848 = vmatprep.mubr.msk.f32.mxu1 %vm8970_vm2, %v11432_v36  ;;  %v7823_v34 = vpop.f32.mrf.mxu0 }
 0x5af   : > { %3822 = vadd.xlane.f32.xlu1 %v3821_v54 }
 0x5b1   : > { %7849 = vmatmul.mubr.msk.f32.gmra.mxu1 %vm4231_vm3, %v4222_v3 }
 0x5b2   : > { %7851 = vmatprep.mubr.msk.f32.mxu1 %vm8970_vm2, %v11432_v36 }
 0x5b5   : > { %7852 = vmatmul.mubr.msk.f32.gmra.mxu1 %vm4231_vm3, %v4223_v45 }
 0x5b6   : > { %7854 = vmatprep.mubr.msk.f32.mxu1 %vm8970_vm2, %v11432_v36 }
 0x5b9   : > { %7855 = vmatmul.mubr.msk.f32.gmra.mxu1 %vm4231_vm3, %v4224_v50 }
 0x5ba   : > { %7857 = vmatprep.mubr.msk.f32.mxu1 %vm8970_vm2, %v11432_v36 }
 0x5bd   : > { %7858 = vmatmul.mubr.msk.f32.gmra.mxu1 %vm4231_vm3, %v4225_v26 }
 0x5be   : > { %7860 = vmatprep.mubr.msk.f32.mxu1 %vm8970_vm2, %v11432_v36 }
 0x5c1   : > { %7861 = vmatmul.mubr.msk.f32.gmra.mxu1 %vm4231_vm3, %v4226_v41 }
 0x5c2   : > { %7863 = vmatprep.mubr.msk.f32.mxu1 %vm8970_vm2, %v11432_v36 }
 0x5c5   : > { %7864 = vmatmul.mubr.msk.f32.gmra.mxu1 %vm4231_vm3, %v4227_v21 }
 0x5c6   : > { %7866 = vmatprep.mubr.msk.f32.mxu1 %vm8970_vm2, %v11432_v36 }
 0x5c9   : > { %7867 = vmatmul.mubr.msk.f32.gmra.mxu1 %vm4231_vm3, %v4228_v52 }
 0x5ca   : > { %7869 = vmatprep.mubr.msk.f32.mxu1 %vm8970_vm2, %v11432_v36 }
 0x5cd   : > { %7870 = vmatmul.mubr.msk.f32.gmra.mxu1 %vm4231_vm3, %v4229_v40 }
 0x5ce   : > { %7872 = vmatprep.mubr.msk.f32.mxu1 %vm8970_vm2, %v11432_v36 }
 0x5d1   : > { %7873 = vmatmul.mubr.msk.f32.gmra.mxu1 %vm4231_vm3, %v4230_v7 }
 0x5d2   : > { %7920 = vmatprep.mubr.msk.f32.mxu1 %vm8970_vm2, %v11432_v36 }
 0x5d5   : > { %7921 = vmatmul.mubr.msk.f32.vlgmr.msra.gmra.mxu1 %vm4231_vm3, %v4201_v24 }
 0x5d6   : > { %7923 = vmatprep.mubr.msk.f32.mxu1 %vm8970_vm2, %v11432_v36 }
 0x5d9   : > { %7924 = vmatmul.mubr.msk.f32.gmra.mxu1 %vm4231_vm3, %v4206_v51 }
 0x5da   : > { %7926 = vmatprep.mubr.msk.f32.mxu1 %vm8970_vm2, %v11432_v36 }
 0x5dd   : > { %7927 = vmatmul.mubr.msk.f32.gmra.mxu1 %vm4231_vm3, %v4211_v32 }
 0x5de   : > { %5351 = vmatprep.mubr.f32.mxu1 %v11432_v36 }
 0x634   : > { %v3838_v12 = vpop.xlane.xlu1 %3837 }
 0x635   : > { %v3839_v0 = vrot.slane %v3838_v12, 4 }
 0x637   : > { %v3840_v8 = vadd.f32 %v3839_v0, %v3838_v12 }
 0x638   : > { %v3823_v55 = vpop.xlane.xlu1 %3822 }
 0x639   : > { %v3841_v48 = vrot.slane %v3840_v8, 2  ;;  %v3824_v35 = vrot.slane %v3823_v55, 4 }
 0x63b   : > { %v3825_v56 = vadd.f32 %v3824_v35, %v3823_v55  ;;  %v3842_v59 = vadd.f32 %v3841_v48, %v3840_v8 }
 0x63d   : > { %v3826_v13 = vrot.slane %v3825_v56, 2  ;;  %v3843_v58 = vrot.slane %v3842_v59, 1 }
 0x63f   : > { %v3827_v33 = vadd.f32 %v3826_v13, %v3825_v56  ;;  %v3844_v5 = vadd.f32 %v3843_v58, %v3842_v59 }
 0x641   : > { %v3828_v23 = vrot.slane %v3827_v33, 1 }
 0x643   : > { %v3829_v6 = vadd.f32 %v3828_v23, %v3827_v33 }
 0x645   : > { %8010 = vpush %v3829_v6 }
 0x646   : > { %8012 = vpush %v3844_v5 }
 0x659   : > { %v4343_v63 = vpop.f32.mrf.mxu1 }
 0x65b   : > { %v7832_v2 = vpop.f32.mrf.mxu1 }
 0x65d   : > { %v4348_v53 = vpop.f32.mrf.mxu1 }
 0x65f   : > { %v7835_v14 = vpop.f32.mrf.mxu1 }
 0x661   : > { %v4353_v29 = vpop.f32.mrf.mxu1 }
 0x663   : > { %v7838_v42 = vpop.f32.mrf.mxu1 }
 0x665   : > { %v4358_v10 = vpop.f32.mrf.mxu1 }
 0x667   : > { %v7841_v4 = vpop.f32.mrf.mxu1 }
 0x669   : > { %v4363_v57 = vpop.f32.mrf.mxu1 }
 0x66b   : > { %v7844_v38 = vpop.f32.mrf.mxu1 }
 0x66d   : > { %v4368_v39 = vpop.f32.mrf.mxu1 }
 0x66e   : > { %4452 = vmatprep.subr.mxu0 %v4368_v39 }
 0x66f   : > { %v7847_v24 = vpop.f32.mrf.mxu1  ;;  %4453 = vmatpush1.msra.mxu0 %v4353_v29 }
 0x670   : > { %4454 = vmatprep.subr.mxu0 %v4363_v57 }
 0x671   : > { %v4373_v62 = vpop.f32.mrf.mxu1  ;;  %4455 = vmatpush1.msra.mxu0 %v4348_v53 }
 0x672   : > { %4456 = vmatprep.subr.mxu0 %v4358_v10 }
 0x673   : > { %v7850_v17 = vpop.f32.mrf.mxu1  ;;  %4457 = vmatpush1.msra.mxu0 %v4343_v63 }
 0x674   : > { %6934 = vmatmul.mubr.msk.f32.vlgmr.msra.gmra.mxu0 %vm4231_vm3, %v4218_v47 }
 0x675   : > { %v4378_v16 = vpop.f32.mrf.mxu1  ;;  %4496 = vmatprep.mubr.f32.mxu0 %v11432_v36 }
 0x676   : > { %s8011_s11 = spop %8010 }
 0x677   : > { %v7853_v15 = vpop.f32.mrf.mxu1  ;;  %s3831_s12 = smul.f32 0.00043402778, %s8011_s11  ;;  %s8013_s30 = spop %8012 }
 0x678   : > { %6935 = vmatmul.mubr.msk.f32.gmra.mxu0 %vm4231_vm3, %v4219_v37  ;;  %s3846_s17 = smul.f32 0.00043402778, %s8013_s30  ;;  %s6717_s11 = sshll.u32 %s11447_s29, 3 }
 0x679   : > { %v4383_v1 = vpop.f32.mrf.mxu1  ;;  %4502 = vmatprep.mubr.f32.mxu0 %v11432_v36 }
 0x67b   : > { %v7856_v61 = vpop.f32.mrf.mxu1 }
 0x67c   : > { %6936 = vmatmul.mubr.msk.f32.gmra.mxu0 %vm4231_vm3, %v4220_v28 }
 0x67d   : > { %v4388_v31 = vpop.f32.mrf.mxu1  ;;  %4573 = vmatprep.mubr.f32.mxu0 %v11432_v36 }
 0x67f   : > { %v7859_v43 = vpop.f32.mrf.mxu1 }
 0x681   : > { %v4393_v51 = vpop.f32.mrf.mxu1 }
 0x683   : > { %v7862_v25 = vpop.f32.mrf.mxu1 }
 0x685   : > { %v4398_v11 = vpop.f32.mrf.mxu1 }
 0x686   : > { %4535 = vmatprep.subr.mxu0 %v4398_v11 }
 0x687   : > { %v7865_v27 = vpop.f32.mrf.mxu1  ;;  %4536 = vmatpush1.msra.mxu0 %v4383_v1 }
 0x688   : > { %4537 = vmatprep.subr.mxu0 %v4393_v51 }
 0x689   : > { %v4403_v22 = vpop.f32.mrf.mxu1  ;;  %4538 = vmatpush1.msra.mxu0 %v4378_v16 }
 0x68a   : > { %4539 = vmatprep.subr.mxu0 %v4388_v31 }
 0x68b   : > { %v7868_v9 = vpop.f32.mrf.mxu1  ;;  %4540 = vmatpush1.msra.mxu0 %v4373_v62 }
 0x68c   : > { %6937 = vmatmul.mubr.msk.f32.vlgmr.msra.gmra.mxu0 %vm4231_vm3, %v4218_v47  ;;  %7875 = vmatprep.subr.mxu0 %v11432_v36 }
 0x68d   : > { %v4408_v32 = vpop.f32.mrf.mxu1  ;;  %4579 = vmatprep.mubr.f32.mxu0 %v11432_v36 }
 0x68f   : > { %v7871_v54 = vpop.f32.mrf.mxu1 }
 0x690   : > { %6938 = vmatmul.mubr.msk.f32.gmra.mxu0 %vm4231_vm3, %v4219_v37 }
 0x691   : > { %v4413_v34 = vpop.f32.mrf.mxu1  ;;  %4585 = vmatprep.mubr.f32.mxu0 %v11432_v36 }
 0x692   : > { %7876 = vmatpush3.msra.mxu0 %v4413_v34 }
 0x693   : > { %v7874_v3 = vpop.f32.mrf.mxu1  ;;  %7877 = vmatprep.subr.mxu0 %v11432_v36 }
 0x694   : > { %6939 = vmatmul.mubr.msk.f32.gmra.mxu0 %vm4231_vm3, %v4220_v28 }
 0x695   : > { %7878 = vmatpush3.msra.mxu0 %v4408_v32  ;;  %v11063_v45 = vpop.f32.mrf.mxu1  ;;  %7881 = vmatprep.mubr.msk.f32.mxu0 %vm8970_vm2, %v11432_v36 }
 0x696   : > { %7879 = vmatprep.subr.mxu0 %v11432_v36 }
 0x697   : > { %7880 = vmatpush3.msra.mxu0 %v4403_v22  ;;  %v7922_v50 = vpop.f32.mrf.mxu1 }
 0x698   : > { %7882 = vmatmul.mubr.msk.f32.vlgmr.msra.gmra.mxu0 %vm4231_vm3, %v4218_v47  ;;  %7890 = vmatprep.subr.mxu0 %v11432_v36 }
 0x699   : > { %v11070_v26 = vpop.f32.mrf.mxu1  ;;  %7884 = vmatprep.mubr.msk.f32.mxu0 %vm8970_vm2, %v11432_v36  ;;  %7891 = vmatpush3.msra.mxu0 %v10936_v49  ;;  %v11097_v49 = vld [vmem:[#allocation30] sm:$0xff] }
 0x69a   : > { %7892 = vmatprep.subr.mxu0 %v11432_v36 }
 0x69b   : > { %v7925_v41 = vpop.f32.mrf.mxu1  ;;  %7893 = vmatpush3.msra.mxu0 %v10948_v60 }
 0x69c   : > { %7885 = vmatmul.mubr.msk.f32.gmra.mxu0 %vm4231_vm3, %v4219_v37  ;;  %7894 = vmatprep.subr.mxu0 %v11432_v36 }
 0x69d   : > { %v11079_v21 = vpop.f32.mrf.mxu1  ;;  %7887 = vmatprep.mubr.msk.f32.mxu0 %vm8970_vm2, %v11432_v36  ;;  %7895 = vmatpush3.msra.mxu0 %v10961_v44 }
 0x69f   : > { %v7928_v52 = vpop.f32.mrf.mxu1 }
 0x6a0   : > { %7888 = vmatmul.mubr.msk.f32.gmra.mxu0 %vm4231_vm3, %v4220_v28 }
 0x6a1   : > { %7896 = vmatprep.mubr.msk.f32.mxu0 %vm8970_vm2, %v11432_v36 }
 0x6a4   : > { %7897 = vmatmul.mubr.msk.f32.vlgmr.msra.gmra.mxu0 %vm4231_vm3, %v10938_v20 }
 0x6a5   : > { %7899 = vmatprep.mubr.msk.f32.mxu0 %vm8970_vm2, %v11432_v36 }
 0x6a8   : > { %7900 = vmatmul.mubr.msk.f32.gmra.mxu0 %vm4231_vm3, %v10966_v30 }
 0x6a9   : > { %7902 = vmatprep.mubr.msk.f32.mxu0 %vm8970_vm2, %v11432_v36 }
 0x6ac   : > { %7903 = vmatmul.mubr.msk.f32.gmra.mxu0 %vm4231_vm3, %v10982_v19 }
 0x6ad   : > { %7911 = vmatprep.mubr.msk.f32.mxu0 %vm4231_vm3, %v11097_v49 }
 0x734   : > { %v4492_v60 = vpop.f32.mrf.mxu0 }
 0x735   : > { %v4672_v30 = vmul.f32 %v4492_v60, %v4492_v60 }
 0x736   : > { %v4494_v44 = vpop.f32.mrf.mxu0 }
 0x737   : > { %v4675_v55 = vmul.f32 %v4494_v44, %v4494_v44  ;;  %v4678_v61 = vmul.f32 %v4494_v44, %v4492_v60 }
 0x738   : > { %v4498_v20 = vpop.f32.mrf.mxu0 }
 0x739   : > { %v4673_v12 = vmul.f32 %v4498_v20, %v4498_v20  ;;  %v4732_v59 = vadd.f32 %v4675_v55, %v4672_v30 }
 0x73a   : > { %v4500_v40 = vpop.f32.mrf.mxu0 }
 0x73b   : > { %v4676_v0 = vmul.f32 %v4500_v40, %v4500_v40  ;;  %v4735_v5 = vadd.f32 %v4732_v59, %v10057_v18  ;;  %v4679_v31 = vmul.f32 %v4500_v40, %v4498_v20 }
 0x73c   : > { %v4504_v7 = vpop.f32.mrf.mxu0 }
 0x73d   : > { %v4733_v48 = vadd.f32 %v4676_v0, %v4673_v12  ;;  %v4674_v35 = vmul.f32 %v4504_v7, %v4504_v7 }
 0x73e   : > { %v4506_v8 = vpop.f32.mrf.mxu0 }
 0x73f   : > { %v4677_v56 = vmul.f32 %v4506_v8, %v4506_v8  ;;  %v4736_v13 = vadd.f32 %v4733_v48, %v10057_v18  ;;  %v4680_v50 = vmul.f32 %v4506_v8, %v4504_v7  ;;  %v4727_v48 = vmul.f32 2.0, %v4679_v31 }
 0x741   : > { %v4734_v33 = vadd.f32 %v4677_v56, %v4674_v35  ;;  %8332 = vrcp.f32 %v4736_v13 }
 0x742   : > { %8334 = vrcp.f32 %v4735_v5 }
 0x743   : > { %v4737_v53 = vadd.f32 %v4734_v33, %v10057_v18  ;;  %v4726_v33 = vmul.f32 2.0, %v4678_v61 }
 0x74c   : > { %v4575_v19 = vpop.f32.mrf.mxu0 }
 0x74d   : > { %v4681_v23 = vsub.f32 %v4575_v19, %v4672_v30 }
 0x74e   : > { %v4577_v58 = vpop.f32.mrf.mxu0  ;;  %v8333_v28 = vpop.eup %8332 }
 0x74f   : > { %v4684_v6 = vsub.f32 %v4577_v58, %v4675_v55  ;;  %v8335_v51 = vpop.eup %8334  ;;  %v4742_v27 = vmul.f32 %v8333_v28, %v4736_v13 }
 0x750   : > { %v4581_v63 = vpop.f32.mrf.mxu0  ;;  %v4741_v3 = vmul.f32 %v8335_v51, %v4735_v5 }
 0x751   : > { %v4696_v2 = vadd.f32 %v4684_v6, %v4681_v23  ;;  %v4682_v42 = vsub.f32 %v4581_v63, %v4673_v12 }
 0x752   : > { %v4583_v14 = vpop.f32.mrf.mxu0 }
 0x753   : > { %v4699_v29 = vadd.f32 %v4696_v2, %v10176_v46  ;;  %v4685_v10 = vsub.f32 %v4583_v14, %v4676_v0  ;;  %v4745_v0 = vsub.f32 2.0, %v4742_v27  ;;  %v4728_v14 = vmul.f32 2.0, %v4680_v50 }
 0x754   : > { %v4587_v4 = vpop.f32.mrf.mxu0 }
 0x755   : > { %8336 = vrcp.f32 %v4699_v29  ;;  %v4697_v57 = vadd.f32 %v4685_v10, %v4682_v42  ;;  %v4683_v24 = vsub.f32 %v4587_v4, %v4674_v35  ;;  %v4748_v23 = vmul.f32 %v8333_v28, %v4745_v0  ;;  %v6943_v42 = vld [vmem:[#allocation23] ss:$0 sm:$0xff] }
 0x756   : > { %8338 = vrcp.f32 %v4737_v53  ;;  %v4589_v38 = vpop.f32.mrf.mxu0 }
 0x757   : > { %v4700_v39 = vadd.f32 %v4697_v57, %v10176_v46  ;;  %v4686_v62 = vsub.f32 %v4589_v38, %v4677_v56  ;;  %v4744_v56 = vsub.f32 2.0, %v4741_v3  ;;  %v4729_v38 = vadd.f32 %v4726_v33, %v10057_v18 }
 0x758   : > { %v4658_v47 = vpop.f32.mrf.mxu0 }
 0x759   : > { %8340 = vrcp.f32 %v4700_v39  ;;  %v4698_v17 = vadd.f32 %v4686_v62, %v4683_v24  ;;  %v4687_v25 = vsub.f32 %v4658_v47, %v4678_v61  ;;  %v4747_v57 = vmul.f32 %v8335_v51, %v4744_v56 }
 0x75a   : > { %v7883_v16 = vpop.f32.mrf.mxu0 }
 0x75b   : > { %v4701_v37 = vadd.f32 %v4698_v17, %v10176_v46  ;;  %v4690_v52 = vmul.f32 2.0, %v4687_v25  ;;  %v4750_v61 = vmul.f32 %v4747_v57, %v4729_v38 }
 0x75c   : > { %v4663_v15 = vpop.f32.mrf.mxu0 }
 0x75d   : > { %8342 = vrcp.f32 %v4701_v37  ;;  %v4688_v22 = vsub.f32 %v4663_v15, %v4679_v31  ;;  %v4693_v19 = vadd.f32 %v4690_v52, %v10176_v46  ;;  %v4731_v15 = vadd.f32 %v4728_v14, %v10057_v18  ;;  %v5103_v14 = vld [vmem:[#allocation17] sm:$0xff] }
 0x75e   : > { %v7886_v1 = vpop.f32.mrf.mxu0 }
 0x75f   : > { %v4691_v55 = vmul.f32 2.0, %v4688_v22  ;;  %v4784_v1 = vld [vmem:[#allocation30 + $0x8] sm:$0xf] }
 0x760   : > { %v4668_v43 = vpop.f32.mrf.mxu0 }
 0x761   : > { %v4689_v40 = vsub.f32 %v4668_v43, %v4680_v50  ;;  %v4694_v7 = vadd.f32 %v4691_v55, %v10176_v46 }
 0x762   : > { %v8337_v11 = vpop.eup %8336  ;;  %v7889_v9 = vpop.f32.mrf.mxu0 }
 0x763   : > { %v8339_v32 = vpop.eup %8338  ;;  %v4705_v54 = vmul.f32 %v8337_v11, %v4699_v29  ;;  %v4692_v2 = vmul.f32 2.0, %v4689_v40 }
 0x764   : > { %v4851_v34 = vpop.f32.mrf.mxu0  ;;  %v4743_v30 = vmul.f32 %v8339_v32, %v4737_v53  ;;  %v4730_v53 = vadd.f32 %v4727_v48, %v10057_v18 }
 0x765   : > { %v4708_v41 = vsub.f32 2.0, %v4705_v54  ;;  %v4695_v47 = vadd.f32 %v4692_v2, %v10176_v46  ;;  %v5101_v54 = vld [vmem:[#allocation11] sm:$0xff] }
 0x766   : > { %v8341_v12 = vpop.eup %8340  ;;  %v7898_v60 = vpop.f32.mrf.mxu0  ;;  %v4746_v58 = vsub.f32 2.0, %v4743_v30  ;;  %v4751_v62 = vmul.f32 %v4748_v23, %v4730_v53 }
 0x767   : > { %v4706_v44 = vmul.f32 %v8341_v12, %v4700_v39  ;;  %v4711_v20 = vmul.f32 %v8337_v11, %v4708_v41 }
 0x768   : > { %v4856_v35 = vpop.f32.mrf.mxu0  ;;  %v4749_v24 = vmul.f32 %v8339_v32, %v4746_v58 }
 0x769   : > { %v4709_v59 = vsub.f32 2.0, %v4706_v44  ;;  %v4714_v5 = vmul.f32 %v4711_v20, %v4693_v19 }
 0x76a   : > { %v8343_v13 = vpop.eup %8342  ;;  %v7901_v8 = vpop.f32.mrf.mxu0  ;;  %v4752_v43 = vmul.f32 %v4749_v24, %v4731_v15 }
 0x76b   : > { %v4707_v6 = vmul.f32 %v8343_v13, %v4701_v37  ;;  %v4712_v63 = vmul.f32 %v8341_v12, %v4709_v59  ;;  %v4723_v16 = vmul.f32 %v6943_v42, %v4714_v5 }
 0x76c   : > { %v4861_v29 = vpop.f32.mrf.mxu0 }
 0x76d   : > { %v4710_v10 = vsub.f32 2.0, %v4707_v6  ;;  %v4715_v4 = vmul.f32 %v4712_v63, %v4694_v7  ;;  %7905 = vmatprep.subr.mxu0 %v4861_v29  ;;  %v4753_v11 = vmul.f32 %v4750_v61, %v4723_v16  ;;  %v5598_v61 = vld [vmem:[#allocation26] sm:$0xff] }
 0x76e   : > { %v7904_v39 = vpop.f32.mrf.mxu0  ;;  %7906 = vmatpush3.msra.mxu0 %v4861_v29 }
 0x76f   : > { %v4713_v17 = vmul.f32 %v8343_v13, %v4710_v10  ;;  %7907 = vmatprep.subr.mxu0 %v4856_v35  ;;  %v4724_v37 = vmul.f32 %v6943_v42, %v4715_v4 }
 0x770   : > { %7908 = vmatpush3.msra.mxu0 %v4856_v35 }
 0x771   : > { %v4716_v28 = vmul.f32 %v4713_v17, %v4695_v47  ;;  %7909 = vmatprep.subr.mxu0 %v4851_v34  ;;  %v4754_v31 = vmul.f32 %v4751_v62, %v4724_v37  ;;  %v4768_v25 = vadd.f32 %v4724_v37, %v4723_v16 }
 0x772   : > { %7910 = vmatpush3.msra.mxu0 %v4851_v34 }
 0x773   : > { %7929 = vmatprep.subr.mxu0 %v11079_v21  ;;  %7912 = vmatmul.mubr.msk.f32.vlgmr.msra.gmra.mxu0 %vm4231_vm3, %v4784_v1  ;;  %v4725_v51 = vmul.f32 %v6943_v42, %v4716_v28  ;;  %v4756_v9 = vadd.f32 %v4754_v31, %v4753_v11  ;;  %v5599_v28 = vld [vmem:[#allocation26 + $0x8] sm:$0xf] }
 0x774   : > { %7930 = vmatpush3.msra.mxu0 %v11079_v21  ;;  %7935 = vmatprep.mubr.msk.f32.mxu0 %vm4231_vm3, %v11097_v49  ;;  %v5102_v21 = vld [vmem:[#allocation11 + $0x8] sm:$0xf] }
 0x775   : > { %7931 = vmatprep.subr.mxu0 %v11070_v26  ;;  %v4769_v27 = vadd.f32 %v4768_v25, %v4725_v51  ;;  %v4755_v22 = vmul.f32 %v4752_v43, %v4725_v51 }
 0x776   : > { %7932 = vmatpush3.msra.mxu0 %v11070_v26 }
 0x777   : > { %7933 = vmatprep.subr.mxu0 %v11063_v45  ;;  %4770 = vadd.xlane.f32.xlu1 %v4769_v27  ;;  %v4757_v32 = vadd.f32 %v4756_v9, %v4755_v22 }
 0x778   : > { %7934 = vmatpush3.msra.mxu0 %v11063_v45 }
 0x779   : > { %7936 = vmatmul.mubr.msk.f32.vlgmr.msra.gmra.mxu0 %vm4231_vm3, %v4784_v1  ;;  %4758 = vadd.xlane.f32.xlu0 %v4757_v32  ;;  %v5104_v1 = vld [vmem:[#allocation17 + $0x8] sm:$0xf] }
 0x77a   : > { %7938 = vmatprep.subr.msk.mxu0 %vm5114_vm4, %v5102_v21 }
 0x77b   : > { %7939 = vmatpush3.msk.msra.mxu0 %vm5114_vm4, %v5102_v21 }
 0x77c   : > { %7940 = vmatprep.subr.mxu0 %v5101_v54 }
 0x77d   : > { %7941 = vmatpush3.msra.mxu0 %v5101_v54 }
 0x800   : > { %v4771_v49 = vpop.xlane.xlu1 %4770 }
 0x801   : > { %v4772_v26 = vrot.slane %v4771_v49, 4 }
 0x802   : > { %v4759_v34 = vpop.xlane.xlu0 %4758 }
 0x803   : > { %v4773_v3 = vadd.f32 %v4772_v26, %v4771_v49  ;;  %v4760_v50 = vrot.slane %v4759_v34, 4 }
 0x805   : > { %v4774_v41 = vrot.slane %v4773_v3, 2  ;;  %v4761_v52 = vadd.f32 %v4760_v50, %v4759_v34 }
 0x807   : > { %v4762_v45 = vrot.slane %v4761_v52, 2  ;;  %v4775_v12 = vadd.f32 %v4774_v41, %v4773_v3 }
 0x809   : > { %v4763_v0 = vadd.f32 %v4762_v45, %v4761_v52  ;;  %v4776_v30 = vrot.slane %v4775_v12, 1 }
 0x80b   : > { %v4764_v55 = vrot.slane %v4763_v0, 1  ;;  %v4777_v44 = vadd.f32 %v4776_v30, %v4775_v12 }
 0x80d   : > { %v4765_v60 = vadd.f32 %v4764_v55, %v4763_v0 }
 0x80f   : > { %8014 = vpush %v4765_v60 }
 0x810   : > { %8016 = vpush %v4777_v44  ;;  %v5600_v44 = vld [vmem:[#allocation32] sm:$0x3f] }
 0x833   : > { %v11125_v20 = vpop.f32.mrf.mxu0 }
 0x834   : > { %v5107_v8 = vmul.f32 %v11125_v20, %v11125_v20 }
 0x835   : > { %v11127_v40 = vpop.f32.mrf.mxu0 }
 0x836   : > { %7942 = vmatprep.mubr.msk.f32.mxu0 %vm5127_vm5, %v11127_v40  ;;  %v5106_v23 = vmul.f32 %v11127_v40, %v11127_v40 }
 0x839   : > { %v11131_v48 = vpop.f32.mrf.mxu0 }
 0x83a   : > { %v5116_v56 = vrot.slane %v11131_v48, 4  ;;  %v5109_v7 = vmul.f32 %v11131_v48, %v11131_v48  ;;  %v5111_v53 = vmul.f32 %v11131_v48, %v11125_v20 }
 0x83b   : > { %v11133_v35 = vpop.f32.mrf.mxu0 }
 0x83c   : > { %v5108_v59 = vmul.f32 %v11133_v35, %v11133_v35  ;;  %v5115_v19 = vrot.slane %v11133_v35, 4  ;;  %v5122_v5 = vrot.slane %v5109_v7, 4  ;;  %v5110_v63 = vmul.f32 %v11133_v35, %v11127_v40 }
 0x83e   : > { %v5125_v13 = vsel %vm5114_vm4, %v11125_v20, %v5115_v19  ;;  %v5117_v33 = vsel %vm5114_vm4, %v5115_v19, %v5116_v56  ;;  %v5121_v58 = vrot.slane %v5108_v59, 4 }
 0x83f   : > { %7943 = vmatmul.mubr.msk.f32.vlgmr.msra.gmra.mxu0 %vm5127_vm5, %v5125_v13 }
 0x840   : > { %7945 = vmatprep.mubr.msk.f32.mxu0 %vm5127_vm5, %v5117_v33  ;;  %v5126_v6 = vsel %vm5114_vm4, %v5107_v8, %v5121_v58  ;;  %v5123_v2 = vsel %vm5114_vm4, %v5121_v58, %v5122_v5 }
 0x843   : > { %7946 = vmatmul.mubr.msk.f32.gmra.mxu0 %vm5127_vm5, %v5106_v23 }
 0x844   : > { %7948 = vmatprep.mubr.msk.f32.mxu0 %vm5127_vm5, %v5126_v6 }
 0x847   : > { %7949 = vmatmul.mubr.msk.f32.gmra.mxu0 %vm5127_vm5, %v5123_v2 }
 0x848   : > { %7951 = vmatprep.mubr.msk.f32.mxu0 %vm5127_vm5, %v5110_v63 }
 0x84b   : > { %7952 = vmatmul.mubr.msk.f32.gmra.mxu0 %vm5127_vm5, %v5111_v53 }
 0x84c   : > { %7958 = vmatprep.mubr.msk.f32.mxu0 %vm5127_vm5, %v5103_v14 }
 0x8ff   : > { %v7944_v29 = vpop.f32.mrf.mxu0 }
 0x900   : > { %v5260_v57 = vrot.slane %v7944_v29, 4 }
 0x901   : > { %v5219_v42 = vpop.f32.mrf.mxu0 }
 0x903   : > { %v7947_v10 = vpop.f32.mrf.mxu0 }
 0x905   : > { %v5229_v4 = vpop.f32.mrf.mxu0 }
 0x906   : > { %v5261_v38 = vrot.slane %v5229_v4, 4 }
 0x907   : > { %v7950_v39 = vpop.f32.mrf.mxu0 }
 0x908   : > { %6963 = vmatprep.subr.msk.mxu1 %vm5114_vm4, %v5261_v38  ;;  %v5262_v24 = vsel %vm5114_vm4, %v5260_v57, %v5261_v38  ;;  %v5267_v47 = vrot.slane %v7950_v39, 4 }
 0x909   : > { %v5239_v62 = vpop.f32.mrf.mxu0  ;;  %6964 = vmatpush1.msk.msra.mxu1 %vm5114_vm4, %v7944_v29 }
 0x90a   : > { %v5266_v17 = vrot.slane %v5239_v62, 4  ;;  %5317 = vmatprep.subr.mxu1 %v5262_v24 }
 0x90b   : > { %v7953_v16 = vpop.f32.mrf.mxu0  ;;  %5318 = vmatpush1.msra.mxu1 %v5219_v42 }
 0x90c   : > { %6965 = vmatmul.mubr.msk.f32.vlgmr.msra.gmra.mxu1 %vm5127_vm5, %v5103_v14  ;;  %6967 = vmatprep.subr.msk.mxu1 %vm5114_vm4, %v5267_v47  ;;  %v5268_v37 = vsel %vm5114_vm4, %v5266_v17, %v5267_v47 }
 0x90d   : > { %7954 = vmatprep.subr.msk.mxu0 %vm5114_vm4, %v7953_v16  ;;  %v5249_v15 = vpop.f32.mrf.mxu0  ;;  %6968 = vmatpush1.msk.msra.mxu1 %vm5114_vm4, %v5239_v62 }
 0x90e   : > { %7955 = vmatpush3.msk.msra.mxu0 %vm5114_vm4, %v7953_v16  ;;  %5394 = vmatprep.subr.mxu1 %v5268_v37  ;;  %v6974_v37 = vld [vmem:[%s11434_s16] ss:$0 sm:$0xff]  ;;  %s8015_s16 = spop %8014 }
 0x90f   : > { %7956 = vmatprep.subr.mxu0 %v5249_v15  ;;  %5357 = vmatprep.mubr.f32.mxu1 %v11432_v36  ;;  %s4767_s0 = smul.f32 0.0017361111, %s8015_s16 }
 0x910   : > { %5395 = vmatpush1.msra.mxu1 %v7947_v10  ;;  %7957 = vmatpush3.msra.mxu0 %v5249_v15 }
 0x911   : > { %6966 = vmatmul.mubr.msk.f32.gmra.mxu1 %vm5127_vm5, %v5104_v1  ;;  %7961 = vmatprep.subr.msk.mxu1 %vm5114_vm4, %v5599_v28 }
 0x912   : > { %5428 = vmatprep.mubr.f32.mxu1 %v11432_v36  ;;  %7959 = vmatmul.mubr.msk.f32.vlgmr.msra.gmra.mxu0 %vm5127_vm5, %v5104_v1 }
 0x913   : > { %7968 = vmatprep.subr.mxu0 %v11432_v36  ;;  %7972 = vmatprep.mubr.msk.f32.mxu0 %vm8970_vm2, %v11432_v36 }
 0x915   : > { %6969 = vmatmul.mubr.msk.f32.vlgmr.msra.gmra.mxu1 %vm5127_vm5, %v5103_v14 }
 0x916   : > { %5434 = vmatprep.mubr.f32.mxu1 %v11432_v36  ;;  %7962 = vmatpush3.msk.msra.mxu1 %vm5114_vm4, %v5599_v28 }
 0x917   : > { %7963 = vmatprep.subr.mxu1 %v5598_v61 }
 0x918   : > { %7964 = vmatpush3.msra.mxu1 %v5598_v61 }
 0x919   : > { %6970 = vmatmul.mubr.msk.f32.gmra.mxu1 %vm5127_vm5, %v5104_v1  ;;  %7975 = vmatprep.subr.msk.mxu1 %vm5114_vm4, %v5599_v28 }
 0x91a   : > { %7965 = vmatprep.mubr.msk.f32.mxu1 %vm5127_vm5, %v11127_v40 }
 0x91d   : > { %7966 = vmatmul.mubr.msk.f32.vlgmr.msra.gmra.mxu1 %vm5127_vm5, %v11125_v20 }
 0x91e   : > { %7976 = vmatpush3.msk.msra.mxu1 %vm5114_vm4, %v5599_v28  ;;  %7979 = vmatprep.mubr.msk.f32.mxu1 %vm5127_vm5, %v11133_v35 }
 0x91f   : > { %7977 = vmatprep.subr.mxu1 %v5598_v61 }
 0x920   : > { %7978 = vmatpush3.msra.mxu1 %v5598_v61 }
 0x921   : > { %7980 = vmatmul.mubr.msk.f32.vlgmr.msra.gmra.mxu1 %vm5127_vm5, %v11131_v48 }
 0x9cc   : > { %v5353_v31 = vpop.f32.mrf.mxu1 }
 0x9cd   : > { %v5516_v11 = vmul.f32 %v5353_v31, %v5353_v31 }
 0x9ce   : > { %v5355_v43 = vpop.f32.mrf.mxu1 }
 0x9cf   : > { %v5518_v51 = vmul.f32 %v5355_v43, %v5355_v43  ;;  %v5520_v19 = vmul.f32 %v5355_v43, %v5353_v31 }
 0x9d1   : > { %v5359_v25 = vpop.f32.mrf.mxu1  ;;  %v5558_v32 = vadd.f32 %v5518_v51, %v5516_v11  ;;  %v5554_v62 = vmul.f32 2.0, %v5520_v19 }
 0x9d2   : > { %v5517_v22 = vmul.f32 %v5359_v25, %v5359_v25  ;;  %v7960_v35 = vpop.f32.mrf.mxu0 }
 0x9d3   : > { %v5361_v27 = vpop.f32.mrf.mxu1  ;;  %v5560_v50 = vadd.f32 %v5558_v32, %v10057_v18  ;;  %v5556_v31 = vadd.f32 %v5554_v62, %v10057_v18 }
 0x9d4   : > { %v5519_v9 = vmul.f32 %v5361_v27, %v5361_v27  ;;  %v5507_v59 = vpop.f32.mrf.mxu0  ;;  %v5521_v13 = vmul.f32 %v5361_v27, %v5359_v25 }
 0x9d5   : > { %v5430_v21 = vpop.f32.mrf.mxu1  ;;  %v5526_v58 = vsub.f32 %v5507_v59, %v5520_v19 }
 0x9d6   : > { %v5559_v54 = vadd.f32 %v5519_v9, %v5517_v22  ;;  %v5522_v34 = vsub.f32 %v5430_v21, %v5516_v11  ;;  %v5527_v5 = vsub.f32 %v7960_v35, %v5521_v13  ;;  %v5555_v39 = vmul.f32 2.0, %v5521_v13 }
 0x9d7   : > { %v5432_v49 = vpop.f32.mrf.mxu1  ;;  %v5528_v2 = vmul.f32 2.0, %v5526_v58 }
 0x9d8   : > { %v5561_v26 = vadd.f32 %v5559_v54, %v10057_v18  ;;  %v5524_v3 = vsub.f32 %v5432_v49, %v5518_v51  ;;  %v5529_v10 = vmul.f32 2.0, %v5527_v5  ;;  %v5557_v28 = vadd.f32 %v5555_v39, %v10057_v18  ;;  %v5910_v49 = vld [vmem:[%s11435_s8] sm:$0x3f]  ;;  %s8017_s8 = spop %8016 }
 0x9d9   : > { %v5436_v41 = vpop.f32.mrf.mxu1  ;;  %v5530_v38 = vadd.f32 %v5528_v2, %v10176_v46  ;;  %7989 = vmatprep.subr.msk.mxu1 %vm5926_vm6, %v5910_v49  ;;  %s4779_s27 = smul.f32 0.0017361111, %s8017_s8 }
 0x9da   : > { %v5532_v52 = vadd.f32 %v5524_v3, %v5522_v34  ;;  %8344 = vrcp.f32 %v5561_v26  ;;  %v5523_v0 = vsub.f32 %v5436_v41, %v5517_v22  ;;  %v5531_v17 = vadd.f32 %v5529_v10, %v10176_v46  ;;  %7990 = vmatpush3.msk.msra.mxu1 %vm5926_vm6, %v5910_v49 }
 0x9db   : > { %v5438_v45 = vpop.f32.mrf.mxu1  ;;  %8346 = vrcp.f32 %v5560_v50 }
 0x9dc   : > { %v5534_v12 = vadd.f32 %v5532_v52, %v10176_v46  ;;  %v5525_v30 = vsub.f32 %v5438_v45, %v5519_v9 }
 0x9dd   : > { %v7967_v55 = vpop.f32.mrf.mxu1 }
 0x9de   : > { %8348 = vrcp.f32 %v5534_v12  ;;  %v5533_v60 = vadd.f32 %v5525_v30, %v5523_v0  ;;  %7969 = vmatpush3.msk.msra.mxu0 %vm5114_vm4, %v7967_v55 }
 0x9df   : > { %v5673_v20 = vpop.f32.mrf.mxu1  ;;  %7970 = vmatprep.subr.mxu0 %v11432_v36 }
 0x9e0   : > { %v5535_v40 = vadd.f32 %v5533_v60, %v10176_v46  ;;  %7971 = vmatpush3.msra.mxu0 %v5673_v20 }
 0x9e1   : > { %7973 = vmatmul.mubr.msk.f32.vlgmr.msra.gmra.mxu0 %vm5127_vm5, %v5600_v44  ;;  %v7981_v48 = vpop.f32.mrf.mxu1  ;;  %7982 = vmatprep.subr.mxu0 %v11432_v36 }
 0x9e2   : > { %8350 = vrcp.f32 %v5535_v40  ;;  %7983 = vmatpush3.msk.msra.mxu0 %vm5114_vm4, %v7981_v48  ;;  %7986 = vmatprep.mubr.msk.f32.mxu0 %vm8970_vm2, %v11432_v36 }
 0x9e3   : > { %v5828_v56 = vpop.f32.mrf.mxu1  ;;  %7984 = vmatprep.subr.mxu0 %v11432_v36 }
 0x9e4   : > { %7985 = vmatpush3.msra.mxu0 %v5828_v56 }
 0x9e5   : > { %7987 = vmatmul.mubr.msk.f32.vlgmr.msra.gmra.mxu0 %vm5127_vm5, %v5600_v44 }
 0x9e6   : > { %6123 = vmatprep.mubr.f32.mxu0 %v11432_v36 }
 0x9e7   : > { %v8345_v33 = vpop.eup %8344 }
 0x9e8   : > { %v8347_v7 = vpop.eup %8346  ;;  %v5565_v23 = vmul.f32 %v8345_v33, %v5561_v26 }
 0x9e9   : > { %v5564_v63 = vmul.f32 %v8347_v7, %v5560_v50 }
 0x9ea   : > { %v5567_v29 = vsub.f32 2.0, %v5565_v23 }
 0x9eb   : > { %v8349_v8 = vpop.eup %8348  ;;  %v5566_v57 = vsub.f32 2.0, %v5564_v63 }
 0x9ec   : > { %v5538_v6 = vmul.f32 %v8349_v8, %v5534_v12  ;;  %v5569_v15 = vmul.f32 %v8345_v33, %v5567_v29 }
 0x9ed   : > { %v5568_v1 = vmul.f32 %v8347_v7, %v5566_v57 }
 0x9ee   : > { %v5540_v53 = vsub.f32 2.0, %v5538_v6  ;;  %v5571_v25 = vmul.f32 %v5569_v15, %v5557_v28 }
 0x9ef   : > { %v8351_v14 = vpop.eup %8350  ;;  %v5570_v11 = vmul.f32 %v5568_v1, %v5556_v31 }
 0x9f0   : > { %v5539_v42 = vmul.f32 %v8351_v14, %v5535_v40  ;;  %v5542_v4 = vmul.f32 %v8349_v8, %v5540_v53 }
 0x9f2   : > { %v5541_v24 = vsub.f32 2.0, %v5539_v42  ;;  %v5544_v47 = vmul.f32 %v5542_v4, %v5530_v38  ;;  %v5911_v42 = vld [vmem:[#allocation18] sm:$0xff] }
 0x9f4   : > { %v5543_v16 = vmul.f32 %v8351_v14, %v5541_v24  ;;  %v5552_v43 = vmul.f32 %v6974_v37, %v5544_v47  ;;  %v5912_v24 = vld [vmem:[#allocation18 + $0x8] sm:$0x7] }
 0x9f6   : > { %v5545_v61 = vmul.f32 %v5543_v16, %v5531_v17  ;;  %v5572_v32 = vmul.f32 %v5570_v11, %v5552_v43 }
 0x9f8   : > { %v5553_v51 = vmul.f32 %v6974_v37, %v5545_v61 }
 0x9fa   : > { %v5586_v27 = vsel %vm5114_vm4, %v5553_v51, 0.0  ;;  %v5573_v22 = vmul.f32 %v5571_v25, %v5553_v51 }
 0x9fb   : > { %v5587_v9 = vadd.f32 %v5586_v27, %v5552_v43 }
 0x9fc   : > { %v5574_v21 = vsel %vm5114_vm4, %v5573_v22, 0.0 }
 0x9fd   : > { %5588 = vadd.xlane.f32.xlu1 %v5587_v9  ;;  %v5575_v54 = vadd.f32 %v5574_v21, %v5572_v32 }
 0x9ff   : > { %5576 = vadd.xlane.f32.xlu0 %v5575_v54 }
 0xa86   : > { %v5589_v26 = vpop.xlane.xlu1 %5588 }
 0xa87   : > { %v5590_v34 = vrot.slane %v5589_v26, 4 }
 0xa88   : > { %v5577_v3 = vpop.xlane.xlu0 %5576 }
 0xa89   : > { %v5591_v50 = vadd.f32 %v5590_v34, %v5589_v26  ;;  %v5578_v41 = vrot.slane %v5577_v3, 4 }
 0xa8b   : > { %v5592_v52 = vrot.slane %v5591_v50, 2  ;;  %v5579_v45 = vadd.f32 %v5578_v41, %v5577_v3 }
 0xa8d   : > { %v5580_v12 = vrot.slane %v5579_v45, 2  ;;  %v5593_v0 = vadd.f32 %v5592_v52, %v5591_v50 }
 0xa8f   : > { %v5581_v30 = vadd.f32 %v5580_v12, %v5579_v45  ;;  %v5594_v55 = vrot.slane %v5593_v0, 1 }
 0xa91   : > { %v5582_v60 = vrot.slane %v5581_v30, 1  ;;  %v5595_v20 = vadd.f32 %v5594_v55, %v5593_v0 }
 0xa93   : > { %v5583_v44 = vadd.f32 %v5582_v60, %v5581_v30 }
 0xa95   : > { %8018 = vpush %v5583_v44 }
 0xa96   : > { %8020 = vpush %v5595_v20 }
 0xaa1   : > { %v5754_v40 = vpop.f32.mrf.mxu0 }
 0xaa2   : > { %v5914_v48 = vmul.f32 %v5754_v40, %v5754_v40 }
 0xaa3   : > { %v7974_v35 = vpop.f32.mrf.mxu0 }
 0xaa4   : > { %v5921_v59 = vrot.slane %v5914_v48, 4 }
 0xaa5   : > { %v5906_v56 = vpop.f32.mrf.mxu0 }
 0xaa6   : > { %v5915_v19 = vmul.f32 %v5906_v56, %v5906_v56  ;;  %v5918_v13 = vrot.slane %v5906_v56, 2  ;;  %v5916_v6 = vmul.f32 %v5906_v56, %v5754_v40 }
 0xaa7   : > { %v7988_v33 = vpop.f32.mrf.mxu0 }
 0xaa8   : > { %v5924_v58 = vrot.slane %v5915_v19, 6  ;;  %v5928_v7 = vsel %vm5114_vm4, %v5918_v13, %v5921_v59  ;;  %v5927_v8 = vsel %vm5926_vm6, %v5754_v40, %v5918_v13 }
 0xaa9   : > { %7991 = vmatprep.mubr.msk.f32.mxu1 %vm5931_vm7, %v5927_v8 }
 0xaaa   : > { %7992 = vmatmul.mubr.msk.f32.vlgmr.msra.gmra.mxu1 %vm5931_vm7, %v5928_v7  ;;  %v5930_v23 = vsel %vm5929_vm8, %v5921_v59, %v5924_v58 }
 0xaab   : > { %7994 = vmatprep.mubr.msk.f32.mxu1 %vm5931_vm7, %v5930_v23 }
 0xaae   : > { %7995 = vmatmul.mubr.msk.f32.gmra.mxu1 %vm5931_vm7, %v5916_v6 }
 0xaaf   : > { %6200 = vmatprep.mubr.f32.mxu1 %v11432_v36 }
 0xac6   : > { %s8019_s26 = spop %8018 }
 0xac7   : > { %s8021_s4 = spop %8020 }
 0xb6a   : > { %v7993_v5 = vpop.f32.mrf.mxu1 }
 0xb6b   : > { %v6035_v2 = vrot.slane %v7993_v5, 6  ;;  %v6038_v4 = vrot.slane %v7993_v5, 4 }
 0xb6c   : > { %v6013_v63 = vpop.f32.mrf.mxu1 }
 0xb6d   : > { %v6034_v53 = vrot.slane %v6013_v63, 6 }
 0xb6e   : > { %v7996_v14 = vpop.f32.mrf.mxu1 }
 0xb6f   : > { %v6036_v29 = vsel %vm5929_vm8, %v6034_v53, %v6035_v2  ;;  %v7001_v2 = vld [vmem:[%s11436_s5] ss:$0 sm:$0xff]  ;;  %s5585_s5 = smul.f32 0.0069444445, %s8019_s26 }
 0xb70   : > { %v6023_v10 = vpop.f32.mrf.mxu1  ;;  %6990 = vmatprep.subr.msk.mxu0 %vm5926_vm6, %v6036_v29 }
 0xb71   : > { %v6039_v57 = vrot.slane %v6023_v10, 4  ;;  %v6041_v38 = vrot.slane %v6023_v10, 2  ;;  %6991 = vmatpush1.msk.msra.mxu0 %vm5926_vm6, %v6013_v63 }
 0xb72   : > { %6992 = vmatmul.mubr.msk.f32.vlgmr.msra.gmra.mxu0 %vm5931_vm7, %v5911_v42  ;;  %7997 = vmatprep.subr.msk.mxu0 %vm5926_vm6, %v7996_v14 }
 0xb73   : > { %6994 = vmatprep.subr.msk.mxu1 %vm5926_vm6, %v6041_v38  ;;  %v6040_v39 = vsel %vm5114_vm4, %v6038_v4, %v6039_v57  ;;  %6129 = vmatprep.mubr.f32.mxu0 %v11432_v36 }
 0xb74   : > { %6995 = vmatpush1.msk.msra.mxu1 %vm5926_vm6, %v6040_v39  ;;  %7998 = vmatpush3.msk.msra.mxu0 %vm5926_vm6, %v7996_v14 }
 0xb75   : > { %6996 = vmatmul.mubr.msk.f32.vlgmr.msra.gmra.mxu1 %vm5931_vm7, %v5911_v42 }
 0xb76   : > { %6993 = vmatmul.mubr.msk.f32.gmra.mxu0 %vm5931_vm7, %v5912_v24  ;;  %6206 = vmatprep.mubr.f32.mxu1 %v11432_v36 }
 0xb77   : > { %7999 = vmatprep.mubr.msk.f32.mxu0 %vm5931_vm7, %v5911_v42 }
 0xb79   : > { %6997 = vmatmul.mubr.msk.f32.gmra.mxu1 %vm5931_vm7, %v5912_v24 }
 0xb7a   : > { %8000 = vmatmul.mubr.msk.f32.vlgmr.msra.gmra.mxu0 %vm5931_vm7, %v5912_v24 }
 0xc32   : > { %v6125_v62 = vpop.f32.mrf.mxu0 }
 0xc33   : > { %v6288_v47 = vmul.f32 %v6125_v62, %v6125_v62 }
 0xc34   : > { %v6127_v17 = vpop.f32.mrf.mxu0 }
 0xc35   : > { %v6290_v16 = vmul.f32 %v6127_v17, %v6127_v17  ;;  %v6202_v37 = vpop.f32.mrf.mxu1  ;;  %v6292_v41 = vmul.f32 %v6127_v17, %v6125_v62 }
 0xc36   : > { %v6131_v15 = vpop.f32.mrf.mxu0  ;;  %v6294_v31 = vsub.f32 %v6202_v37, %v6288_v47 }
 0xc37   : > { %v6330_v1 = vadd.f32 %v6290_v16, %v6288_v47  ;;  %v6289_v28 = vmul.f32 %v6131_v15, %v6131_v15  ;;  %v6204_v61 = vpop.f32.mrf.mxu1  ;;  %v6326_v23 = vmul.f32 2.0, %v6292_v41 }
 0xc38   : > { %v6296_v43 = vsub.f32 %v6204_v61, %v6290_v16  ;;  %v6133_v51 = vpop.f32.mrf.mxu0 }
 0xc39   : > { %v6332_v36 = vadd.f32 %v6330_v1, %v10057_v18  ;;  %v6291_v25 = vmul.f32 %v6133_v51, %v6133_v51  ;;  %v6208_v11 = vpop.f32.mrf.mxu1  ;;  %v6293_v52 = vmul.f32 %v6133_v51, %v6131_v15  ;;  %v6328_v10 = vadd.f32 %v6326_v23, %v10057_v18 }
 0xc3a   : > { %v6304_v27 = vadd.f32 %v6296_v43, %v6294_v31  ;;  %v6295_v21 = vsub.f32 %v6208_v11, %v6289_v28  ;;  %v8001_v3 = vpop.f32.mrf.mxu0 }
 0xc3b   : > { %v6331_v22 = vadd.f32 %v6291_v25, %v6289_v28  ;;  %v6210_v9 = vpop.f32.mrf.mxu1  ;;  %8352 = vrcp.f32 %v6332_v36  ;;  %v6299_v60 = vsub.f32 %v8001_v3, %v6293_v52  ;;  %v6327_v7 = vmul.f32 2.0, %v6293_v52 }
 0xc3c   : > { %v6306_v32 = vadd.f32 %v6304_v27, %v10176_v46  ;;  %v6297_v54 = vsub.f32 %v6210_v9, %v6291_v25  ;;  %v6279_v50 = vpop.f32.mrf.mxu0  ;;  %v6371_v9 = vlaneseq }
 0xc3d   : > { %v6333_v49 = vadd.f32 %v6331_v22, %v10057_v18  ;;  %v6298_v45 = vsub.f32 %v6279_v50, %v6292_v41  ;;  %v6301_v19 = vmul.f32 2.0, %v6299_v60  ;;  %v6329_v29 = vadd.f32 %v6327_v7, %v10057_v18 }
 0xc3e   : > { %8354 = vrcp.f32 %v6306_v32  ;;  %v6305_v26 = vadd.f32 %v6297_v54, %v6295_v21  ;;  %v6374_v21 = vand.u32 127, %v6371_v9  ;;  %v6386_v50 = vstv %s3831_s12 }
 0xc3f   : > { %8356 = vrcp.f32 %v6333_v49  ;;  %v6300_v40 = vmul.f32 2.0, %v6298_v45  ;;  %v6303_v5 = vadd.f32 %v6301_v19, %v10176_v46  ;;  %v6389_v45 = vstv %s3846_s17 }
 0xc40   : > { %v6307_v34 = vadd.f32 %v6305_v26, %v10176_v46  ;;  %vm6376_vm11 = vcmp.eq.s32.totalorder %v6374_v21, 0  ;;  %vm6384_vm14 = vcmp.eq.s32.totalorder %v6374_v21, 1  ;;  %vm6391_vm1 = vcmp.eq.s32.totalorder %v6374_v21, 2 }
 0xc41   : > { %v6302_v58 = vadd.f32 %v6300_v40, %v10176_v46  ;;  %vm6398_vm4 = vcmp.eq.s32.totalorder %v6374_v21, 3  ;;  %v6400_v60 = vstv %s5585_s5  ;;  %vm6405_vm7 = vcmp.eq.s32.totalorder %v6374_v21, 4 }
 0xc42   : > { %8358 = vrcp.f32 %v6307_v34 }
 0xc48   : > { %v8353_v12 = vpop.eup %8352 }
 0xc49   : > { %v6336_v44 = vmul.f32 %v8353_v12, %v6332_v36 }
 0xc4b   : > { %v8355_v0 = vpop.eup %8354  ;;  %v6338_v33 = vsub.f32 2.0, %v6336_v44 }
 0xc4c   : > { %v8357_v30 = vpop.eup %8356  ;;  %v6310_v55 = vmul.f32 %v8355_v0, %v6306_v32  ;;  %v6372_v32 = vshrl.u32 %v6371_v9, 7 }
 0xc4d   : > { %v6337_v20 = vmul.f32 %v8357_v30, %v6333_v49  ;;  %v6340_v14 = vmul.f32 %v8353_v12, %v6338_v33  ;;  %v6378_v49 = vstv %s2505_s2  ;;  %v6393_v12 = vstv %s4767_s0  ;;  %s5597_s2 = smul.f32 0.0069444445, %s8021_s4  ;;  %s11441_s0 = sld [smem:[#allocation75_spill]] }
 0xc4e   : > { %v6312_v48 = vsub.f32 2.0, %v6310_v55  ;;  %vm6375_vm10 = vcmp.eq.s32.totalorder %v6372_v32, 0  ;;  %vm6380_vm13 = vcmp.eq.s32.totalorder %v6372_v32, 1  ;;  %v6396_v55 = vstv %s4779_s27 }
 0xc4f   : > { %v8359_v35 = vpop.eup %8358  ;;  %v6339_v56 = vsub.f32 2.0, %v6337_v20  ;;  %v6342_v39 = vmul.f32 %v6340_v14, %v6328_v10  ;;  %vm11257_vm12 = vmand %vm6375_vm10, %vm6376_vm11  ;;  %v6403_v40 = vstv %s5597_s2 }
 0xc50   : > { %v6311_v59 = vmul.f32 %v8359_v35, %v6307_v34  ;;  %v6314_v13 = vmul.f32 %v8355_v0, %v6312_v48  ;;  %v6379_v26 = vsel %vm11257_vm12, %v6378_v49, 0.0  ;;  %vm6381_vm15 = vmand %vm6380_vm13, %vm6376_vm11  ;;  %v6382_v34 = vstv %s2526_s28 }
 0xc51   : > { %v6341_v53 = vmul.f32 %v8357_v30, %v6339_v56  ;;  %vm11265_vm0 = vmand %vm6375_vm10, %vm6384_vm14  ;;  %v6383_v41 = vsel %vm6381_vm15, %v6382_v34, %v6379_v26 }
 0xc52   : > { %v6313_v8 = vsub.f32 2.0, %v6311_v59  ;;  %v6316_v6 = vmul.f32 %v6314_v13, %v6302_v58  ;;  %v6387_v52 = vsel %vm11265_vm0, %v6386_v50, %v6383_v41  ;;  %vm6388_vm2 = vmand %vm6380_vm13, %vm6384_vm14 }
 0xc53   : > { %v6343_v38 = vmul.f32 %v6341_v53, %v6329_v29  ;;  %vm6392_vm3 = vmand %vm6375_vm10, %vm6391_vm1  ;;  %v6390_v0 = vsel %vm6388_vm2, %v6389_v45, %v6387_v52  ;;  %s1096_s8 = scalar_lea.vmem %s11441_s0, %s6717_s11 }
 0xc54   : > { %v6315_v63 = vmul.f32 %v8359_v35, %v6313_v8  ;;  %v6324_v4 = vmul.f32 %v7001_v2, %v6316_v6  ;;  %v6394_v30 = vsel %vm6392_vm3, %v6393_v12, %v6390_v0  ;;  %vm6395_vm5 = vmand %vm6380_vm13, %vm6391_vm1 }
 0xc55   : > { %vm6399_vm6 = vmand %vm6375_vm10, %vm6398_vm4  ;;  %v6397_v44 = vsel %vm6395_vm5, %v6396_v55, %v6394_v30 }
 0xc56   : > { %v6317_v42 = vmul.f32 %v6315_v63, %v6303_v5  ;;  %v6344_v47 = vmul.f32 %v6342_v39, %v6324_v4  ;;  %v6401_v20 = vsel %vm6399_vm6, %v6400_v60, %v6397_v44  ;;  %vm6402_vm8 = vmand %vm6380_vm13, %vm6398_vm4 }
 0xc57   : > { %vm6409_vm11 = vmand %vm6380_vm13, %vm6405_vm7  ;;  %v6404_v48 = vsel %vm6402_vm8, %v6403_v40, %v6401_v20 }
 0xc58   : > { %v6325_v57 = vmul.f32 %v7001_v2, %v6317_v42 }
 0xc5a   : > { %v6359_v24 = vsel %vm6346_vm9, %v6325_v57, 0.0  ;;  %v6345_v62 = vmul.f32 %v6343_v38, %v6325_v57 }
 0xc5b   : > { %v6360_v46 = vadd.f32 %v6359_v24, %v6324_v4 }
 0xc5c   : > { %v6347_v17 = vsel %vm6346_vm9, %v6345_v62, 0.0  ;;  %vm6406_vm9 = vmand %vm6375_vm10, %vm6405_vm7 }
 0xc5d   : > { %6361 = vadd.xlane.f32.xlu1 %v6360_v46  ;;  %v6348_v16 = vadd.f32 %v6347_v17, %v6344_v47 }
 0xc5f   : > { %6349 = vadd.xlane.f32.xlu0 %v6348_v16 }
 0xce6   : > { %v6362_v37 = vpop.xlane.xlu1 %6361 }
 0xce7   : > { %v6363_v15 = vrot.slane %v6362_v37, 4 }
 0xce8   : > { %v6350_v1 = vpop.xlane.xlu0 %6349 }
 0xce9   : > { %v6364_v28 = vadd.f32 %v6363_v15, %v6362_v37  ;;  %v6351_v61 = vrot.slane %v6350_v1, 4 }
 0xceb   : > { %v6365_v31 = vrot.slane %v6364_v28, 2  ;;  %v6352_v18 = vadd.f32 %v6351_v61, %v6350_v1 }
 0xced   : > { %v6366_v43 = vadd.f32 %v6365_v31, %v6364_v28  ;;  %v6353_v51 = vrot.slane %v6352_v18, 2 }
 0xcef   : > { %v6354_v36 = vadd.f32 %v6353_v51, %v6352_v18  ;;  %v6367_v25 = vrot.slane %v6366_v43, 1 }
 0xcf1   : > { %v6355_v11 = vrot.slane %v6354_v36, 1  ;;  %v6368_v22 = vadd.f32 %v6367_v25, %v6366_v43 }
 0xcf3   : > { %v6356_v27 = vadd.f32 %v6355_v11, %v6354_v36 }
 0xcf5   : > { %8022 = vpush %v6356_v27 }
 0xcf6   : > { %8024 = vpush %v6368_v22 }
 0xd26   : > { %s8023_s9 = spop %8022 }
 0xd27   : > { %s6358_s28 = smul.f32 0.008264462, %s8023_s9  ;;  %s8025_s12 = spop %8024 }
 0xd28   : > { %s6370_s30 = smul.f32 0.008264462, %s8025_s12 }
 0xd29   : > { %v6407_v35 = vstv %s6358_s28 }
 0xd2a   : > { %v6408_v56 = vsel %vm6406_vm9, %v6407_v35, %v6404_v48  ;;  %v6410_v59 = vstv %s6370_s30 }
 0xd2b   : > { %v6411_v19 = vsel %vm6409_vm11, %v6410_v59, %v6408_v56 }
 0xd2c   : > { %6412 = vst [vmem:[%s1096_s8] sm:$0xff] %v6411_v19 }
 0xd2d PF: > { %p46_p2 = scmp.ge.s32.totalorder %s9340_s6, 8   ;;  %s11442_s27 = smov %s8937_s3 }
 0xd2e   : > { %s11443_s3 = smov %s8941_s7  ;;  %s11444_s7 = smov %s9351_s10 }
 0xd2f   : > { %s11445_s28 = smov %s9340_s6  ;;  %48 = sbr.rel (!%p46_p2) target bundleno = 31 (0x1f), region = 244 }
 0xd34   :  { %6432 = vsyncpa [#allocation3], 1 }
 0xd35   :  { %6434 = vsyncpa [#allocation3 + $0x1], 1 }
 0xd36   :  { %6435 = vsyncpa [#allocation7], 1 }
 0xd37   :  { %6436 = vsyncpa [#allocation10], 1 }
 0xd38   :  { %6437 = vsyncpa [#allocation13], 1 }
 0xd39   :  { %6438 = vsyncpa [#allocation16], 1 }
 0xd3a   :  { %6439 = vsyncpa [#allocation19], 1 }
 0xd3b   :  { %6440 = vsyncpa [#allocation22], 1 }
 0xd3c   :  { %6441 = vsyncpa [#allocation25], 1 }
 0xd3d   :  { %6442 = vsyncpa [#allocation28], 1 }
 0xd3e   :  { %6443 = vsyncpa [#allocation31], 1 }
 0xd3f   :  { %6444 = vsyncpa [#allocation4], 1 }
 0xd40   :  { %6446 = vsyncpa [#allocation4 + $0x1], 1 }

</bundles_post_ra>
